<compile_context>
chip_gen: v6e
topology: v6e:2x2x1
jax: 0.10.0
libtpu: 0.0.40
codegen_flags: <defaults>
</compile_context>

<pallas_src>
import jax
import jax.numpy as jnp
from jax.experimental import pallas as pl
from jax.experimental.pallas import tpu as pltpu


_VMEM_LIMIT_CACHE = []


def _vmem_limit_bytes():
    """Generation-aware VMEM limit: physical capacity minus ~16 MiB headroom for compiler
    scratch (v7x 64 MiB -> 48 MiB; v5e/v6e 128 MiB -> 100 MiB cap); 48 MiB fallback."""
    if not _VMEM_LIMIT_CACHE:
        cap = 64 * 1024 * 1024
        try:
            cap = int(getattr(pltpu.get_tpu_info(), "vmem_capacity_bytes", cap))
        except Exception:
            pass
        _VMEM_LIMIT_CACHE.append(
            max(32 * 1024 * 1024, min(cap - 16 * 1024 * 1024, 100 * 1024 * 1024)))
    return _VMEM_LIMIT_CACHE[0]


def _roll_flat(z, k, P):
    """Static roll on the flat spatial (lane) axis.

    pltpu.roll follows the jnp.roll convention: result[:, f] = z[:, (f - k) % P].  The runtime
    sign probe of the previous version is dropped (review item); the end-to-end reference check
    in __main__ doubles as the convention assert.
    """
    k = k % P
    if k == 0:
        return z
    return pltpu.roll(z, k, axis=1)


def _erf_poly(z):
    # Abramowitz & Stegun 7.1.26, max abs error ~1.5e-7 ("exact"-erf GELU), Mosaic-friendly ops.
    p = 0.3275911
    a1, a2, a3, a4, a5 = 0.254829592, -0.284496736, 1.421413741, -1.453152027, 1.061405429
    s = jnp.where(z >= 0, 1.0, -1.0)
    az = jnp.abs(z)
    t = 1.0 / (1.0 + p * az)
    poly = ((((a5 * t + a4) * t + a3) * t + a2) * t + a1) * t
    return s * (1.0 - poly * jnp.exp(-az * az))


def _row_col(H, W, P):
    lane = jax.lax.broadcasted_iota(jnp.int32, (1, P), 1)
    if W & (W - 1) == 0:                       # power-of-two W: shift/and (cheap, exact)
        row = lane >> (W.bit_length() - 1)
        col = lane & (W - 1)
    else:
        row = lane // W
        col = lane - row * W
    return row, col


# --------------------------------------------------------------------------------------------
# Stage kernels (each runs once per image; grid=(B,) "parallel")
# --------------------------------------------------------------------------------------------

def _make_stage1_kernel(C, H, W):
    """PEG depthwise 3x3 (+bias, +residual) + fc1 1x1 conv; emits per-image BN sum/sumsq."""
    P = H * W

    def kernel(x_ref, wdw_ref, bdw_ref, w1_ref, b1_ref, c1_ref, s1_ref, s2_ref):
        xb = x_ref[...]                              # (C, P)
        w_dw = wdw_ref[...]                          # (C, 9), column t = ky*3 + kx
        row, col = _row_col(H, W, P)

        # depthwise 3x3 via flat rolls + iota boundary masks (zero padding)
        acc = xb * w_dw[:, 4:5]                      # center tap (ky, kx) = (1, 1)
        for ky in range(3):
            for kx in range(3):
                dy, dx = ky - 1, kx - 1
                if dy == 0 and dx == 0:
                    continue
                ok = jnp.logical_and(
                    jnp.logical_and(row + dy >= 0, row + dy < H),
                    jnp.logical_and(col + dx >= 0, col + dx < W))
                shifted = _roll_flat(xb, -(dy * W + dx), P)          # x[h+dy, w+dx], wrap masked
                t = ky * 3 + kx
                acc = acc + (shifted * jnp.where(ok, 1.0, 0.0)) * w_dw[:, t:t + 1]
        y = xb + acc + bdw_ref[...]                  # PEG: residual + conv + bias

        # fc1 1x1 conv: (C,C) @ (C,P) on the MXU, f32 accumulate
        c1 = jnp.dot(w1_ref[...], y, preferred_element_type=jnp.float32) + b1_ref[...]
        c1_ref[...] = c1
        s1_ref[...] = jnp.sum(c1, axis=1, keepdims=True)       # per-image BN stats
        s2_ref[...] = jnp.sum(c1 * c1, axis=1, keepdims=True)

    return kernel


def _make_stage2_kernel(C, H, W, shift_counts):
    """fc1 BN apply + DyMRconv + grapher 1x1 conv (concat-free); emits per-image BN stats."""
    P = H * W

    def kernel(c1_ref, sc_ref, sh_ref, wga_ref, wgb_ref, wgc_ref, bg_ref,
               cg_ref, s1_ref, s2_ref):
        xg = c1_ref[...] * sc_ref[...] + sh_ref[...]            # fc1 BN applied, (C, P)
        _, col = _row_col(H, W, P)

        # x_rolled0 = roll H by H//2, then W by W//2 -- folded into 2 flat rolls + one select
        base = (H // 2) * W
        r = (W // 2) % W
        if r == 0:
            xr0 = _roll_flat(xg, base, P)
        else:
            main = _roll_flat(xg, base + r, P)                  # correct for lanes with col >= r
            wrap = _roll_flat(xg, base + r - W, P)              # correct for lanes with col <  r
            xr0 = jnp.where(col < r, wrap, main)

        norm0 = jnp.sum(jnp.abs(xg - xr0), axis=0, keepdims=True)      # (1, P) L1 over channels
        mean0 = jnp.sum(norm0, axis=1, keepdims=True) * (1.0 / P)
        var0 = jnp.sum((norm0 - mean0) ** 2, axis=1, keepdims=True) * (1.0 / (P - 1))
        thresh = mean0 - jnp.sqrt(var0)                                 # torch.std is unbiased

        # TODO(synk): if a bundle dump shows the XLU/extended slot binding here, move these
        #             channel L1 reductions onto the (idle) MXU as a ones-row matmul.
        x_j = jnp.zeros_like(xg)
        mask_sum = jnp.zeros_like(norm0)
        for s_eff, cnt in shift_counts:                 # deduped shifts, static unroll
            if s_eff == 0:
                # dist == 0 and (xr - x) == 0: only mask_sum changes (x_j is a running max >= 0)
                mask_sum = mask_sum + float(cnt) * jnp.where(thresh > 0.0, 1.0, 0.0)
            else:
                diff = _roll_flat(xg, s_eff * W, P) - xg
                dist = jnp.sum(jnp.abs(diff), axis=0, keepdims=True)
                mask = jnp.where(dist < thresh, 1.0, 0.0)
                x_j = jnp.maximum(x_j, diff * mask)
                mask_sum = mask_sum + float(cnt) * mask

        m_min = jnp.min(mask_sum, axis=1, keepdims=True)
        m_max = jnp.max(mask_sum, axis=1, keepdims=True)
        x_wt = jnp.where(mask_sum < (m_max - m_min) * 0.4, 1.0, 0.0)    # (1, P)

        # grapher 1x1 conv on the channel concat [xg, x_j, xg*x_wt], concat-free:
        # three accumulated (C,C)@(C,P) partial matmuls instead of a (3C,P) VMEM slab.
        cg = (jnp.dot(wga_ref[...], xg, preferred_element_type=jnp.float32)
              + jnp.dot(wgb_ref[...], x_j, preferred_element_type=jnp.float32)
              + jnp.dot(wgc_ref[...], xg * x_wt, preferred_element_type=jnp.float32)
              + bg_ref[...])
        cg_ref[...] = cg
        s1_ref[...] = jnp.sum(cg, axis=1, keepdims=True)
        s2_ref[...] = jnp.sum(cg * cg, axis=1, keepdims=True)

    return kernel


def _make_stage3_kernel(C):
    """grapher BN apply + GELU + fc2 1x1 conv; emits per-image BN stats."""

    def kernel(cg_ref, sc_ref, sh_ref, w2_ref, b2_ref, c2_ref, s1_ref, s2_ref):
        z = cg_ref[...] * sc_ref[...] + sh_ref[...]                     # grapher BN applied
        g = 0.5 * z * (1.0 + _erf_poly(z * 0.7071067811865476))        # exact-erf GELU
        c2 = jnp.dot(w2_ref[...], g, preferred_element_type=jnp.float32) + b2_ref[...]
        c2_ref[...] = c2
        s1_ref[...] = jnp.sum(c2, axis=1, keepdims=True)
        s2_ref[...] = jnp.sum(c2 * c2, axis=1, keepdims=True)

    return kernel


def _bn_apply_kernel(c_ref, sc_ref, sh_ref, o_ref):
    """Final fc2-BN affine, written in place over the pre-BN buffer (aliased)."""
    o_ref[...] = c_ref[...] * sc_ref[...] + sh_ref[...]


def _bn_coeffs(s1, s2, gamma, beta, n_el, eps):
    """Combine per-image (B, C, 1) sum / sum-of-squares into BN scale/shift (C, 1) vectors.

    This C-length scalar glue runs as plain XLA ops between the Pallas calls (review's
    'split at the BN boundaries' option); values are O(1) so the E[z^2]-mu^2 form is benign.
    """
    tot1 = jnp.sum(s1[:, :, 0], axis=0)
    tot2 = jnp.sum(s2[:, :, 0], axis=0)
    mu = tot1 / n_el
    var = tot2 / n_el - mu * mu
    scale = gamma[:, 0] * jax.lax.rsqrt(var + eps)
    shift = beta[:, 0] - mu * scale
    return scale[:, None], shift[:, None]


# --------------------------------------------------------------------------------------------
# Wrapper
# --------------------------------------------------------------------------------------------

def dygrapher_pallas(x_nchw, params, K):
    """Full DyGrapher forward: four grid-over-B pallas_calls split at the BN boundaries.

    x_nchw: (B, C, H, W) float32 (PyTorch layout).  Internally each kernel works on a
    lane-dense (C, H*W) per-image block; NCHW <-> flat is a free reshape.
    """
    (w_dw, b_dw, w1, b1, g1, be1, wg, bg, gg, beg, w2, b2, g2, be2) = params
    B, C, H, W = x_nchw.shape
    P = H * W
    assert P % 128 == 0, "H*W must be a multiple of 128 for the lane-dense layout"
    assert C % 8 == 0, "C should be a multiple of 8 for clean sublane tiling"
    eps = 1e-5
    n_el = float(B * P)

    # Unique effective H-roll shifts + multiplicities.  Both torch loops roll along H (dim=2);
    # a shift of 0 or >= H is the identity under torch's slicing, and a repeated shift only
    # re-adds the same mask (x_j's running max is idempotent), so this dedup is exact.
    counts = {}
    for s in list(range(0, H, K)) + list(range(0, W, K)):
        e = s if 0 < s < H else 0
        counts[e] = counts.get(e, 0) + 1
    shift_counts = sorted(counts.items())

    x_flat = x_nchw.reshape(B, C, P)        # NCHW -> lane-dense (B, C, H*W): free reshape

    cp = pltpu.CompilerParams(dimension_semantics=("parallel",),
                              vmem_limit_bytes=_vmem_limit_bytes())
    act = jax.ShapeDtypeStruct((B, C, P), jnp.float32)
    stat = jax.ShapeDtypeStruct((B, C, 1), jnp.float32)
    act_spec = pl.BlockSpec((None, C, P), lambda b: (b, 0, 0))
    stat_spec = pl.BlockSpec((None, C, 1), lambda b: (b, 0, 0))

    def rep(a):                             # grid-invariant whole-array block (fetched once)
        nd = a.ndim
        return pl.BlockSpec(a.shape, lambda b: (0,) * nd)

    # ---- stage 1: PEG + fc1 conv (+ fc1 BN stats) ----
    c1, s1a, s1b = pl.pallas_call(
        _make_stage1_kernel(C, H, W),
        grid=(B,),
        in_specs=[act_spec, rep(w_dw), rep(b_dw), rep(w1), rep(b1)],
        out_specs=(act_spec, stat_spec, stat_spec),
        out_shape=(act, stat, stat),
        compiler_params=cp,
    )(x_flat, w_dw, b_dw, w1, b1)
    sc1, sh1 = _bn_coeffs(s1a, s1b, g1, be1, n_el, eps)

    # ---- stage 2: fc1 BN apply + DyMRconv + grapher conv (+ grapher BN stats) ----
    wg_a, wg_b, wg_c = wg[:, :C], wg[:, C:2 * C], wg[:, 2 * C:]     # split (C,3C) -> 3x (C,C)
    cg, sga, sgb = pl.pallas_call(
        _make_stage2_kernel(C, H, W, shift_counts),
        grid=(B,),
        in_specs=[act_spec, rep(sc1), rep(sh1), rep(wg_a), rep(wg_b), rep(wg_c), rep(bg)],
        out_specs=(act_spec, stat_spec, stat_spec),
        out_shape=(act, stat, stat),
        input_output_aliases={0: 0},        # cg written in place over c1
        compiler_params=cp,
    )(c1, sc1, sh1, wg_a, wg_b, wg_c, bg)
    scg, shg = _bn_coeffs(sga, sgb, gg, beg, n_el, eps)

    # ---- stage 3: grapher BN apply + GELU + fc2 conv (+ fc2 BN stats) ----
    c2, s2a, s2b = pl.pallas_call(
        _make_stage3_kernel(C),
        grid=(B,),
        in_specs=[act_spec, rep(scg), rep(shg), rep(w2), rep(b2)],
        out_specs=(act_spec, stat_spec, stat_spec),
        out_shape=(act, stat, stat),
        input_output_aliases={0: 0},        # c2 written in place over cg
        compiler_params=cp,
    )(cg, scg, shg, w2, b2)
    sc2, sh2 = _bn_coeffs(s2a, s2b, g2, be2, n_el, eps)

    # ---- stage 4: fc2 BN affine (in place over c2) ----
    out = pl.pallas_call(
        _bn_apply_kernel,
        grid=(B,),
        in_specs=[act_spec, rep(sc2), rep(sh2)],
        out_specs=act_spec,
        out_shape=act,
        input_output_aliases={0: 0},
        compiler_params=cp,
    )(c2, sc2, sh2)

    return out.reshape(B, C, H, W)


# --------------------------------------------------------------------------------------------
# Synthetic parameters + pure-JAX reference
# --------------------------------------------------------------------------------------------

def init_params(key, C):
    """Deterministic synthetic parameters in the kernel's layouts.

    torch layouts -> kernel layouts:
      PEG depthwise weight (C,1,3,3)          -> w_dw (C, 9)  [column t = ky*3 + kx]
      Conv2d(Cin, Cout, 1) weight (Co,Ci,1,1) -> (Co, Ci) matrices (w1, wg, w2)
      biases / BN gamma, beta (C,)            -> (C, 1)
    """
    ks = jax.random.split(key, 14)

    def n(k, shape, scale):
        return scale * jax.random.normal(k, shape, jnp.float32)

    inv = 1.0 / (C ** 0.5)
    inv3 = 1.0 / ((3 * C) ** 0.5)
    w_dw = n(ks[0], (C, 9), 0.25)
    b_dw = n(ks[1], (C, 1), 0.1)
    w1 = n(ks[2], (C, C), inv)
    b1 = n(ks[3], (C, 1), 0.1)
    g1 = 1.0 + n(ks[4], (C, 1), 0.1)
    be1 = n(ks[5], (C, 1), 0.1)
    wg = n(ks[6], (C, 3 * C), inv3)
    bg = n(ks[7], (C, 1), 0.1)
    gg = 1.0 + n(ks[8], (C, 1), 0.1)
    beg = n(ks[9], (C, 1), 0.1)
    w2 = n(ks[10], (C, C), inv)
    b2 = n(ks[11], (C, 1), 0.1)
    g2 = 1.0 + n(ks[12], (C, 1), 0.1)
    be2 = n(ks[13], (C, 1), 0.1)
    return (w_dw, b_dw, w1, b1, g1, be1, wg, bg, gg, beg, w2, b2, g2, be2)


def dygrapher_reference(x_nchw, params, K):
    """Pure-JAX (XLA) reference that mirrors the torch module literally (train-mode BN)."""
    (w_dw, b_dw, w1, b1, g1, be1, wg, bg, gg, beg, w2, b2, g2, be2) = params
    B, C, H, W = x_nchw.shape
    eps = 1e-5

    def bcast(v):
        return v.reshape(1, C, 1, 1)

    def bn(y, gamma, beta):
        mu = jnp.mean(y, axis=(0, 2, 3), keepdims=True)
        var = jnp.mean((y - mu) ** 2, axis=(0, 2, 3), keepdims=True)
        return bcast(gamma) * (y - mu) * jax.lax.rsqrt(var + eps) + bcast(beta)

    def conv1x1(z, w, b):
        return jnp.einsum('oc,bchw->bohw', w, z) + b.reshape(1, -1, 1, 1)

    # PEG: depthwise 3x3 (pad=1, groups=C) + bias + residual
    xp = jnp.pad(x_nchw, ((0, 0), (0, 0), (1, 1), (1, 1)))
    conv = jnp.zeros_like(x_nchw)
    for ky in range(3):
        for kx in range(3):
            conv = conv + xp[:, :, ky:ky + H, kx:kx + W] * w_dw[:, ky * 3 + kx].reshape(1, C, 1, 1)
    y = x_nchw + conv + bcast(b_dw)

    xg = bn(conv1x1(y, w1, b1), g1, be1)

    def cat_roll_h(z, i):   # literal torch.cat([z[:,:,-i:,:], z[:,:,:-i,:]], dim=2) incl. edge cases
        if i <= 0 or i >= H:
            return z
        return jnp.concatenate([z[:, :, -i:, :], z[:, :, :-i, :]], axis=2)

    def cat_roll_w(z, j):
        if j <= 0 or j >= W:
            return z
        return jnp.concatenate([z[:, :, :, -j:], z[:, :, :, :-j]], axis=3)

    x_r0 = cat_roll_w(cat_roll_h(xg, H // 2), W // 2)
    norm = jnp.sum(jnp.abs(xg - x_r0), axis=1, keepdims=True)
    mean = jnp.mean(norm, axis=(2, 3), keepdims=True)
    std = jnp.sqrt(jnp.sum((norm - mean) ** 2, axis=(2, 3), keepdims=True) / (H * W - 1))
    thresh = mean - std

    x_j = jnp.zeros_like(xg)
    mask_sum = jnp.zeros_like(norm)
    for s in list(range(0, H, K)) + list(range(0, W, K)):
        xr = cat_roll_h(xg, s)          # NOTE: both torch loops roll along H (dim=2)
        dist = jnp.sum(jnp.abs(xg - xr), axis=1, keepdims=True)
        mask = jnp.where(dist < thresh, 1.0, 0.0)
        x_j = jnp.maximum(x_j, (xr - xg) * mask)
        mask_sum = mask_sum + mask

    m_min = jnp.min(mask_sum, axis=(1, 2, 3), keepdims=True)
    m_max = jnp.max(mask_sum, axis=(1, 2, 3), keepdims=True)
    x_wt = jnp.where(mask_sum < (m_max - m_min) * 0.4, 1.0, 0.0)

    cat = jnp.concatenate([xg, x_j, xg * x_wt], axis=1)
    yg = bn(conv1x1(cat, wg, bg), gg, beg)
    yg = 0.5 * yg * (1.0 + jax.lax.erf(yg * 0.7071067811865476))

    return bn(conv1x1(yg, w2, b2), g2, be2)


if __name__ == "__main__":
    B, C, H, W, K = 2, 32, 16, 16, 4   # in_dim=32, K=4

    key = jax.random.PRNGKey(0)
    k_in, k_par = jax.random.split(key)

    x = jax.random.normal(k_in, (B, C, H, W), jnp.float32)   # PyTorch NCHW layout
    params = init_params(k_par, C)

    fwd = jax.jit(lambda xx, pp: dygrapher_pallas(xx, pp, K))
    ref_fn = jax.jit(lambda xx, pp: dygrapher_reference(xx, pp, K))

    out = jax.block_until_ready(fwd(x, params))
    ref = jax.block_until_ready(ref_fn(x, params))

    assert out.shape == (B, C, H, W) and out.dtype == jnp.float32
    assert bool(jnp.all(jnp.isfinite(out)))
    mad = float(jnp.mean(jnp.abs(out - ref)))
    assert mad < 1e-3, f"mean abs diff vs reference too large: {mad}"

    print("KERNEL_OK")
</pallas_src>

<mosaic_0001>
module attributes {stable_mosaic.version = 11 : i64} {
  func.func @kernel(%arg0: i32, %arg1: memref<1x32x256xf32, #tpu.memory_space<vmem>>, %arg2: memref<32x9xf32, #tpu.memory_space<vmem>>, %arg3: memref<32x1xf32, #tpu.memory_space<vmem>>, %arg4: memref<32x32xf32, #tpu.memory_space<vmem>>, %arg5: memref<32x1xf32, #tpu.memory_space<vmem>>, %arg6: memref<1x32x256xf32, #tpu.memory_space<vmem>>, %arg7: memref<1x32x1xf32, #tpu.memory_space<vmem>>, %arg8: memref<1x32x1xf32, #tpu.memory_space<vmem>>) attributes {dimension_semantics = [#tpu.dimension_semantics<parallel>], iteration_bounds = array<i64: 2>, scalar_prefetch = 0 : i64, scratch_operands = 0 : i64, tpu.core_type = #tpu.core_type<tc>, window_params = [{transform_indices = @transform_0, window_bounds = array<i64: 1, 32, 256>}, {pipeline_mode = #tpu.pipeline_mode<synchronous>, transform_indices = @transform_1, window_bounds = array<i64: 32, 9>}, {pipeline_mode = #tpu.pipeline_mode<synchronous>, transform_indices = @transform_2, window_bounds = array<i64: 32, 1>}, {pipeline_mode = #tpu.pipeline_mode<synchronous>, transform_indices = @transform_3, window_bounds = array<i64: 32, 32>}, {pipeline_mode = #tpu.pipeline_mode<synchronous>, transform_indices = @transform_4, window_bounds = array<i64: 32, 1>}, {transform_indices = @transform_5, window_bounds = array<i64: 1, 32, 256>}, {transform_indices = @transform_6, window_bounds = array<i64: 1, 32, 1>}, {transform_indices = @transform_7, window_bounds = array<i64: 1, 32, 1>}]} {
    %c0 = arith.constant 0 : index
    %c0_0 = arith.constant 0 : index
    %c0_1 = arith.constant 0 : index
    %0 = vector.load %arg1[%c0, %c0_0, %c0_1] : memref<1x32x256xf32, #tpu.memory_space<vmem>>, vector<1x32x256xf32>
    %1 = vector.shape_cast %0 : vector<1x32x256xf32> to vector<32x256xf32>
    %c0_2 = arith.constant 0 : index
    %c0_3 = arith.constant 0 : index
    %2 = vector.load %arg2[%c0_2, %c0_3] : memref<32x9xf32, #tpu.memory_space<vmem>>, vector<32x9xf32>
    %3 = tpu.iota {dimensions = array<i32: 1>} : vector<1x256xi32>
    %c4_i32 = arith.constant 4 : i32
    %4 = vector.broadcast %c4_i32 : i32 to vector<1x256xi32>
    %5 = arith.shrsi %3, %4 : vector<1x256xi32>
    %c15_i32 = arith.constant 15 : i32
    %6 = vector.broadcast %c15_i32 : i32 to vector<1x256xi32>
    %7 = arith.andi %3, %6 : vector<1x256xi32>
    %8 = vector.extract_strided_slice %2 {offsets = [0, 4], sizes = [32, 1], strides = [1, 1]} : vector<32x9xf32> to vector<32x1xf32>
    %9 = vector.broadcast %8 : vector<32x1xf32> to vector<32x256xf32>
    %10 = arith.mulf %1, %9 : vector<32x256xf32>
    %c-1_i32 = arith.constant -1 : i32
    %11 = vector.broadcast %c-1_i32 : i32 to vector<1x256xi32>
    %12 = arith.addi %5, %11 : vector<1x256xi32>
    %c0_i32 = arith.constant 0 : i32
    %13 = vector.broadcast %c0_i32 : i32 to vector<1x256xi32>
    %14 = arith.cmpi sge, %12, %13 : vector<1x256xi32>
    %c-1_i32_4 = arith.constant -1 : i32
    %15 = vector.broadcast %c-1_i32_4 : i32 to vector<1x256xi32>
    %16 = arith.addi %5, %15 : vector<1x256xi32>
    %c16_i32 = arith.constant 16 : i32
    %17 = vector.broadcast %c16_i32 : i32 to vector<1x256xi32>
    %18 = arith.cmpi slt, %16, %17 : vector<1x256xi32>
    %19 = arith.andi %14, %18 : vector<1x256xi1>
    %c-1_i32_5 = arith.constant -1 : i32
    %20 = vector.broadcast %c-1_i32_5 : i32 to vector<1x256xi32>
    %21 = arith.addi %7, %20 : vector<1x256xi32>
    %c0_i32_6 = arith.constant 0 : i32
    %22 = vector.broadcast %c0_i32_6 : i32 to vector<1x256xi32>
    %23 = arith.cmpi sge, %21, %22 : vector<1x256xi32>
    %c-1_i32_7 = arith.constant -1 : i32
    %24 = vector.broadcast %c-1_i32_7 : i32 to vector<1x256xi32>
    %25 = arith.addi %7, %24 : vector<1x256xi32>
    %c16_i32_8 = arith.constant 16 : i32
    %26 = vector.broadcast %c16_i32_8 : i32 to vector<1x256xi32>
    %27 = arith.cmpi slt, %25, %26 : vector<1x256xi32>
    %28 = arith.andi %23, %27 : vector<1x256xi1>
    %29 = arith.andi %19, %28 : vector<1x256xi1>
    %c17_i32 = arith.constant 17 : i32
    %30 = tpu.dynamic_rotate %1 by %c17_i32 dim 1 : vector<32x256xf32>, i32 -> vector<32x256xf32>
    %cst = arith.constant 1.000000e+00 : f32
    %cst_9 = arith.constant 0.000000e+00 : f32
    %31 = vector.broadcast %cst : f32 to vector<1x256xf32>
    %32 = vector.broadcast %cst_9 : f32 to vector<1x256xf32>
    %33 = arith.select %29, %31, %32 : vector<1x256xi1>, vector<1x256xf32>
    %34 = vector.broadcast %33 : vector<1x256xf32> to vector<32x256xf32>
    %35 = arith.mulf %30, %34 : vector<32x256xf32>
    %36 = vector.extract_strided_slice %2 {offsets = [0, 0], sizes = [32, 1], strides = [1, 1]} : vector<32x9xf32> to vector<32x1xf32>
    %37 = vector.broadcast %36 : vector<32x1xf32> to vector<32x256xf32>
    %38 = arith.mulf %35, %37 : vector<32x256xf32>
    %39 = arith.addf %10, %38 : vector<32x256xf32>
    %c-1_i32_10 = arith.constant -1 : i32
    %40 = vector.broadcast %c-1_i32_10 : i32 to vector<1x256xi32>
    %41 = arith.addi %5, %40 : vector<1x256xi32>
    %c0_i32_11 = arith.constant 0 : i32
    %42 = vector.broadcast %c0_i32_11 : i32 to vector<1x256xi32>
    %43 = arith.cmpi sge, %41, %42 : vector<1x256xi32>
    %c-1_i32_12 = arith.constant -1 : i32
    %44 = vector.broadcast %c-1_i32_12 : i32 to vector<1x256xi32>
    %45 = arith.addi %5, %44 : vector<1x256xi32>
    %c16_i32_13 = arith.constant 16 : i32
    %46 = vector.broadcast %c16_i32_13 : i32 to vector<1x256xi32>
    %47 = arith.cmpi slt, %45, %46 : vector<1x256xi32>
    %48 = arith.andi %43, %47 : vector<1x256xi1>
    %c0_i32_14 = arith.constant 0 : i32
    %49 = vector.broadcast %c0_i32_14 : i32 to vector<1x256xi32>
    %50 = arith.addi %7, %49 : vector<1x256xi32>
    %c0_i32_15 = arith.constant 0 : i32
    %51 = vector.broadcast %c0_i32_15 : i32 to vector<1x256xi32>
    %52 = arith.cmpi sge, %50, %51 : vector<1x256xi32>
    %c0_i32_16 = arith.constant 0 : i32
    %53 = vector.broadcast %c0_i32_16 : i32 to vector<1x256xi32>
    %54 = arith.addi %7, %53 : vector<1x256xi32>
    %c16_i32_17 = arith.constant 16 : i32
    %55 = vector.broadcast %c16_i32_17 : i32 to vector<1x256xi32>
    %56 = arith.cmpi slt, %54, %55 : vector<1x256xi32>
    %57 = arith.andi %52, %56 : vector<1x256xi1>
    %58 = arith.andi %48, %57 : vector<1x256xi1>
    %c16_i32_18 = arith.constant 16 : i32
    %59 = tpu.dynamic_rotate %1 by %c16_i32_18 dim 1 : vector<32x256xf32>, i32 -> vector<32x256xf32>
    %cst_19 = arith.constant 1.000000e+00 : f32
    %cst_20 = arith.constant 0.000000e+00 : f32
    %60 = vector.broadcast %cst_19 : f32 to vector<1x256xf32>
    %61 = vector.broadcast %cst_20 : f32 to vector<1x256xf32>
    %62 = arith.select %58, %60, %61 : vector<1x256xi1>, vector<1x256xf32>
    %63 = vector.broadcast %62 : vector<1x256xf32> to vector<32x256xf32>
    %64 = arith.mulf %59, %63 : vector<32x256xf32>
    %65 = vector.extract_strided_slice %2 {offsets = [0, 1], sizes = [32, 1], strides = [1, 1]} : vector<32x9xf32> to vector<32x1xf32>
    %66 = vector.broadcast %65 : vector<32x1xf32> to vector<32x256xf32>
    %67 = arith.mulf %64, %66 : vector<32x256xf32>
    %68 = arith.addf %39, %67 : vector<32x256xf32>
    %c-1_i32_21 = arith.constant -1 : i32
    %69 = vector.broadcast %c-1_i32_21 : i32 to vector<1x256xi32>
    %70 = arith.addi %5, %69 : vector<1x256xi32>
    %c0_i32_22 = arith.constant 0 : i32
    %71 = vector.broadcast %c0_i32_22 : i32 to vector<1x256xi32>
    %72 = arith.cmpi sge, %70, %71 : vector<1x256xi32>
    %c-1_i32_23 = arith.constant -1 : i32
    %73 = vector.broadcast %c-1_i32_23 : i32 to vector<1x256xi32>
    %74 = arith.addi %5, %73 : vector<1x256xi32>
    %c16_i32_24 = arith.constant 16 : i32
    %75 = vector.broadcast %c16_i32_24 : i32 to vector<1x256xi32>
    %76 = arith.cmpi slt, %74, %75 : vector<1x256xi32>
    %77 = arith.andi %72, %76 : vector<1x256xi1>
    %c1_i32 = arith.constant 1 : i32
    %78 = vector.broadcast %c1_i32 : i32 to vector<1x256xi32>
    %79 = arith.addi %7, %78 : vector<1x256xi32>
    %c0_i32_25 = arith.constant 0 : i32
    %80 = vector.broadcast %c0_i32_25 : i32 to vector<1x256xi32>
    %81 = arith.cmpi sge, %79, %80 : vector<1x256xi32>
    %c1_i32_26 = arith.constant 1 : i32
    %82 = vector.broadcast %c1_i32_26 : i32 to vector<1x256xi32>
    %83 = arith.addi %7, %82 : vector<1x256xi32>
    %c16_i32_27 = arith.constant 16 : i32
    %84 = vector.broadcast %c16_i32_27 : i32 to vector<1x256xi32>
    %85 = arith.cmpi slt, %83, %84 : vector<1x256xi32>
    %86 = arith.andi %81, %85 : vector<1x256xi1>
    %87 = arith.andi %77, %86 : vector<1x256xi1>
    %c15_i32_28 = arith.constant 15 : i32
    %88 = tpu.dynamic_rotate %1 by %c15_i32_28 dim 1 : vector<32x256xf32>, i32 -> vector<32x256xf32>
    %cst_29 = arith.constant 1.000000e+00 : f32
    %cst_30 = arith.constant 0.000000e+00 : f32
    %89 = vector.broadcast %cst_29 : f32 to vector<1x256xf32>
    %90 = vector.broadcast %cst_30 : f32 to vector<1x256xf32>
    %91 = arith.select %87, %89, %90 : vector<1x256xi1>, vector<1x256xf32>
    %92 = vector.broadcast %91 : vector<1x256xf32> to vector<32x256xf32>
    %93 = arith.mulf %88, %92 : vector<32x256xf32>
    %94 = vector.extract_strided_slice %2 {offsets = [0, 2], sizes = [32, 1], strides = [1, 1]} : vector<32x9xf32> to vector<32x1xf32>
    %95 = vector.broadcast %94 : vector<32x1xf32> to vector<32x256xf32>
    %96 = arith.mulf %93, %95 : vector<32x256xf32>
    %97 = arith.addf %68, %96 : vector<32x256xf32>
    %c0_i32_31 = arith.constant 0 : i32
    %98 = vector.broadcast %c0_i32_31 : i32 to vector<1x256xi32>
    %99 = arith.addi %5, %98 : vector<1x256xi32>
    %c0_i32_32 = arith.constant 0 : i32
    %100 = vector.broadcast %c0_i32_32 : i32 to vector<1x256xi32>
    %101 = arith.cmpi sge, %99, %100 : vector<1x256xi32>
    %c0_i32_33 = arith.constant 0 : i32
    %102 = vector.broadcast %c0_i32_33 : i32 to vector<1x256xi32>
    %103 = arith.addi %5, %102 : vector<1x256xi32>
    %c16_i32_34 = arith.constant 16 : i32
    %104 = vector.broadcast %c16_i32_34 : i32 to vector<1x256xi32>
    %105 = arith.cmpi slt, %103, %104 : vector<1x256xi32>
    %106 = arith.andi %101, %105 : vector<1x256xi1>
    %c-1_i32_35 = arith.constant -1 : i32
    %107 = vector.broadcast %c-1_i32_35 : i32 to vector<1x256xi32>
    %108 = arith.addi %7, %107 : vector<1x256xi32>
    %c0_i32_36 = arith.constant 0 : i32
    %109 = vector.broadcast %c0_i32_36 : i32 to vector<1x256xi32>
    %110 = arith.cmpi sge, %108, %109 : vector<1x256xi32>
    %c-1_i32_37 = arith.constant -1 : i32
    %111 = vector.broadcast %c-1_i32_37 : i32 to vector<1x256xi32>
    %112 = arith.addi %7, %111 : vector<1x256xi32>
    %c16_i32_38 = arith.constant 16 : i32
    %113 = vector.broadcast %c16_i32_38 : i32 to vector<1x256xi32>
    %114 = arith.cmpi slt, %112, %113 : vector<1x256xi32>
    %115 = arith.andi %110, %114 : vector<1x256xi1>
    %116 = arith.andi %106, %115 : vector<1x256xi1>
    %c1_i32_39 = arith.constant 1 : i32
    %117 = tpu.dynamic_rotate %1 by %c1_i32_39 dim 1 : vector<32x256xf32>, i32 -> vector<32x256xf32>
    %cst_40 = arith.constant 1.000000e+00 : f32
    %cst_41 = arith.constant 0.000000e+00 : f32
    %118 = vector.broadcast %cst_40 : f32 to vector<1x256xf32>
    %119 = vector.broadcast %cst_41 : f32 to vector<1x256xf32>
    %120 = arith.select %116, %118, %119 : vector<1x256xi1>, vector<1x256xf32>
    %121 = vector.broadcast %120 : vector<1x256xf32> to vector<32x256xf32>
    %122 = arith.mulf %117, %121 : vector<32x256xf32>
    %123 = vector.extract_strided_slice %2 {offsets = [0, 3], sizes = [32, 1], strides = [1, 1]} : vector<32x9xf32> to vector<32x1xf32>
    %124 = vector.broadcast %123 : vector<32x1xf32> to vector<32x256xf32>
    %125 = arith.mulf %122, %124 : vector<32x256xf32>
    %126 = arith.addf %97, %125 : vector<32x256xf32>
    %c0_i32_42 = arith.constant 0 : i32
    %127 = vector.broadcast %c0_i32_42 : i32 to vector<1x256xi32>
    %128 = arith.addi %5, %127 : vector<1x256xi32>
    %c0_i32_43 = arith.constant 0 : i32
    %129 = vector.broadcast %c0_i32_43 : i32 to vector<1x256xi32>
    %130 = arith.cmpi sge, %128, %129 : vector<1x256xi32>
    %c0_i32_44 = arith.constant 0 : i32
    %131 = vector.broadcast %c0_i32_44 : i32 to vector<1x256xi32>
    %132 = arith.addi %5, %131 : vector<1x256xi32>
    %c16_i32_45 = arith.constant 16 : i32
    %133 = vector.broadcast %c16_i32_45 : i32 to vector<1x256xi32>
    %134 = arith.cmpi slt, %132, %133 : vector<1x256xi32>
    %135 = arith.andi %130, %134 : vector<1x256xi1>
    %c1_i32_46 = arith.constant 1 : i32
    %136 = vector.broadcast %c1_i32_46 : i32 to vector<1x256xi32>
    %137 = arith.addi %7, %136 : vector<1x256xi32>
    %c0_i32_47 = arith.constant 0 : i32
    %138 = vector.broadcast %c0_i32_47 : i32 to vector<1x256xi32>
    %139 = arith.cmpi sge, %137, %138 : vector<1x256xi32>
    %c1_i32_48 = arith.constant 1 : i32
    %140 = vector.broadcast %c1_i32_48 : i32 to vector<1x256xi32>
    %141 = arith.addi %7, %140 : vector<1x256xi32>
    %c16_i32_49 = arith.constant 16 : i32
    %142 = vector.broadcast %c16_i32_49 : i32 to vector<1x256xi32>
    %143 = arith.cmpi slt, %141, %142 : vector<1x256xi32>
    %144 = arith.andi %139, %143 : vector<1x256xi1>
    %145 = arith.andi %135, %144 : vector<1x256xi1>
    %c255_i32 = arith.constant 255 : i32
    %146 = tpu.dynamic_rotate %1 by %c255_i32 dim 1 : vector<32x256xf32>, i32 -> vector<32x256xf32>
    %cst_50 = arith.constant 1.000000e+00 : f32
    %cst_51 = arith.constant 0.000000e+00 : f32
    %147 = vector.broadcast %cst_50 : f32 to vector<1x256xf32>
    %148 = vector.broadcast %cst_51 : f32 to vector<1x256xf32>
    %149 = arith.select %145, %147, %148 : vector<1x256xi1>, vector<1x256xf32>
    %150 = vector.broadcast %149 : vector<1x256xf32> to vector<32x256xf32>
    %151 = arith.mulf %146, %150 : vector<32x256xf32>
    %152 = vector.extract_strided_slice %2 {offsets = [0, 5], sizes = [32, 1], strides = [1, 1]} : vector<32x9xf32> to vector<32x1xf32>
    %153 = vector.broadcast %152 : vector<32x1xf32> to vector<32x256xf32>
    %154 = arith.mulf %151, %153 : vector<32x256xf32>
    %155 = arith.addf %126, %154 : vector<32x256xf32>
    %c1_i32_52 = arith.constant 1 : i32
    %156 = vector.broadcast %c1_i32_52 : i32 to vector<1x256xi32>
    %157 = arith.addi %5, %156 : vector<1x256xi32>
    %c0_i32_53 = arith.constant 0 : i32
    %158 = vector.broadcast %c0_i32_53 : i32 to vector<1x256xi32>
    %159 = arith.cmpi sge, %157, %158 : vector<1x256xi32>
    %c1_i32_54 = arith.constant 1 : i32
    %160 = vector.broadcast %c1_i32_54 : i32 to vector<1x256xi32>
    %161 = arith.addi %5, %160 : vector<1x256xi32>
    %c16_i32_55 = arith.constant 16 : i32
    %162 = vector.broadcast %c16_i32_55 : i32 to vector<1x256xi32>
    %163 = arith.cmpi slt, %161, %162 : vector<1x256xi32>
    %164 = arith.andi %159, %163 : vector<1x256xi1>
    %c-1_i32_56 = arith.constant -1 : i32
    %165 = vector.broadcast %c-1_i32_56 : i32 to vector<1x256xi32>
    %166 = arith.addi %7, %165 : vector<1x256xi32>
    %c0_i32_57 = arith.constant 0 : i32
    %167 = vector.broadcast %c0_i32_57 : i32 to vector<1x256xi32>
    %168 = arith.cmpi sge, %166, %167 : vector<1x256xi32>
    %c-1_i32_58 = arith.constant -1 : i32
    %169 = vector.broadcast %c-1_i32_58 : i32 to vector<1x256xi32>
    %170 = arith.addi %7, %169 : vector<1x256xi32>
    %c16_i32_59 = arith.constant 16 : i32
    %171 = vector.broadcast %c16_i32_59 : i32 to vector<1x256xi32>
    %172 = arith.cmpi slt, %170, %171 : vector<1x256xi32>
    %173 = arith.andi %168, %172 : vector<1x256xi1>
    %174 = arith.andi %164, %173 : vector<1x256xi1>
    %c241_i32 = arith.constant 241 : i32
    %175 = tpu.dynamic_rotate %1 by %c241_i32 dim 1 : vector<32x256xf32>, i32 -> vector<32x256xf32>
    %cst_60 = arith.constant 1.000000e+00 : f32
    %cst_61 = arith.constant 0.000000e+00 : f32
    %176 = vector.broadcast %cst_60 : f32 to vector<1x256xf32>
    %177 = vector.broadcast %cst_61 : f32 to vector<1x256xf32>
    %178 = arith.select %174, %176, %177 : vector<1x256xi1>, vector<1x256xf32>
    %179 = vector.broadcast %178 : vector<1x256xf32> to vector<32x256xf32>
    %180 = arith.mulf %175, %179 : vector<32x256xf32>
    %181 = vector.extract_strided_slice %2 {offsets = [0, 6], sizes = [32, 1], strides = [1, 1]} : vector<32x9xf32> to vector<32x1xf32>
    %182 = vector.broadcast %181 : vector<32x1xf32> to vector<32x256xf32>
    %183 = arith.mulf %180, %182 : vector<32x256xf32>
    %184 = arith.addf %155, %183 : vector<32x256xf32>
    %c1_i32_62 = arith.constant 1 : i32
    %185 = vector.broadcast %c1_i32_62 : i32 to vector<1x256xi32>
    %186 = arith.addi %5, %185 : vector<1x256xi32>
    %c0_i32_63 = arith.constant 0 : i32
    %187 = vector.broadcast %c0_i32_63 : i32 to vector<1x256xi32>
    %188 = arith.cmpi sge, %186, %187 : vector<1x256xi32>
    %c1_i32_64 = arith.constant 1 : i32
    %189 = vector.broadcast %c1_i32_64 : i32 to vector<1x256xi32>
    %190 = arith.addi %5, %189 : vector<1x256xi32>
    %c16_i32_65 = arith.constant 16 : i32
    %191 = vector.broadcast %c16_i32_65 : i32 to vector<1x256xi32>
    %192 = arith.cmpi slt, %190, %191 : vector<1x256xi32>
    %193 = arith.andi %188, %192 : vector<1x256xi1>
    %c0_i32_66 = arith.constant 0 : i32
    %194 = vector.broadcast %c0_i32_66 : i32 to vector<1x256xi32>
    %195 = arith.addi %7, %194 : vector<1x256xi32>
    %c0_i32_67 = arith.constant 0 : i32
    %196 = vector.broadcast %c0_i32_67 : i32 to vector<1x256xi32>
    %197 = arith.cmpi sge, %195, %196 : vector<1x256xi32>
    %c0_i32_68 = arith.constant 0 : i32
    %198 = vector.broadcast %c0_i32_68 : i32 to vector<1x256xi32>
    %199 = arith.addi %7, %198 : vector<1x256xi32>
    %c16_i32_69 = arith.constant 16 : i32
    %200 = vector.broadcast %c16_i32_69 : i32 to vector<1x256xi32>
    %201 = arith.cmpi slt, %199, %200 : vector<1x256xi32>
    %202 = arith.andi %197, %201 : vector<1x256xi1>
    %203 = arith.andi %193, %202 : vector<1x256xi1>
    %c240_i32 = arith.constant 240 : i32
    %204 = tpu.dynamic_rotate %1 by %c240_i32 dim 1 : vector<32x256xf32>, i32 -> vector<32x256xf32>
    %cst_70 = arith.constant 1.000000e+00 : f32
    %cst_71 = arith.constant 0.000000e+00 : f32
    %205 = vector.broadcast %cst_70 : f32 to vector<1x256xf32>
    %206 = vector.broadcast %cst_71 : f32 to vector<1x256xf32>
    %207 = arith.select %203, %205, %206 : vector<1x256xi1>, vector<1x256xf32>
    %208 = vector.broadcast %207 : vector<1x256xf32> to vector<32x256xf32>
    %209 = arith.mulf %204, %208 : vector<32x256xf32>
    %210 = vector.extract_strided_slice %2 {offsets = [0, 7], sizes = [32, 1], strides = [1, 1]} : vector<32x9xf32> to vector<32x1xf32>
    %211 = vector.broadcast %210 : vector<32x1xf32> to vector<32x256xf32>
    %212 = arith.mulf %209, %211 : vector<32x256xf32>
    %213 = arith.addf %184, %212 : vector<32x256xf32>
    %c1_i32_72 = arith.constant 1 : i32
    %214 = vector.broadcast %c1_i32_72 : i32 to vector<1x256xi32>
    %215 = arith.addi %5, %214 : vector<1x256xi32>
    %c0_i32_73 = arith.constant 0 : i32
    %216 = vector.broadcast %c0_i32_73 : i32 to vector<1x256xi32>
    %217 = arith.cmpi sge, %215, %216 : vector<1x256xi32>
    %c1_i32_74 = arith.constant 1 : i32
    %218 = vector.broadcast %c1_i32_74 : i32 to vector<1x256xi32>
    %219 = arith.addi %5, %218 : vector<1x256xi32>
    %c16_i32_75 = arith.constant 16 : i32
    %220 = vector.broadcast %c16_i32_75 : i32 to vector<1x256xi32>
    %221 = arith.cmpi slt, %219, %220 : vector<1x256xi32>
    %222 = arith.andi %217, %221 : vector<1x256xi1>
    %c1_i32_76 = arith.constant 1 : i32
    %223 = vector.broadcast %c1_i32_76 : i32 to vector<1x256xi32>
    %224 = arith.addi %7, %223 : vector<1x256xi32>
    %c0_i32_77 = arith.constant 0 : i32
    %225 = vector.broadcast %c0_i32_77 : i32 to vector<1x256xi32>
    %226 = arith.cmpi sge, %224, %225 : vector<1x256xi32>
    %c1_i32_78 = arith.constant 1 : i32
    %227 = vector.broadcast %c1_i32_78 : i32 to vector<1x256xi32>
    %228 = arith.addi %7, %227 : vector<1x256xi32>
    %c16_i32_79 = arith.constant 16 : i32
    %229 = vector.broadcast %c16_i32_79 : i32 to vector<1x256xi32>
    %230 = arith.cmpi slt, %228, %229 : vector<1x256xi32>
    %231 = arith.andi %226, %230 : vector<1x256xi1>
    %232 = arith.andi %222, %231 : vector<1x256xi1>
    %c239_i32 = arith.constant 239 : i32
    %233 = tpu.dynamic_rotate %1 by %c239_i32 dim 1 : vector<32x256xf32>, i32 -> vector<32x256xf32>
    %cst_80 = arith.constant 1.000000e+00 : f32
    %cst_81 = arith.constant 0.000000e+00 : f32
    %234 = vector.broadcast %cst_80 : f32 to vector<1x256xf32>
    %235 = vector.broadcast %cst_81 : f32 to vector<1x256xf32>
    %236 = arith.select %232, %234, %235 : vector<1x256xi1>, vector<1x256xf32>
    %237 = vector.broadcast %236 : vector<1x256xf32> to vector<32x256xf32>
    %238 = arith.mulf %233, %237 : vector<32x256xf32>
    %239 = vector.extract_strided_slice %2 {offsets = [0, 8], sizes = [32, 1], strides = [1, 1]} : vector<32x9xf32> to vector<32x1xf32>
    %240 = vector.broadcast %239 : vector<32x1xf32> to vector<32x256xf32>
    %241 = arith.mulf %238, %240 : vector<32x256xf32>
    %242 = arith.addf %213, %241 : vector<32x256xf32>
    %243 = arith.addf %1, %242 : vector<32x256xf32>
    %c0_82 = arith.constant 0 : index
    %c0_83 = arith.constant 0 : index
    %244 = vector.load %arg3[%c0_82, %c0_83] : memref<32x1xf32, #tpu.memory_space<vmem>>, vector<32x1xf32>
    %245 = vector.broadcast %244 : vector<32x1xf32> to vector<32x256xf32>
    %246 = arith.addf %243, %245 : vector<32x256xf32>
    %c0_84 = arith.constant 0 : index
    %c0_85 = arith.constant 0 : index
    %247 = vector.load %arg4[%c0_84, %c0_85] : memref<32x32xf32, #tpu.memory_space<vmem>>, vector<32x32xf32>
    %cst_86 = arith.constant dense<0.000000e+00> : vector<32x256xf32>
    %248 = tpu.matmul %247, %246, %cst_86 {dimension_numbers = #tpu.dot_dimension_numbers<[1], [0], [0], [1], [0, 0, 1, 1], [], []>} : vector<32x32xf32>, vector<32x256xf32>, vector<32x256xf32> -> vector<32x256xf32>
    %c0_87 = arith.constant 0 : index
    %c0_88 = arith.constant 0 : index
    %249 = vector.load %arg5[%c0_87, %c0_88] : memref<32x1xf32, #tpu.memory_space<vmem>>, vector<32x1xf32>
    %250 = vector.broadcast %249 : vector<32x1xf32> to vector<32x256xf32>
    %251 = arith.addf %248, %250 : vector<32x256xf32>
    %c0_89 = arith.constant 0 : index
    %c0_90 = arith.constant 0 : index
    %c0_91 = arith.constant 0 : index
    %252 = vector.load %arg6[%c0_89, %c0_90, %c0_91] : memref<1x32x256xf32, #tpu.memory_space<vmem>>, vector<1x32x256xf32>
    %253 = vector.shape_cast %252 : vector<1x32x256xf32> to vector<32x256xf32>
    %254 = vector.shape_cast %251 : vector<32x256xf32> to vector<1x32x256xf32>
    tpu.vector_store %arg6[%c0_89, %c0_90, %c0_91], %254 {strides = array<i32>} : memref<1x32x256xf32, #tpu.memory_space<vmem>>, vector<1x32x256xf32>,
    %cst_92 = arith.constant dense<0.000000e+00> : vector<32xf32>
    %255 = vector.multi_reduction <add>, %251, %cst_92 [1] : vector<32x256xf32> to vector<32xf32>
    %256 = vector.shape_cast %255 : vector<32xf32> to vector<32x1xf32>
    %c0_93 = arith.constant 0 : index
    %c0_94 = arith.constant 0 : index
    %c0_95 = arith.constant 0 : index
    %257 = vector.load %arg7[%c0_93, %c0_94, %c0_95] : memref<1x32x1xf32, #tpu.memory_space<vmem>>, vector<1x32x1xf32>
    %258 = vector.shape_cast %257 : vector<1x32x1xf32> to vector<32x1xf32>
    %259 = vector.shape_cast %256 : vector<32x1xf32> to vector<1x32x1xf32>
    tpu.vector_store %arg7[%c0_93, %c0_94, %c0_95], %259 {strides = array<i32>} : memref<1x32x1xf32, #tpu.memory_space<vmem>>, vector<1x32x1xf32>,
    %260 = arith.mulf %251, %251 : vector<32x256xf32>
    %cst_96 = arith.constant dense<0.000000e+00> : vector<32xf32>
    %261 = vector.multi_reduction <add>, %260, %cst_96 [1] : vector<32x256xf32> to vector<32xf32>
    %262 = vector.shape_cast %261 : vector<32xf32> to vector<32x1xf32>
    %c0_97 = arith.constant 0 : index
    %c0_98 = arith.constant 0 : index
    %c0_99 = arith.constant 0 : index
    %263 = vector.load %arg8[%c0_97, %c0_98, %c0_99] : memref<1x32x1xf32, #tpu.memory_space<vmem>>, vector<1x32x1xf32>
    %264 = vector.shape_cast %263 : vector<1x32x1xf32> to vector<32x1xf32>
    %265 = vector.shape_cast %262 : vector<32x1xf32> to vector<1x32x1xf32>
    tpu.vector_store %arg8[%c0_97, %c0_98, %c0_99], %265 {strides = array<i32>} : memref<1x32x1xf32, #tpu.memory_space<vmem>>, vector<1x32x1xf32>,
    return
  }
  func.func @transform_0(%arg0: i32) -> (i32, i32, i32) {
    %c0_i32 = arith.constant 0 : i32
    %c0_i32_0 = arith.constant 0 : i32
    %c0_i32_1 = arith.constant 0 : i32
    return %arg0, %c0_i32, %c0_i32_0 : i32, i32, i32
  }
  func.func @transform_1(%arg0: i32) -> (i32, i32) {
    %c0_i32 = arith.constant 0 : i32
    %c0_i32_0 = arith.constant 0 : i32
    %c0_i32_1 = arith.constant 0 : i32
    return %c0_i32, %c0_i32_0 : i32, i32
  }
  func.func @transform_2(%arg0: i32) -> (i32, i32) {
    %c0_i32 = arith.constant 0 : i32
    %c0_i32_0 = arith.constant 0 : i32
    %c0_i32_1 = arith.constant 0 : i32
    return %c0_i32, %c0_i32_0 : i32, i32
  }
  func.func @transform_3(%arg0: i32) -> (i32, i32) {
    %c0_i32 = arith.constant 0 : i32
    %c0_i32_0 = arith.constant 0 : i32
    %c0_i32_1 = arith.constant 0 : i32
    return %c0_i32, %c0_i32_0 : i32, i32
  }
  func.func @transform_4(%arg0: i32) -> (i32, i32) {
    %c0_i32 = arith.constant 0 : i32
    %c0_i32_0 = arith.constant 0 : i32
    %c0_i32_1 = arith.constant 0 : i32
    return %c0_i32, %c0_i32_0 : i32, i32
  }
  func.func @transform_5(%arg0: i32) -> (i32, i32, i32) {
    %c0_i32 = arith.constant 0 : i32
    %c0_i32_0 = arith.constant 0 : i32
    %c0_i32_1 = arith.constant 0 : i32
    return %arg0, %c0_i32, %c0_i32_0 : i32, i32, i32
  }
  func.func @transform_6(%arg0: i32) -> (i32, i32, i32) {
    %c0_i32 = arith.constant 0 : i32
    %c0_i32_0 = arith.constant 0 : i32
    %c0_i32_1 = arith.constant 0 : i32
    return %arg0, %c0_i32, %c0_i32_0 : i32, i32, i32
  }
  func.func @transform_7(%arg0: i32) -> (i32, i32, i32) {
    %c0_i32 = arith.constant 0 : i32
    %c0_i32_0 = arith.constant 0 : i32
    %c0_i32_1 = arith.constant 0 : i32
    return %arg0, %c0_i32, %c0_i32_0 : i32, i32, i32
  }
}

module attributes {stable_mosaic.version = 11 : i64} {
  func.func @_bn_apply_kernel(%arg0: i32, %arg1: memref<1x32x256xf32, #tpu.memory_space<vmem>>, %arg2: memref<32x1xf32, #tpu.memory_space<vmem>>, %arg3: memref<32x1xf32, #tpu.memory_space<vmem>>, %arg4: memref<1x32x256xf32, #tpu.memory_space<vmem>>) attributes {dimension_semantics = [#tpu.dimension_semantics<parallel>], iteration_bounds = array<i64: 2>, scalar_prefetch = 0 : i64, scratch_operands = 0 : i64, tpu.core_type = #tpu.core_type<tc>, window_params = [{transform_indices = @transform_0, window_bounds = array<i64: 1, 32, 256>}, {pipeline_mode = #tpu.pipeline_mode<synchronous>, transform_indices = @transform_1, window_bounds = array<i64: 32, 1>}, {pipeline_mode = #tpu.pipeline_mode<synchronous>, transform_indices = @transform_2, window_bounds = array<i64: 32, 1>}, {transform_indices = @transform_3, window_bounds = array<i64: 1, 32, 256>}]} {
    %c0 = arith.constant 0 : index
    %c0_0 = arith.constant 0 : index
    %c0_1 = arith.constant 0 : index
    %0 = vector.load %arg1[%c0, %c0_0, %c0_1] : memref<1x32x256xf32, #tpu.memory_space<vmem>>, vector<1x32x256xf32>
    %1 = vector.shape_cast %0 : vector<1x32x256xf32> to vector<32x256xf32>
    %c0_2 = arith.constant 0 : index
    %c0_3 = arith.constant 0 : index
    %2 = vector.load %arg2[%c0_2, %c0_3] : memref<32x1xf32, #tpu.memory_space<vmem>>, vector<32x1xf32>
    %3 = vector.broadcast %2 : vector<32x1xf32> to vector<32x256xf32>
    %4 = arith.mulf %1, %3 : vector<32x256xf32>
    %c0_4 = arith.constant 0 : index
    %c0_5 = arith.constant 0 : index
    %5 = vector.load %arg3[%c0_4, %c0_5] : memref<32x1xf32, #tpu.memory_space<vmem>>, vector<32x1xf32>
    %6 = vector.broadcast %5 : vector<32x1xf32> to vector<32x256xf32>
    %7 = arith.addf %4, %6 : vector<32x256xf32>
    %c0_6 = arith.constant 0 : index
    %c0_7 = arith.constant 0 : index
    %c0_8 = arith.constant 0 : index
    %8 = vector.load %arg4[%c0_6, %c0_7, %c0_8] : memref<1x32x256xf32, #tpu.memory_space<vmem>>, vector<1x32x256xf32>
    %9 = vector.shape_cast %8 : vector<1x32x256xf32> to vector<32x256xf32>
    %10 = vector.shape_cast %7 : vector<32x256xf32> to vector<1x32x256xf32>
    tpu.vector_store %arg4[%c0_6, %c0_7, %c0_8], %10 {strides = array<i32>} : memref<1x32x256xf32, #tpu.memory_space<vmem>>, vector<1x32x256xf32>,
    return
  }
  func.func @transform_0(%arg0: i32) -> (i32, i32, i32) {
    %c0_i32 = arith.constant 0 : i32
    %c0_i32_0 = arith.constant 0 : i32
    %c0_i32_1 = arith.constant 0 : i32
    return %arg0, %c0_i32, %c0_i32_0 : i32, i32, i32
  }
  func.func @transform_1(%arg0: i32) -> (i32, i32) {
    %c0_i32 = arith.constant 0 : i32
    %c0_i32_0 = arith.constant 0 : i32
    %c0_i32_1 = arith.constant 0 : i32
    return %c0_i32, %c0_i32_0 : i32, i32
  }
  func.func @transform_2(%arg0: i32) -> (i32, i32) {
    %c0_i32 = arith.constant 0 : i32
    %c0_i32_0 = arith.constant 0 : i32
    %c0_i32_1 = arith.constant 0 : i32
    return %c0_i32, %c0_i32_0 : i32, i32
  }
  func.func @transform_3(%arg0: i32) -> (i32, i32, i32) {
    %c0_i32 = arith.constant 0 : i32
    %c0_i32_0 = arith.constant 0 : i32
    %c0_i32_1 = arith.constant 0 : i32
    return %arg0, %c0_i32, %c0_i32_0 : i32, i32, i32
  }
}

module attributes {stable_mosaic.version = 11 : i64} {
  func.func @kernel(%arg0: i32, %arg1: memref<1x32x256xf32, #tpu.memory_space<vmem>>, %arg2: memref<32x1xf32, #tpu.memory_space<vmem>>, %arg3: memref<32x1xf32, #tpu.memory_space<vmem>>, %arg4: memref<32x32xf32, #tpu.memory_space<vmem>>, %arg5: memref<32x32xf32, #tpu.memory_space<vmem>>, %arg6: memref<32x32xf32, #tpu.memory_space<vmem>>, %arg7: memref<32x1xf32, #tpu.memory_space<vmem>>, %arg8: memref<1x32x256xf32, #tpu.memory_space<vmem>>, %arg9: memref<1x32x1xf32, #tpu.memory_space<vmem>>, %arg10: memref<1x32x1xf32, #tpu.memory_space<vmem>>) attributes {dimension_semantics = [#tpu.dimension_semantics<parallel>], iteration_bounds = array<i64: 2>, scalar_prefetch = 0 : i64, scratch_operands = 0 : i64, tpu.core_type = #tpu.core_type<tc>, window_params = [{transform_indices = @transform_0, window_bounds = array<i64: 1, 32, 256>}, {pipeline_mode = #tpu.pipeline_mode<synchronous>, transform_indices = @transform_1, window_bounds = array<i64: 32, 1>}, {pipeline_mode = #tpu.pipeline_mode<synchronous>, transform_indices = @transform_2, window_bounds = array<i64: 32, 1>}, {pipeline_mode = #tpu.pipeline_mode<synchronous>, transform_indices = @transform_3, window_bounds = array<i64: 32, 32>}, {pipeline_mode = #tpu.pipeline_mode<synchronous>, transform_indices = @transform_4, window_bounds = array<i64: 32, 32>}, {pipeline_mode = #tpu.pipeline_mode<synchronous>, transform_indices = @transform_5, window_bounds = array<i64: 32, 32>}, {pipeline_mode = #tpu.pipeline_mode<synchronous>, transform_indices = @transform_6, window_bounds = array<i64: 32, 1>}, {transform_indices = @transform_7, window_bounds = array<i64: 1, 32, 256>}, {transform_indices = @transform_8, window_bounds = array<i64: 1, 32, 1>}, {transform_indices = @transform_9, window_bounds = array<i64: 1, 32, 1>}]} {
    %c0 = arith.constant 0 : index
    %c0_0 = arith.constant 0 : index
    %c0_1 = arith.constant 0 : index
    %0 = vector.load %arg1[%c0, %c0_0, %c0_1] : memref<1x32x256xf32, #tpu.memory_space<vmem>>, vector<1x32x256xf32>
    %1 = vector.shape_cast %0 : vector<1x32x256xf32> to vector<32x256xf32>
    %c0_2 = arith.constant 0 : index
    %c0_3 = arith.constant 0 : index
    %2 = vector.load %arg2[%c0_2, %c0_3] : memref<32x1xf32, #tpu.memory_space<vmem>>, vector<32x1xf32>
    %3 = vector.broadcast %2 : vector<32x1xf32> to vector<32x256xf32>
    %4 = arith.mulf %1, %3 : vector<32x256xf32>
    %c0_4 = arith.constant 0 : index
    %c0_5 = arith.constant 0 : index
    %5 = vector.load %arg3[%c0_4, %c0_5] : memref<32x1xf32, #tpu.memory_space<vmem>>, vector<32x1xf32>
    %6 = vector.broadcast %5 : vector<32x1xf32> to vector<32x256xf32>
    %7 = arith.addf %4, %6 : vector<32x256xf32>
    %8 = tpu.iota {dimensions = array<i32: 1>} : vector<1x256xi32>
    %c15_i32 = arith.constant 15 : i32
    %9 = vector.broadcast %c15_i32 : i32 to vector<1x256xi32>
    %10 = arith.andi %8, %9 : vector<1x256xi32>
    %c136_i32 = arith.constant 136 : i32
    %11 = tpu.dynamic_rotate %7 by %c136_i32 dim 1 : vector<32x256xf32>, i32 -> vector<32x256xf32>
    %c120_i32 = arith.constant 120 : i32
    %12 = tpu.dynamic_rotate %7 by %c120_i32 dim 1 : vector<32x256xf32>, i32 -> vector<32x256xf32>
    %c8_i32 = arith.constant 8 : i32
    %13 = vector.broadcast %c8_i32 : i32 to vector<1x256xi32>
    %14 = arith.cmpi slt, %10, %13 : vector<1x256xi32>
    %15 = vector.shape_cast %14 : vector<1x256xi1> to vector<1x256xi1>
    %16 = vector.broadcast %15 : vector<1x256xi1> to vector<32x256xi1>
    %17 = arith.select %16, %12, %11 : vector<32x256xi1>, vector<32x256xf32>
    %18 = arith.subf %7, %17 : vector<32x256xf32>
    %19 = math.absf %18 : vector<32x256xf32>
    %cst = arith.constant dense<0.000000e+00> : vector<256xf32>
    %20 = vector.multi_reduction <add>, %19, %cst [0] : vector<32x256xf32> to vector<256xf32>
    %21 = vector.shape_cast %20 : vector<256xf32> to vector<1x256xf32>
    %cst_6 = arith.constant dense<0.000000e+00> : vector<1xf32>
    %22 = vector.multi_reduction <add>, %21, %cst_6 [1] : vector<1x256xf32> to vector<1xf32>
    %23 = vector.shape_cast %22 : vector<1xf32> to vector<1x1xf32>
    %cst_7 = arith.constant 3.906250e-03 : f32
    %24 = vector.broadcast %cst_7 : f32 to vector<1x1xf32>
    %25 = arith.mulf %23, %24 : vector<1x1xf32>
    %26 = vector.broadcast %25 : vector<1x1xf32> to vector<1x256xf32>
    %27 = arith.subf %21, %26 : vector<1x256xf32>
    %28 = arith.mulf %27, %27 : vector<1x256xf32>
    %cst_8 = arith.constant dense<0.000000e+00> : vector<1xf32>
    %29 = vector.multi_reduction <add>, %28, %cst_8 [1] : vector<1x256xf32> to vector<1xf32>
    %30 = vector.shape_cast %29 : vector<1xf32> to vector<1x1xf32>
    %cst_9 = arith.constant 0.00392156886 : f32
    %31 = vector.broadcast %cst_9 : f32 to vector<1x1xf32>
    %32 = arith.mulf %30, %31 : vector<1x1xf32>
    %33 = math.sqrt %32 : vector<1x1xf32>
    %34 = arith.subf %25, %33 : vector<1x1xf32>
    %cst_10 = arith.constant 0.000000e+00 : f32
    %35 = vector.broadcast %cst_10 : f32 to vector<32x256xf32>
    %cst_11 = arith.constant 0.000000e+00 : f32
    %36 = vector.broadcast %cst_11 : f32 to vector<1x256xf32>
    %cst_12 = arith.constant 0.000000e+00 : f32
    %37 = vector.broadcast %cst_12 : f32 to vector<1x1xf32>
    %38 = arith.cmpf ogt, %34, %37 : vector<1x1xf32>
    %cst_13 = arith.constant 1.000000e+00 : f32
    %cst_14 = arith.constant 0.000000e+00 : f32
    %39 = vector.broadcast %cst_13 : f32 to vector<1x1xf32>
    %40 = vector.broadcast %cst_14 : f32 to vector<1x1xf32>
    %41 = arith.select %38, %39, %40 : vector<1x1xi1>, vector<1x1xf32>
    %cst_15 = arith.constant 2.000000e+00 : f32
    %42 = vector.broadcast %cst_15 : f32 to vector<1x1xf32>
    %43 = arith.mulf %42, %41 : vector<1x1xf32>
    %44 = vector.broadcast %43 : vector<1x1xf32> to vector<1x256xf32>
    %45 = arith.addf %36, %44 : vector<1x256xf32>
    %c64_i32 = arith.constant 64 : i32
    %46 = tpu.dynamic_rotate %7 by %c64_i32 dim 1 : vector<32x256xf32>, i32 -> vector<32x256xf32>
    %47 = arith.subf %46, %7 : vector<32x256xf32>
    %48 = math.absf %47 : vector<32x256xf32>
    %cst_16 = arith.constant dense<0.000000e+00> : vector<256xf32>
    %49 = vector.multi_reduction <add>, %48, %cst_16 [0] : vector<32x256xf32> to vector<256xf32>
    %50 = vector.shape_cast %49 : vector<256xf32> to vector<1x256xf32>
    %51 = vector.broadcast %34 : vector<1x1xf32> to vector<1x256xf32>
    %52 = arith.cmpf olt, %50, %51 : vector<1x256xf32>
    %cst_17 = arith.constant 1.000000e+00 : f32
    %cst_18 = arith.constant 0.000000e+00 : f32
    %53 = vector.broadcast %cst_17 : f32 to vector<1x256xf32>
    %54 = vector.broadcast %cst_18 : f32 to vector<1x256xf32>
    %55 = arith.select %52, %53, %54 : vector<1x256xi1>, vector<1x256xf32>
    %56 = vector.broadcast %55 : vector<1x256xf32> to vector<32x256xf32>
    %57 = arith.mulf %47, %56 : vector<32x256xf32>
    %58 = arith.maximumf %35, %57 : vector<32x256xf32>
    %cst_19 = arith.constant 2.000000e+00 : f32
    %59 = vector.broadcast %cst_19 : f32 to vector<1x256xf32>
    %60 = arith.mulf %59, %55 : vector<1x256xf32>
    %61 = arith.addf %45, %60 : vector<1x256xf32>
    %c128_i32 = arith.constant 128 : i32
    %62 = tpu.dynamic_rotate %7 by %c128_i32 dim 1 : vector<32x256xf32>, i32 -> vector<32x256xf32>
    %63 = arith.subf %62, %7 : vector<32x256xf32>
    %64 = math.absf %63 : vector<32x256xf32>
    %cst_20 = arith.constant dense<0.000000e+00> : vector<256xf32>
    %65 = vector.multi_reduction <add>, %64, %cst_20 [0] : vector<32x256xf32> to vector<256xf32>
    %66 = vector.shape_cast %65 : vector<256xf32> to vector<1x256xf32>
    %67 = vector.broadcast %34 : vector<1x1xf32> to vector<1x256xf32>
    %68 = arith.cmpf olt, %66, %67 : vector<1x256xf32>
    %cst_21 = arith.constant 1.000000e+00 : f32
    %cst_22 = arith.constant 0.000000e+00 : f32
    %69 = vector.broadcast %cst_21 : f32 to vector<1x256xf32>
    %70 = vector.broadcast %cst_22 : f32 to vector<1x256xf32>
    %71 = arith.select %68, %69, %70 : vector<1x256xi1>, vector<1x256xf32>
    %72 = vector.broadcast %71 : vector<1x256xf32> to vector<32x256xf32>
    %73 = arith.mulf %63, %72 : vector<32x256xf32>
    %74 = arith.maximumf %58, %73 : vector<32x256xf32>
    %cst_23 = arith.constant 2.000000e+00 : f32
    %75 = vector.broadcast %cst_23 : f32 to vector<1x256xf32>
    %76 = arith.mulf %75, %71 : vector<1x256xf32>
    %77 = arith.addf %61, %76 : vector<1x256xf32>
    %c192_i32 = arith.constant 192 : i32
    %78 = tpu.dynamic_rotate %7 by %c192_i32 dim 1 : vector<32x256xf32>, i32 -> vector<32x256xf32>
    %79 = arith.subf %78, %7 : vector<32x256xf32>
    %80 = math.absf %79 : vector<32x256xf32>
    %cst_24 = arith.constant dense<0.000000e+00> : vector<256xf32>
    %81 = vector.multi_reduction <add>, %80, %cst_24 [0] : vector<32x256xf32> to vector<256xf32>
    %82 = vector.shape_cast %81 : vector<256xf32> to vector<1x256xf32>
    %83 = vector.broadcast %34 : vector<1x1xf32> to vector<1x256xf32>
    %84 = arith.cmpf olt, %82, %83 : vector<1x256xf32>
    %cst_25 = arith.constant 1.000000e+00 : f32
    %cst_26 = arith.constant 0.000000e+00 : f32
    %85 = vector.broadcast %cst_25 : f32 to vector<1x256xf32>
    %86 = vector.broadcast %cst_26 : f32 to vector<1x256xf32>
    %87 = arith.select %84, %85, %86 : vector<1x256xi1>, vector<1x256xf32>
    %88 = vector.broadcast %87 : vector<1x256xf32> to vector<32x256xf32>
    %89 = arith.mulf %79, %88 : vector<32x256xf32>
    %90 = arith.maximumf %74, %89 : vector<32x256xf32>
    %cst_27 = arith.constant 2.000000e+00 : f32
    %91 = vector.broadcast %cst_27 : f32 to vector<1x256xf32>
    %92 = arith.mulf %91, %87 : vector<1x256xf32>
    %93 = arith.addf %77, %92 : vector<1x256xf32>
    %cst_28 = arith.constant dense<0x7F800000> : vector<1xf32>
    %94 = vector.multi_reduction <minimumf>, %93, %cst_28 [1] : vector<1x256xf32> to vector<1xf32>
    %95 = vector.shape_cast %94 : vector<1xf32> to vector<1x1xf32>
    %cst_29 = arith.constant dense<0xFF800000> : vector<1xf32>
    %96 = vector.multi_reduction <maximumf>, %93, %cst_29 [1] : vector<1x256xf32> to vector<1xf32>
    %97 = vector.shape_cast %96 : vector<1xf32> to vector<1x1xf32>
    %98 = arith.subf %97, %95 : vector<1x1xf32>
    %cst_30 = arith.constant 4.000000e-01 : f32
    %99 = vector.broadcast %cst_30 : f32 to vector<1x1xf32>
    %100 = arith.mulf %98, %99 : vector<1x1xf32>
    %101 = vector.broadcast %100 : vector<1x1xf32> to vector<1x256xf32>
    %102 = arith.cmpf olt, %93, %101 : vector<1x256xf32>
    %cst_31 = arith.constant 1.000000e+00 : f32
    %cst_32 = arith.constant 0.000000e+00 : f32
    %103 = vector.broadcast %cst_31 : f32 to vector<1x256xf32>
    %104 = vector.broadcast %cst_32 : f32 to vector<1x256xf32>
    %105 = arith.select %102, %103, %104 : vector<1x256xi1>, vector<1x256xf32>
    %c0_33 = arith.constant 0 : index
    %c0_34 = arith.constant 0 : index
    %106 = vector.load %arg4[%c0_33, %c0_34] : memref<32x32xf32, #tpu.memory_space<vmem>>, vector<32x32xf32>
    %cst_35 = arith.constant dense<0.000000e+00> : vector<32x256xf32>
    %107 = tpu.matmul %106, %7, %cst_35 {dimension_numbers = #tpu.dot_dimension_numbers<[1], [0], [0], [1], [0, 0, 1, 1], [], []>} : vector<32x32xf32>, vector<32x256xf32>, vector<32x256xf32> -> vector<32x256xf32>
    %c0_36 = arith.constant 0 : index
    %c0_37 = arith.constant 0 : index
    %108 = vector.load %arg5[%c0_36, %c0_37] : memref<32x32xf32, #tpu.memory_space<vmem>>, vector<32x32xf32>
    %cst_38 = arith.constant dense<0.000000e+00> : vector<32x256xf32>
    %109 = tpu.matmul %108, %90, %cst_38 {dimension_numbers = #tpu.dot_dimension_numbers<[1], [0], [0], [1], [0, 0, 1, 1], [], []>} : vector<32x32xf32>, vector<32x256xf32>, vector<32x256xf32> -> vector<32x256xf32>
    %110 = arith.addf %107, %109 : vector<32x256xf32>
    %c0_39 = arith.constant 0 : index
    %c0_40 = arith.constant 0 : index
    %111 = vector.load %arg6[%c0_39, %c0_40] : memref<32x32xf32, #tpu.memory_space<vmem>>, vector<32x32xf32>
    %112 = vector.broadcast %105 : vector<1x256xf32> to vector<32x256xf32>
    %113 = arith.mulf %7, %112 : vector<32x256xf32>
    %cst_41 = arith.constant dense<0.000000e+00> : vector<32x256xf32>
    %114 = tpu.matmul %111, %113, %cst_41 {dimension_numbers = #tpu.dot_dimension_numbers<[1], [0], [0], [1], [0, 0, 1, 1], [], []>} : vector<32x32xf32>, vector<32x256xf32>, vector<32x256xf32> -> vector<32x256xf32>
    %115 = arith.addf %110, %114 : vector<32x256xf32>
    %c0_42 = arith.constant 0 : index
    %c0_43 = arith.constant 0 : index
    %116 = vector.load %arg7[%c0_42, %c0_43] : memref<32x1xf32, #tpu.memory_space<vmem>>, vector<32x1xf32>
    %117 = vector.broadcast %116 : vector<32x1xf32> to vector<32x256xf32>
    %118 = arith.addf %115, %117 : vector<32x256xf32>
    %c0_44 = arith.constant 0 : index
    %c0_45 = arith.constant 0 : index
    %c0_46 = arith.constant 0 : index
    %119 = vector.load %arg8[%c0_44, %c0_45, %c0_46] : memref<1x32x256xf32, #tpu.memory_space<vmem>>, vector<1x32x256xf32>
    %120 = vector.shape_cast %119 : vector<1x32x256xf32> to vector<32x256xf32>
    %121 = vector.shape_cast %118 : vector<32x256xf32> to vector<1x32x256xf32>
    tpu.vector_store %arg8[%c0_44, %c0_45, %c0_46], %121 {strides = array<i32>} : memref<1x32x256xf32, #tpu.memory_space<vmem>>, vector<1x32x256xf32>,
    %cst_47 = arith.constant dense<0.000000e+00> : vector<32xf32>
    %122 = vector.multi_reduction <add>, %118, %cst_47 [1] : vector<32x256xf32> to vector<32xf32>
    %123 = vector.shape_cast %122 : vector<32xf32> to vector<32x1xf32>
    %c0_48 = arith.constant 0 : index
    %c0_49 = arith.constant 0 : index
    %c0_50 = arith.constant 0 : index
    %124 = vector.load %arg9[%c0_48, %c0_49, %c0_50] : memref<1x32x1xf32, #tpu.memory_space<vmem>>, vector<1x32x1xf32>
    %125 = vector.shape_cast %124 : vector<1x32x1xf32> to vector<32x1xf32>
    %126 = vector.shape_cast %123 : vector<32x1xf32> to vector<1x32x1xf32>
    tpu.vector_store %arg9[%c0_48, %c0_49, %c0_50], %126 {strides = array<i32>} : memref<1x32x1xf32, #tpu.memory_space<vmem>>, vector<1x32x1xf32>,
    %127 = arith.mulf %118, %118 : vector<32x256xf32>
    %cst_51 = arith.constant dense<0.000000e+00> : vector<32xf32>
    %128 = vector.multi_reduction <add>, %127, %cst_51 [1] : vector<32x256xf32> to vector<32xf32>
    %129 = vector.shape_cast %128 : vector<32xf32> to vector<32x1xf32>
    %c0_52 = arith.constant 0 : index
    %c0_53 = arith.constant 0 : index
    %c0_54 = arith.constant 0 : index
    %130 = vector.load %arg10[%c0_52, %c0_53, %c0_54] : memref<1x32x1xf32, #tpu.memory_space<vmem>>, vector<1x32x1xf32>
    %131 = vector.shape_cast %130 : vector<1x32x1xf32> to vector<32x1xf32>
    %132 = vector.shape_cast %129 : vector<32x1xf32> to vector<1x32x1xf32>
    tpu.vector_store %arg10[%c0_52, %c0_53, %c0_54], %132 {strides = array<i32>} : memref<1x32x1xf32, #tpu.memory_space<vmem>>, vector<1x32x1xf32>,
    return
  }
  func.func @transform_0(%arg0: i32) -> (i32, i32, i32) {
    %c0_i32 = arith.constant 0 : i32
    %c0_i32_0 = arith.constant 0 : i32
    %c0_i32_1 = arith.constant 0 : i32
    return %arg0, %c0_i32, %c0_i32_0 : i32, i32, i32
  }
  func.func @transform_1(%arg0: i32) -> (i32, i32) {
    %c0_i32 = arith.constant 0 : i32
    %c0_i32_0 = arith.constant 0 : i32
    %c0_i32_1 = arith.constant 0 : i32
    return %c0_i32, %c0_i32_0 : i32, i32
  }
  func.func @transform_2(%arg0: i32) -> (i32, i32) {
    %c0_i32 = arith.constant 0 : i32
    %c0_i32_0 = arith.constant 0 : i32
    %c0_i32_1 = arith.constant 0 : i32
    return %c0_i32, %c0_i32_0 : i32, i32
  }
  func.func @transform_3(%arg0: i32) -> (i32, i32) {
    %c0_i32 = arith.constant 0 : i32
    %c0_i32_0 = arith.constant 0 : i32
    %c0_i32_1 = arith.constant 0 : i32
    return %c0_i32, %c0_i32_0 : i32, i32
  }
  func.func @transform_4(%arg0: i32) -> (i32, i32) {
    %c0_i32 = arith.constant 0 : i32
    %c0_i32_0 = arith.constant 0 : i32
    %c0_i32_1 = arith.constant 0 : i32
    return %c0_i32, %c0_i32_0 : i32, i32
  }
  func.func @transform_5(%arg0: i32) -> (i32, i32) {
    %c0_i32 = arith.constant 0 : i32
    %c0_i32_0 = arith.constant 0 : i32
    %c0_i32_1 = arith.constant 0 : i32
    return %c0_i32, %c0_i32_0 : i32, i32
  }
  func.func @transform_6(%arg0: i32) -> (i32, i32) {
    %c0_i32 = arith.constant 0 : i32
    %c0_i32_0 = arith.constant 0 : i32
    %c0_i32_1 = arith.constant 0 : i32
    return %c0_i32, %c0_i32_0 : i32, i32
  }
  func.func @transform_7(%arg0: i32) -> (i32, i32, i32) {
    %c0_i32 = arith.constant 0 : i32
    %c0_i32_0 = arith.constant 0 : i32
    %c0_i32_1 = arith.constant 0 : i32
    return %arg0, %c0_i32, %c0_i32_0 : i32, i32, i32
  }
  func.func @transform_8(%arg0: i32) -> (i32, i32, i32) {
    %c0_i32 = arith.constant 0 : i32
    %c0_i32_0 = arith.constant 0 : i32
    %c0_i32_1 = arith.constant 0 : i32
    return %arg0, %c0_i32, %c0_i32_0 : i32, i32, i32
  }
  func.func @transform_9(%arg0: i32) -> (i32, i32, i32) {
    %c0_i32 = arith.constant 0 : i32
    %c0_i32_0 = arith.constant 0 : i32
    %c0_i32_1 = arith.constant 0 : i32
    return %arg0, %c0_i32, %c0_i32_0 : i32, i32, i32
  }
}

module attributes {stable_mosaic.version = 11 : i64} {
  func.func @kernel(%arg0: i32, %arg1: memref<1x32x256xf32, #tpu.memory_space<vmem>>, %arg2: memref<32x1xf32, #tpu.memory_space<vmem>>, %arg3: memref<32x1xf32, #tpu.memory_space<vmem>>, %arg4: memref<32x32xf32, #tpu.memory_space<vmem>>, %arg5: memref<32x1xf32, #tpu.memory_space<vmem>>, %arg6: memref<1x32x256xf32, #tpu.memory_space<vmem>>, %arg7: memref<1x32x1xf32, #tpu.memory_space<vmem>>, %arg8: memref<1x32x1xf32, #tpu.memory_space<vmem>>) attributes {dimension_semantics = [#tpu.dimension_semantics<parallel>], iteration_bounds = array<i64: 2>, scalar_prefetch = 0 : i64, scratch_operands = 0 : i64, tpu.core_type = #tpu.core_type<tc>, window_params = [{transform_indices = @transform_0, window_bounds = array<i64: 1, 32, 256>}, {pipeline_mode = #tpu.pipeline_mode<synchronous>, transform_indices = @transform_1, window_bounds = array<i64: 32, 1>}, {pipeline_mode = #tpu.pipeline_mode<synchronous>, transform_indices = @transform_2, window_bounds = array<i64: 32, 1>}, {pipeline_mode = #tpu.pipeline_mode<synchronous>, transform_indices = @transform_3, window_bounds = array<i64: 32, 32>}, {pipeline_mode = #tpu.pipeline_mode<synchronous>, transform_indices = @transform_4, window_bounds = array<i64: 32, 1>}, {transform_indices = @transform_5, window_bounds = array<i64: 1, 32, 256>}, {transform_indices = @transform_6, window_bounds = array<i64: 1, 32, 1>}, {transform_indices = @transform_7, window_bounds = array<i64: 1, 32, 1>}]} {
    %c0 = arith.constant 0 : index
    %c0_0 = arith.constant 0 : index
    %c0_1 = arith.constant 0 : index
    %0 = vector.load %arg1[%c0, %c0_0, %c0_1] : memref<1x32x256xf32, #tpu.memory_space<vmem>>, vector<1x32x256xf32>
    %1 = vector.shape_cast %0 : vector<1x32x256xf32> to vector<32x256xf32>
    %c0_2 = arith.constant 0 : index
    %c0_3 = arith.constant 0 : index
    %2 = vector.load %arg2[%c0_2, %c0_3] : memref<32x1xf32, #tpu.memory_space<vmem>>, vector<32x1xf32>
    %3 = vector.broadcast %2 : vector<32x1xf32> to vector<32x256xf32>
    %4 = arith.mulf %1, %3 : vector<32x256xf32>
    %c0_4 = arith.constant 0 : index
    %c0_5 = arith.constant 0 : index
    %5 = vector.load %arg3[%c0_4, %c0_5] : memref<32x1xf32, #tpu.memory_space<vmem>>, vector<32x1xf32>
    %6 = vector.broadcast %5 : vector<32x1xf32> to vector<32x256xf32>
    %7 = arith.addf %4, %6 : vector<32x256xf32>
    %cst = arith.constant 5.000000e-01 : f32
    %8 = vector.broadcast %cst : f32 to vector<32x256xf32>
    %9 = arith.mulf %8, %7 : vector<32x256xf32>
    %cst_6 = arith.constant 0.707106769 : f32
    %10 = vector.broadcast %cst_6 : f32 to vector<32x256xf32>
    %11 = arith.mulf %7, %10 : vector<32x256xf32>
    %cst_7 = arith.constant 0.000000e+00 : f32
    %12 = vector.broadcast %cst_7 : f32 to vector<32x256xf32>
    %13 = arith.cmpf oge, %11, %12 : vector<32x256xf32>
    %cst_8 = arith.constant 1.000000e+00 : f32
    %cst_9 = arith.constant -1.000000e+00 : f32
    %14 = vector.broadcast %cst_8 : f32 to vector<32x256xf32>
    %15 = vector.broadcast %cst_9 : f32 to vector<32x256xf32>
    %16 = arith.select %13, %14, %15 : vector<32x256xi1>, vector<32x256xf32>
    %17 = math.absf %11 : vector<32x256xf32>
    %cst_10 = arith.constant 0.327591091 : f32
    %18 = vector.broadcast %cst_10 : f32 to vector<32x256xf32>
    %19 = arith.mulf %18, %17 : vector<32x256xf32>
    %cst_11 = arith.constant 1.000000e+00 : f32
    %20 = vector.broadcast %cst_11 : f32 to vector<32x256xf32>
    %21 = arith.addf %20, %19 : vector<32x256xf32>
    %cst_12 = arith.constant 1.000000e+00 : f32
    %22 = vector.broadcast %cst_12 : f32 to vector<32x256xf32>
    %23 = arith.divf %22, %21 : vector<32x256xf32>
    %cst_13 = arith.constant 1.06140542 : f32
    %24 = vector.broadcast %cst_13 : f32 to vector<32x256xf32>
    %25 = arith.mulf %24, %23 : vector<32x256xf32>
    %cst_14 = arith.constant -1.45315206 : f32
    %26 = vector.broadcast %cst_14 : f32 to vector<32x256xf32>
    %27 = arith.addf %25, %26 : vector<32x256xf32>
    %28 = arith.mulf %27, %23 : vector<32x256xf32>
    %cst_15 = arith.constant 1.42141378 : f32
    %29 = vector.broadcast %cst_15 : f32 to vector<32x256xf32>
    %30 = arith.addf %28, %29 : vector<32x256xf32>
    %31 = arith.mulf %30, %23 : vector<32x256xf32>
    %cst_16 = arith.constant -0.284496725 : f32
    %32 = vector.broadcast %cst_16 : f32 to vector<32x256xf32>
    %33 = arith.addf %31, %32 : vector<32x256xf32>
    %34 = arith.mulf %33, %23 : vector<32x256xf32>
    %cst_17 = arith.constant 0.254829586 : f32
    %35 = vector.broadcast %cst_17 : f32 to vector<32x256xf32>
    %36 = arith.addf %34, %35 : vector<32x256xf32>
    %37 = arith.mulf %36, %23 : vector<32x256xf32>
    %cst_18 = arith.constant 0.000000e+00 : f32
    %38 = vector.broadcast %cst_18 : f32 to vector<32x256xf32>
    %39 = arith.subf %38, %17 : vector<32x256xf32>
    %40 = arith.mulf %39, %17 : vector<32x256xf32>
    %41 = math.exp %40 : vector<32x256xf32>
    %42 = arith.mulf %37, %41 : vector<32x256xf32>
    %cst_19 = arith.constant 1.000000e+00 : f32
    %43 = vector.broadcast %cst_19 : f32 to vector<32x256xf32>
    %44 = arith.subf %43, %42 : vector<32x256xf32>
    %45 = arith.mulf %16, %44 : vector<32x256xf32>
    %cst_20 = arith.constant 1.000000e+00 : f32
    %46 = vector.broadcast %cst_20 : f32 to vector<32x256xf32>
    %47 = arith.addf %46, %45 : vector<32x256xf32>
    %48 = arith.mulf %9, %47 : vector<32x256xf32>
    %c0_21 = arith.constant 0 : index
    %c0_22 = arith.constant 0 : index
    %49 = vector.load %arg4[%c0_21, %c0_22] : memref<32x32xf32, #tpu.memory_space<vmem>>, vector<32x32xf32>
    %cst_23 = arith.constant dense<0.000000e+00> : vector<32x256xf32>
    %50 = tpu.matmul %49, %48, %cst_23 {dimension_numbers = #tpu.dot_dimension_numbers<[1], [0], [0], [1], [0, 0, 1, 1], [], []>} : vector<32x32xf32>, vector<32x256xf32>, vector<32x256xf32> -> vector<32x256xf32>
    %c0_24 = arith.constant 0 : index
    %c0_25 = arith.constant 0 : index
    %51 = vector.load %arg5[%c0_24, %c0_25] : memref<32x1xf32, #tpu.memory_space<vmem>>, vector<32x1xf32>
    %52 = vector.broadcast %51 : vector<32x1xf32> to vector<32x256xf32>
    %53 = arith.addf %50, %52 : vector<32x256xf32>
    %c0_26 = arith.constant 0 : index
    %c0_27 = arith.constant 0 : index
    %c0_28 = arith.constant 0 : index
    %54 = vector.load %arg6[%c0_26, %c0_27, %c0_28] : memref<1x32x256xf32, #tpu.memory_space<vmem>>, vector<1x32x256xf32>
    %55 = vector.shape_cast %54 : vector<1x32x256xf32> to vector<32x256xf32>
    %56 = vector.shape_cast %53 : vector<32x256xf32> to vector<1x32x256xf32>
    tpu.vector_store %arg6[%c0_26, %c0_27, %c0_28], %56 {strides = array<i32>} : memref<1x32x256xf32, #tpu.memory_space<vmem>>, vector<1x32x256xf32>,
    %cst_29 = arith.constant dense<0.000000e+00> : vector<32xf32>
    %57 = vector.multi_reduction <add>, %53, %cst_29 [1] : vector<32x256xf32> to vector<32xf32>
    %58 = vector.shape_cast %57 : vector<32xf32> to vector<32x1xf32>
    %c0_30 = arith.constant 0 : index
    %c0_31 = arith.constant 0 : index
    %c0_32 = arith.constant 0 : index
    %59 = vector.load %arg7[%c0_30, %c0_31, %c0_32] : memref<1x32x1xf32, #tpu.memory_space<vmem>>, vector<1x32x1xf32>
    %60 = vector.shape_cast %59 : vector<1x32x1xf32> to vector<32x1xf32>
    %61 = vector.shape_cast %58 : vector<32x1xf32> to vector<1x32x1xf32>
    tpu.vector_store %arg7[%c0_30, %c0_31, %c0_32], %61 {strides = array<i32>} : memref<1x32x1xf32, #tpu.memory_space<vmem>>, vector<1x32x1xf32>,
    %62 = arith.mulf %53, %53 : vector<32x256xf32>
    %cst_33 = arith.constant dense<0.000000e+00> : vector<32xf32>
    %63 = vector.multi_reduction <add>, %62, %cst_33 [1] : vector<32x256xf32> to vector<32xf32>
    %64 = vector.shape_cast %63 : vector<32xf32> to vector<32x1xf32>
    %c0_34 = arith.constant 0 : index
    %c0_35 = arith.constant 0 : index
    %c0_36 = arith.constant 0 : index
    %65 = vector.load %arg8[%c0_34, %c0_35, %c0_36] : memref<1x32x1xf32, #tpu.memory_space<vmem>>, vector<1x32x1xf32>
    %66 = vector.shape_cast %65 : vector<1x32x1xf32> to vector<32x1xf32>
    %67 = vector.shape_cast %64 : vector<32x1xf32> to vector<1x32x1xf32>
    tpu.vector_store %arg8[%c0_34, %c0_35, %c0_36], %67 {strides = array<i32>} : memref<1x32x1xf32, #tpu.memory_space<vmem>>, vector<1x32x1xf32>,
    return
  }
  func.func @transform_0(%arg0: i32) -> (i32, i32, i32) {
    %c0_i32 = arith.constant 0 : i32
    %c0_i32_0 = arith.constant 0 : i32
    %c0_i32_1 = arith.constant 0 : i32
    return %arg0, %c0_i32, %c0_i32_0 : i32, i32, i32
  }
  func.func @transform_1(%arg0: i32) -> (i32, i32) {
    %c0_i32 = arith.constant 0 : i32
    %c0_i32_0 = arith.constant 0 : i32
    %c0_i32_1 = arith.constant 0 : i32
    return %c0_i32, %c0_i32_0 : i32, i32
  }
  func.func @transform_2(%arg0: i32) -> (i32, i32) {
    %c0_i32 = arith.constant 0 : i32
    %c0_i32_0 = arith.constant 0 : i32
    %c0_i32_1 = arith.constant 0 : i32
    return %c0_i32, %c0_i32_0 : i32, i32
  }
  func.func @transform_3(%arg0: i32) -> (i32, i32) {
    %c0_i32 = arith.constant 0 : i32
    %c0_i32_0 = arith.constant 0 : i32
    %c0_i32_1 = arith.constant 0 : i32
    return %c0_i32, %c0_i32_0 : i32, i32
  }
  func.func @transform_4(%arg0: i32) -> (i32, i32) {
    %c0_i32 = arith.constant 0 : i32
    %c0_i32_0 = arith.constant 0 : i32
    %c0_i32_1 = arith.constant 0 : i32
    return %c0_i32, %c0_i32_0 : i32, i32
  }
  func.func @transform_5(%arg0: i32) -> (i32, i32, i32) {
    %c0_i32 = arith.constant 0 : i32
    %c0_i32_0 = arith.constant 0 : i32
    %c0_i32_1 = arith.constant 0 : i32
    return %arg0, %c0_i32, %c0_i32_0 : i32, i32, i32
  }
  func.func @transform_6(%arg0: i32) -> (i32, i32, i32) {
    %c0_i32 = arith.constant 0 : i32
    %c0_i32_0 = arith.constant 0 : i32
    %c0_i32_1 = arith.constant 0 : i32
    return %arg0, %c0_i32, %c0_i32_0 : i32, i32, i32
  }
  func.func @transform_7(%arg0: i32) -> (i32, i32, i32) {
    %c0_i32 = arith.constant 0 : i32
    %c0_i32_0 = arith.constant 0 : i32
    %c0_i32_1 = arith.constant 0 : i32
    return %arg0, %c0_i32, %c0_i32_0 : i32, i32, i32
  }
}

</mosaic_0001>

<bundles_post_ra>
// kernel: _lambda_.7
= control target key start
LH: loop header
LB: loop body
LE: loop exit
PB: predicated region body
PF: predicated region fallthrough
CT: control target
= control target key end

     0   :  { %s359_s12 = smov 0   ;;  %s400_s0 = inlined_call_operand.vmem [shape: f32[2,32,256], index: 0, kind: input, shape index: {}, may-alias: {0,3}]   ;;  %s401_s1 = inlined_call_operand.vmem [shape: f32[32,1], index: 1, kind: input, shape index: {}]   ;;  %s402_s2 = inlined_call_operand.vmem [shape: f32[32,1], index: 2, kind: input, shape index: {}]   ;;  %s403_s3 = inlined_call_operand.vmem [shape: f32[2,32,256], index: 3, kind: output, shape index: {}, may-alias: {0,3}]  }
   0x1 LB: > { %s306_s13 = sadd.s32 4294967295, %s336_s12   ;;  %p310_p0 = scmp.ge.s32.totalorder %s336_s12, 1  ;;  %s336_s12 = sphi %s359_s12, %s13_s12  }
   0x2   : > { %p137_p1 = scmp.lt.s32.totalorder %s336_s12, 3 }
   0x4   : > { %p138_p2 = pnand %p310_p0, %p137_p1 }
   0x5   : > { %p161_p3 = scmp.lt.s32.totalorder (!%p138_p2), %s306_s13, 1 }
   0x6   : > { %141 = sbr.rel (%p138_p2) target bundleno = 153 (0x99), region = 32 }
   0xb   : > { %v181_v0 = vld [vmem:[%s401_s1 + $0x10] sm:$0xff]  ;;  %v179_v1 = vld [vmem:[%s401_s1] sm:$0xff]  ;;  %v338_v2 = vmov 0   ;;  %v182_v3 = vld [vmem:[%s401_s1 + $0x18] sm:$0xff]  ;;  %s405_s13 = smov (!%p161_p3, %s306_s13), 1 }
   0xc   : > { %329 = vset.pattern.permute.xlu1 %v338_v2  ;;  %328 = vset.pattern.permute.xlu0 %v338_v2  ;;  %v180_v4 = vld [vmem:[%s401_s1 + $0x8] sm:$0xff]  ;;  %v211_v6 = vld [vmem:[%s402_s2] sm:$0xff]  ;;  %v214_v7 = vld [vmem:[%s402_s2 + $0x18] sm:$0xff]  ;;  %s317_s30 = sshll.u32 %s405_s13, 6 }
   0xd   : > { %195 = vperm.xlu1 %329, %v181_v0   ;;  %185 = vperm.xlu0 %328, %v179_v1   ;;  %v212_v5 = vld [vmem:[%s402_s2 + $0x8] sm:$0xff]  ;;  %v213_v8 = vld [vmem:[%s402_s2 + $0x10] sm:$0xff]  ;;  %s165_s6 = scalar_lea.vmem %s400_s0, %s317_s30  ;;  %s170_s9 = scalar_lea.vmem %s403_s3, %s317_s30 }
   0xe   : > { %v171_v11 = vld [vmem:[%s165_s6] sm:$0xff]  ;;  %v172_v12 = vld [vmem:[%s165_s6 + $0x8] sm:$0xff]  ;;  %v173_v15 = vld [vmem:[%s165_s6 + $0x10] sm:$0xff] }
   0xf   : > { %v174_v16 = vld [vmem:[%s165_s6 + $0x18] sm:$0xff]  ;;  %v175_v17 = vld [vmem:[%s165_s6 + $0x20] sm:$0xff]  ;;  %v176_v22 = vld [vmem:[%s165_s6 + $0x28] sm:$0xff] }
  0x10   : > { %v177_v23 = vld [vmem:[%s165_s6 + $0x30] sm:$0xff]  ;;  %v178_v24 = vld [vmem:[%s165_s6 + $0x38] sm:$0xff] }
  0x11   : > { %200 = vperm.xlu1 %329, %v182_v3   ;;  %190 = vperm.xlu0 %328, %v180_v4  }
  0x15   : > { %222 = vperm.xlu1 %329, %v212_v5   ;;  %217 = vperm.xlu0 %328, %v211_v6  }
  0x19   : > { %232 = vperm.xlu1 %329, %v214_v7   ;;  %227 = vperm.xlu0 %328, %v213_v8  }
  0x88   : > { %v196_v9 = vpop.permute.xlu1 %195  ;;  %v186_v10 = vpop.permute.xlu0 %185 }
  0x89   : > { %v203_v18 = vmul.f32 %v186_v10, %v171_v11  ;;  %v204_v19 = vmul.f32 %v186_v10, %v172_v12  ;;  %v207_v31 = vmul.f32 %v196_v9, %v175_v17  ;;  %v208_v32 = vmul.f32 %v196_v9, %v176_v22 }
  0x8c   : > { %v201_v13 = vpop.permute.xlu1 %200  ;;  %v191_v14 = vpop.permute.xlu0 %190 }
  0x8d   : > { %v205_v20 = vmul.f32 %v191_v14, %v173_v15  ;;  %v206_v21 = vmul.f32 %v191_v14, %v174_v16  ;;  %v209_v33 = vmul.f32 %v201_v13, %v177_v23  ;;  %v210_v34 = vmul.f32 %v201_v13, %v178_v24 }
  0x90   : > { %v223_v25 = vpop.permute.xlu1 %222  ;;  %v218_v26 = vpop.permute.xlu0 %217 }
  0x91   : > { %v237_v27 = vadd.f32 %v223_v25, %v205_v20  ;;  %v238_v28 = vadd.f32 %v223_v25, %v206_v21  ;;  %v235_v29 = vadd.f32 %v218_v26, %v203_v18  ;;  %v236_v30 = vadd.f32 %v218_v26, %v204_v19 }
  0x93   : > { %245 = vst [vmem:[%s170_s9 + $0x10] sm:$0xff] %v237_v27  ;;  %246 = vst [vmem:[%s170_s9 + $0x18] sm:$0xff] %v238_v28 }
  0x94   : > { %243 = vst [vmem:[%s170_s9] sm:$0xff] %v235_v29  ;;  %244 = vst [vmem:[%s170_s9 + $0x8] sm:$0xff] %v236_v30  ;;  %v233_v35 = vpop.permute.xlu1 %232  ;;  %v228_v36 = vpop.permute.xlu0 %227 }
  0x95   : > { %v241_v37 = vadd.f32 %v233_v35, %v209_v33  ;;  %v242_v38 = vadd.f32 %v233_v35, %v210_v34  ;;  %v239_v39 = vadd.f32 %v228_v36, %v207_v31  ;;  %v240_v40 = vadd.f32 %v228_v36, %v208_v32 }
  0x97   : > { %249 = vst [vmem:[%s170_s9 + $0x30] sm:$0xff] %v241_v37  ;;  %250 = vst [vmem:[%s170_s9 + $0x38] sm:$0xff] %v242_v38 }
  0x98   : > { %247 = vst [vmem:[%s170_s9 + $0x20] sm:$0xff] %v239_v39  ;;  %248 = vst [vmem:[%s170_s9 + $0x28] sm:$0xff] %v240_v40 }
  0x99 PF: > { %s13_s12 = sadd.s32 1, %s336_s12  }
  0x9a   : > { %p10_p4 = scmp.ge.s32.totalorder %s13_s12, 4  }
  0x9c   :  { %12 = sbr.rel (!%p10_p4) target bundleno = 1 (0x1), region = 62 }

// kernel: _lambda_.4
= control target key start
LH: loop header
LB: loop body
LE: loop exit
PB: predicated region body
PF: predicated region fallthrough
CT: control target
= control target key end

     0   :  { %s1442_s24 = smov 0   ;;  %s2366_s0 = inlined_call_operand.vmem [shape: f32[2,32,256], index: 0, kind: input, shape index: {}]   ;;  %s2367_s1 = inlined_call_operand.vmem [shape: f32[32,9], index: 1, kind: input, shape index: {}]   ;;  %s2368_s2 = inlined_call_operand.vmem [shape: f32[32,1], index: 2, kind: input, shape index: {}]   ;;  %s2369_s3 = inlined_call_operand.vmem [shape: f32[32,32], index: 3, kind: input, shape index: {}]   ;;  %s2370_s4 = inlined_call_operand.vmem [shape: f32[32,1], index: 4, kind: input, shape index: {}]   ;;  %s2371_s5 = inlined_call_operand.vmem [shape: f32[2,32,256], index: 5, kind: output, shape index: {0}]   ;;  %s2372_s6 = inlined_call_operand.vmem [shape: f32[2,32,1], index: 6, kind: output, shape index: {1}]   ;;  %s2373_s7 = inlined_call_operand.vmem [shape: f32[2,32,1], index: 7, kind: output, shape index: {2}]  }
   0x1 LB: > { %s1287_s25 = sadd.s32 4294967295, %s1382_s24   ;;  %p1291_p0 = scmp.ge.s32.totalorder %s1382_s24, 1  ;;  %s1382_s24 = sphi %s1442_s24, %s18_s24  }
   0x2   : > { %p242_p1 = scmp.lt.s32.totalorder %s1382_s24, 3 }
   0x4   : > { %p243_p2 = pnand %p1291_p0, %p242_p1 }
   0x5   : > { %p284_p3 = scmp.lt.s32.totalorder (!%p243_p2), %s1287_s25, 1  ;;  %s1386_s13 = smov (!%p243_p2), 17  }
   0x6   : > { %246 = sbr.rel (%p243_p2) target bundleno = 731 (0x2db), region = 40  ;;  %s1390_s16 = smov (!%p243_p2), 16  }
   0x7   : > { %s1392_s17 = smov (!%p243_p2), 15   ;;  %s1393_s18 = smov (!%p243_p2), 1  }
   0x8   : > { %s1396_s19 = smov (!%p243_p2), 127   ;;  %s1397_s20 = smov (!%p243_p2), 113  }
   0x9   : > { %s1399_s21 = smov (!%p243_p2), 112   ;;  %s1400_s22 = smov (!%p243_p2), 111  }
   0xb   : > { %v1453_v0 = vld [vmem:[%s2367_s1 + $0x10] sm:$0xff]  ;;  %v1458_v1 = vld [vmem:[%s2367_s1 + $0x18] sm:$0xff]  ;;  %v1384_v2 = vmov 4   ;;  %s2391_s25 = smov (!%p284_p3, %s1287_s25), 1  ;;  %v1467_v3 = vld [vmem:[%s2367_s1 + $0x8] sm:$0xff]  ;;  %v1385_v5 = vmov 1   ;;  %v316_v27 = vlaneseq }
   0xc   : > { %1345 = vset.pattern.permute.xlu1 %v1384_v2  ;;  %1344 = vset.pattern.permute.xlu0 %v1384_v2  ;;  %s1306_s9 = sshll.u32 %s2391_s25, 6  ;;  %v1387_v6 = vmov 0.0   ;;  %v1388_v8 = vmov 0   ;;  %v1389_v11 = vmov 2   ;;  %v1513_v13 = vld [vmem:[%s2367_s1] sm:$0xff]  ;;  %v1391_v16 = vmov 3  }
   0xd   : > { %335 = vperm.xlu1 %1345, %v1453_v0   ;;  %340 = vperm.xlu0 %1344, %v1458_v1   ;;  %s1475_s12 = scalar_lea.vmem %s2366_s0, %s1306_s9  ;;  %v1394_v18 = vmov 5   ;;  %v1395_v19 = vmov 6   ;;  %v1398_v20 = vmov 7   ;;  %v1635_v30 = vand.u32 127, %v316_v27  ;;  %s2338_s8 = scalar_lea.vmem %s2371_s5, %s1306_s9 }
   0xe   : > { %v1478_v4 = vld [vmem:[%s1475_s12 + $0x30] sm:$0xff]  ;;  %1092 = vmatprep.mubr.f32.mxu0 %v1387_v6  ;;  %v1485_v7 = vld [vmem:[%s1475_s12 + $0x38] sm:$0xff]  ;;  %1104 = vmatprep.mubr.f32.mxu1 %v1387_v6  ;;  %v1495_v9 = vld [vmem:[%s1475_s12 + $0x20] sm:$0xff]  ;;  %v1401_v37 = vmov 8   ;;  %s1308_s9 = sshll.u32 %s2391_s25, 5 }
   0xf   : > { %v1501_v10 = vld [vmem:[%s1475_s12 + $0x28] sm:$0xff]  ;;  %v1504_v12 = vld [vmem:[%s1475_s12 + $0x10] sm:$0xff]  ;;  %v1525_v14 = vld [vmem:[%s1475_s12 + $0x18] sm:$0xff]  ;;  %v1643_v33 = vadd.s32 128, %v1635_v30  ;;  %v1648_v36 = vshra.s32 %v1635_v30, 4  ;;  %v321_v41 = vand.u32 15, %v1635_v30 }
  0x10   : > { %v1529_v15 = vld [vmem:[%s1475_s12 + $0x8] sm:$0xff]  ;;  %v1552_v17 = vld [vmem:[%s1475_s12] sm:$0xff]  ;;  %vm385_vm10 = vcmp.lt.s32.totalorder %v1635_v30, 17  ;;  %vm460_vm11 = vcmp.lt.s32.totalorder %v1635_v30, 16  ;;  %vm537_vm14 = vcmp.lt.s32.totalorder %v1635_v30, 15 }
  0x11   : > { %330 = vperm.xlu0 %1344, %v1467_v3   ;;  %1346 = vset.pattern.permute.xlu1 %v1385_v5  ;;  %v1654_v38 = vshra.s32 %v1643_v33, 4  ;;  %v322_v42 = vand.u32 15, %v1643_v33  ;;  %v351_v43 = vadd.s32 4294967295, %v1648_v36  ;;  %v1674_v47 = vadd.s32 4294967295, %v321_v41 }
  0x12   : > { %375 = vrot.lane.b32.xlu1 %v1478_v4, %s1386_s13  ;;  %vm588_vm15 = vcmp.ge.s32.totalorder %v1648_v36, 0 }
  0x13   : > { %v352_v44 = vadd.s32 4294967295, %v1654_v38  ;;  %vm353_vm0 = vcmp.ge.s32.totalorder %v351_v43, 0  ;;  %vm355_vm1 = vcmp.lt.s32.totalorder %v351_v43, 16  ;;  %v1680_v48 = vadd.s32 4294967295, %v322_v42 }
  0x14   : > { %vm1687_vm4 = vmand %vm353_vm0, %vm355_vm1  ;;  %vm361_vm5 = vcmp.ge.s32.totalorder %v1674_v47, 0  ;;  %vm589_vm0 = vcmp.ge.s32.totalorder %v1654_v38, 0 }
  0x15   : > { %1347 = vset.pattern.permute.xlu0 %v1388_v8  ;;  %vm354_vm2 = vcmp.ge.s32.totalorder %v352_v44, 0  ;;  %vm356_vm3 = vcmp.lt.s32.totalorder %v352_v44, 16  ;;  %vm362_vm7 = vcmp.ge.s32.totalorder %v1680_v48, 0  ;;  %vm367_vm8 = vmand %vm1687_vm4, %vm361_vm5 }
  0x16   : > { %383 = vrot.lane.b32.xlu1 %v1485_v7, %s1386_s13  ;;  %417 = vperm.xlu0 %1347, %v1458_v1   ;;  %vm1694_vm6 = vmand %vm354_vm2, %vm356_vm3  ;;  %v1720_v55 = vsel %vm367_vm8, 1.0, %v1387_v6  ;;  %vm590_vm3 = vcmp.lt.s32.totalorder %v1648_v36, 16 }
  0x17   : > { %vm368_vm9 = vmand %vm1694_vm6, %vm362_vm7 }
  0x18   : > { %v1723_v56 = vsel %vm368_vm9, 1.0, %v1387_v6 }
  0x1a   : > { %492 = vperm.xlu1 %1346, %v1458_v1   ;;  %413 = vperm.xlu0 %1347, %v1453_v0  }
  0x1e   : > { %373 = vrot.lane.b32.xlu1 %v1495_v9, %s1386_s13  ;;  %409 = vperm.xlu0 %1347, %v1467_v3  }
  0x1f   : > { %1348 = vset.pattern.permute.xlu1 %v1389_v11 }
  0x22   : > { %381 = vrot.lane.b32.xlu1 %v1501_v10, %s1386_s13  ;;  %371 = vrot.lane.b32.xlu0 %v1504_v12, %s1386_s13 }
  0x26   : > { %450 = vrot.lane.b32.xlu1 %v1478_v4, %s1390_s16  ;;  %405 = vperm.xlu0 %1347, %v1513_v13  }
  0x2a   : > { %458 = vrot.lane.b32.xlu1 %v1485_v7, %s1390_s16  ;;  %1350 = vset.pattern.permute.xlu0 %v1385_v5 }
  0x2b   : > { %488 = vperm.xlu0 %1350, %v1453_v0  }
  0x2e   : > { %569 = vperm.xlu1 %1348, %v1458_v1  }
  0x2f   : > { %484 = vperm.xlu0 %1350, %v1467_v3  }
  0x32   : > { %1349 = vset.pattern.permute.xlu1 %v1384_v2 }
  0x33   : > { %325 = vperm.xlu1 %1349, %v1513_v13   ;;  %1351 = vset.pattern.permute.xlu0 %v1389_v11 }
  0x34   : > { %565 = vperm.xlu0 %1351, %v1453_v0  }
  0x37   : > { %379 = vrot.lane.b32.xlu1 %v1525_v14, %s1386_s13 }
  0x38   : > { %1352 = vset.pattern.permute.xlu1 %v1391_v16  ;;  %377 = vrot.lane.b32.xlu0 %v1529_v15, %s1386_s13 }
  0x3b   : > { %448 = vrot.lane.b32.xlu1 %v1495_v9, %s1390_s16 }
  0x3c   : > { %454 = vrot.lane.b32.xlu0 %v1525_v14, %s1390_s16 }
  0x3f   : > { %456 = vrot.lane.b32.xlu1 %v1501_v10, %s1390_s16 }
  0x40   : > { %525 = vrot.lane.b32.xlu0 %v1495_v9, %s1392_s17 }
  0x43   : > { %527 = vrot.lane.b32.xlu1 %v1478_v4, %s1392_s17 }
  0x44   : > { %561 = vperm.xlu0 %1351, %v1467_v3  }
  0x47   : > { %535 = vrot.lane.b32.xlu1 %v1485_v7, %s1392_s17 }
  0x48   : > { %610 = vrot.lane.b32.xlu0 %v1485_v7, %s1393_s18 }
  0x4b   : > { %644 = vperm.xlu1 %1352, %v1458_v1  }
  0x4c   : > { %523 = vrot.lane.b32.xlu0 %v1504_v12, %s1392_s17 }
  0x4f   : > { %369 = vrot.lane.b32.xlu1 %v1552_v17, %s1386_s13  ;;  %s298_s13 = scalar_lea.vmem %s2372_s6, %s1308_s9 }
  0x50   : > { %1353 = vset.pattern.permute.xlu1 %v1385_v5  ;;  %557 = vperm.xlu0 %1351, %v1513_v13  }
  0x53   : > { %446 = vrot.lane.b32.xlu1 %v1504_v12, %s1390_s16 }
  0x54   : > { %1355 = vset.pattern.permute.xlu0 %v1391_v16 }
  0x55   : > { %636 = vperm.xlu0 %1355, %v1467_v3  }
  0x57   : > { %480 = vperm.xlu1 %1353, %v1513_v13  }
  0x59   : > { %1356 = vset.pattern.permute.xlu0 %v1394_v18 }
  0x5a   : > { %713 = vperm.xlu0 %1356, %v1458_v1  }
  0x5b   : > { %533 = vrot.lane.b32.xlu1 %v1501_v10, %s1392_s17 }
  0x5c   : > { %1354 = vset.pattern.permute.xlu1 %v1391_v16 }
  0x5e   : > { %709 = vperm.xlu0 %1356, %v1453_v0  }
  0x5f   : > { %602 = vrot.lane.b32.xlu1 %v1478_v4, %s1393_s18 }
  0x62   : > { %529 = vrot.lane.b32.xlu0 %v1529_v15, %s1392_s17 }
  0x63   : > { %640 = vperm.xlu1 %1354, %v1453_v0  }
  0x66   : > { %606 = vrot.lane.b32.xlu0 %v1525_v14, %s1393_s18 }
  0x67   : > { %444 = vrot.lane.b32.xlu1 %v1552_v17, %s1390_s16 }
  0x68   : > { %1357 = vset.pattern.permute.xlu1 %v1395_v19 }
  0x6a   : > { %669 = vrot.lane.b32.xlu0 %v1495_v9, %s1396_s19 }
  0x6b   : > { %452 = vrot.lane.b32.xlu1 %v1529_v15, %s1390_s16  ;;  %s303_s16 = scalar_lea.vmem %s2373_s7, %s1308_s9 }
  0x6e   : > { %705 = vperm.xlu0 %1356, %v1467_v3  }
  0x6f   : > { %531 = vrot.lane.b32.xlu1 %v1525_v14, %s1392_s17 }
  0x72   : > { %756 = vrot.lane.b32.xlu0 %v1485_v7, %s1397_s20 }
  0x73   : > { %600 = vrot.lane.b32.xlu1 %v1495_v9, %s1393_s18 }
  0x76   : > { %667 = vrot.lane.b32.xlu0 %v1504_v12, %s1396_s19 }
  0x77   : > { %608 = vrot.lane.b32.xlu1 %v1501_v10, %s1393_s18 }
  0x7a   : > { %701 = vperm.xlu0 %1356, %v1513_v13  }
  0x7b   : > { %671 = vrot.lane.b32.xlu1 %v1478_v4, %s1396_s19 }
  0x7e   : > { %1360 = vset.pattern.permute.xlu0 %v1395_v19 }
  0x7f   : > { %679 = vrot.lane.b32.xlu1 %v1485_v7, %s1396_s19  ;;  %782 = vperm.xlu0 %1360, %v1467_v3  }
  0x83   : > { %790 = vperm.xlu1 %1357, %v1458_v1   ;;  %1361 = vset.pattern.permute.xlu0 %v1398_v20 }
  0x84   : > { %859 = vperm.xlu0 %1361, %v1458_v1  }
  0x87   : > { %521 = vrot.lane.b32.xlu1 %v1552_v17, %s1392_s17 }
  0x88   : > { %v1603_v21 = vpop.permute.xlu1 %335  ;;  %v1605_v22 = vpop.permute.xlu0 %340  ;;  %1358 = vset.pattern.permute.xlu1 %v1391_v16  ;;  %855 = vperm.xlu0 %1361, %v1453_v0  }
  0x8b   : > { %598 = vrot.lane.b32.xlu1 %v1504_v12, %s1393_s18 }
  0x8c   : > { %v1610_v23 = vpop.permute.xlu1 %375  ;;  %v1612_v24 = vpop.permute.xlu0 %330  ;;  %673 = vrot.lane.b32.xlu0 %v1529_v15, %s1396_s19 }
  0x8d   : > { %v345_v63 = vmul.f32 %v1612_v24, %v1504_v12  ;;  %v346_v2 = vmul.f32 %v1612_v24, %v1525_v14 }
  0x8f   : > { %632 = vperm.xlu1 %1358, %v1513_v13  }
  0x90   : > { %v1617_v25 = vpop.permute.xlu1 %383  ;;  %752 = vrot.lane.b32.xlu0 %v1525_v14, %s1397_s20 }
  0x91   : > { %v1621_v26 = vpop.permute.xlu0 %417 }
  0x93   : > { %677 = vrot.lane.b32.xlu1 %v1501_v10, %s1396_s19 }
  0x94   : > { %1359 = vset.pattern.permute.xlu1 %v1395_v19  ;;  %815 = vrot.lane.b32.xlu0 %v1495_v9, %s1399_s21 }
  0x95   : > { %v1628_v28 = vpop.permute.xlu1 %492  ;;  %v1630_v29 = vpop.permute.xlu0 %413 }
  0x97   : > { %748 = vrot.lane.b32.xlu1 %v1478_v4, %s1397_s20 }
  0x98   : > { %851 = vperm.xlu0 %1361, %v1467_v3  }
  0x99   : > { %v374_v31 = vpop.permute.xlu1 %373  ;;  %v1637_v32 = vpop.permute.xlu0 %409 }
  0x9b   : > { %786 = vperm.xlu1 %1359, %v1453_v0  }
  0x9c   : > { %894 = vrot.lane.b32.xlu0 %v1485_v7, %s1400_s22 }
  0x9d   : > { %v382_v34 = vpop.permute.xlu1 %381  ;;  %v372_v35 = vpop.permute.xlu0 %371 }
  0x9e   : > { %v388_v58 = vsel %vm385_vm10, %v374_v31, %v382_v34  ;;  %v392_v59 = vsel %vm385_vm10, %v382_v34, %v374_v31 }
  0x9f   : > { %596 = vrot.lane.b32.xlu1 %v1552_v17, %s1393_s18  ;;  %v400_v16 = vmul.f32 %v1720_v55, %v392_v59  ;;  %v401_v18 = vmul.f32 %v1723_v56, %v388_v58  ;;  %v1765_v58 = vsel %vm1694_vm6, 1.0, %v1387_v6 }
  0xa0   : > { %742 = vrot.lane.b32.xlu0 %v1552_v17, %s1397_s20  ;;  %1362 = vset.pattern.permute.xlu1 %v1401_v37 }
  0xa1   : > { %v1656_v39 = vpop.permute.xlu1 %450  ;;  %v1658_v40 = vpop.permute.xlu0 %405  ;;  %v424_v43 = vmul.f32 %v1630_v29, %v400_v16  ;;  %v425_v44 = vmul.f32 %v1630_v29, %v401_v18  ;;  %v347_v29 = vmul.f32 %v1603_v21, %v1495_v9 }
  0xa3   : > { %604 = vrot.lane.b32.xlu1 %v1529_v15, %s1393_s18 }
  0xa4   : > { %813 = vrot.lane.b32.xlu0 %v1504_v12, %s1399_s21 }
  0xa5   : > { %v1668_v45 = vpop.permute.xlu1 %458 }
  0xa6   : > { %v1670_v46 = vpop.permute.xlu0 %488  ;;  %v468_v51 = vsel %vm460_vm11, %v1668_v45, %v1656_v39 }
  0xa7   : > { %675 = vrot.lane.b32.xlu1 %v1525_v14, %s1396_s19 }
  0xa8   : > { %847 = vperm.xlu0 %1361, %v1513_v13  }
  0xa9   : > { %v1683_v49 = vpop.permute.xlu1 %569 }
  0xaa   : > { %v1685_v50 = vpop.permute.xlu0 %484 }
  0xab   : > { %746 = vrot.lane.b32.xlu1 %v1495_v9, %s1397_s20 }
  0xac   : > { %892 = vrot.lane.b32.xlu0 %v1501_v10, %s1400_s22 }
  0xad   : > { %1365 = vset.pattern.permute.xlu0 %v1401_v37 }
  0xae   : > { %v1706_v53 = vpop.permute.xlu1 %325 }
  0xaf   : > { %754 = vrot.lane.b32.xlu1 %v1501_v10, %s1397_s20  ;;  %v1714_v54 = vpop.permute.xlu0 %565 }
  0xb0   : > { %811 = vrot.lane.b32.xlu0 %v1552_v17, %s1399_s21 }
  0xb2   : > { %v380_v57 = vpop.permute.xlu1 %379 }
  0xb3   : > { %v387_v60 = vsel %vm385_vm10, %v372_v35, %v380_v57  ;;  %v391_v61 = vsel %vm385_vm10, %v380_v57, %v372_v35  ;;  %817 = vrot.lane.b32.xlu1 %v1478_v4, %s1399_s21  ;;  %v378_v62 = vpop.permute.xlu0 %377 }
  0xb4   : > { %v398_v5 = vmul.f32 %v1720_v55, %v391_v61  ;;  %v399_v11 = vmul.f32 %v1723_v56, %v387_v60  ;;  %882 = vrot.lane.b32.xlu0 %v1504_v12, %s1400_s22  ;;  %v348_v61 = vmul.f32 %v1603_v21, %v1501_v10 }
  0xb6   : > { %v422_v20 = vmul.f32 %v1637_v32, %v398_v5  ;;  %v423_v27 = vmul.f32 %v1637_v32, %v399_v11  ;;  %v449_v31 = vpop.permute.xlu1 %448  ;;  %v1760_v32 = vsel %vm1687_vm4, 1.0, %v1387_v6  ;;  %v956_v5 = vld [vmem:[%s2368_s2 + $0x8] sm:$0xff]  ;;  %v433_v11 = vadd.f32 %v425_v44, %v348_v61 }
  0xb7   : > { %825 = vrot.lane.b32.xlu1 %v1485_v7, %s1399_s21  ;;  %v455_v35 = vpop.permute.xlu0 %454 }
  0xb8   : > { %v1749_v24 = vadd.f32 %v422_v20, %v345_v63  ;;  %v1751_v34 = vadd.f32 %v423_v27, %v346_v2  ;;  %916 = vperm.xlu0 %1365, %v1513_v13  }
  0xba   : > { %v457_v57 = vpop.permute.xlu1 %456 }
  0xbb   : > { %v463_v59 = vsel %vm460_vm11, %v449_v31, %v457_v57  ;;  %v467_v60 = vsel %vm460_vm11, %v457_v57, %v449_v31  ;;  %928 = vperm.xlu1 %1362, %v1458_v1   ;;  %v432_v1 = vadd.f32 %v424_v43, %v347_v29  ;;  %v1786_v20 = vpop.permute.xlu0 %525  ;;  %v992_v43 = vld [vmem:[%s2370_s4 + $0x8] sm:$0xff]  ;;  %v994_v57 = vld [vmem:[%s2370_s4 + $0x18] sm:$0xff] }
  0xbc   : > { %v475_v63 = vmul.f32 %v1760_v32, %v467_v60  ;;  %v476_v2 = vmul.f32 %v1765_v58, %v463_v59  ;;  %888 = vrot.lane.b32.xlu0 %v1529_v15, %s1400_s22  ;;  %v1814_v60 = vadd.s32 1, %v322_v42 }
  0xbd   : > { %1367 = vset.pattern.permute.xlu0 %v1388_v8 }
  0xbe   : > { %v499_v16 = vmul.f32 %v1670_v46, %v475_v63  ;;  %v500_v18 = vmul.f32 %v1670_v46, %v476_v2  ;;  %v528_v21 = vpop.permute.xlu1 %527  ;;  %vm516_vm13 = vcmp.lt.s32.totalorder %v1814_v60, 16 }
  0xbf   : > { %665 = vrot.lane.b32.xlu1 %v1552_v17, %s1396_s19  ;;  %v1800_v46 = vpop.permute.xlu0 %561  ;;  %vm520_vm2 = vmand %vm1694_vm6, %vm516_vm13 }
  0xc0   : > { %v1790_v27 = vadd.f32 %v499_v16, %v432_v1  ;;  %v1792_v31 = vadd.f32 %v500_v18, %v433_v11  ;;  %1363 = vset.pattern.permute.xlu1 %v1395_v19  ;;  %966 = vperm.xlu0 %1367, %v956_v5   ;;  %v1809_v19 = vadd.s32 1, %v321_v41  ;;  %v389_v41 = vsel %vm385_vm10, %v1610_v23, %v1617_v25  ;;  %vm1894_vm6 = vmand %vm588_vm15, %vm590_vm3 }
  0xc1   : > { %v403_v11 = vmul.f32 %v1723_v56, %v389_v41  ;;  %v1886_v18 = vsel %vm520_vm2, 1.0, %v1387_v6  ;;  %vm1929_vm9 = vmand %vm1894_vm6, %vm361_vm5  ;;  %vm612_vm15 = vcmp.lt.s32.totalorder %v1635_v30, 1 }
  0xc2   : > { %v536_v44 = vpop.permute.xlu1 %535  ;;  %vm515_vm12 = vcmp.lt.s32.totalorder %v1809_v19, 16 }
  0xc3   : > { %744 = vrot.lane.b32.xlu1 %v1504_v12, %s1397_s20  ;;  %v1816_v29 = vpop.permute.xlu0 %610  ;;  %vm1844_vm1 = vmand %vm1687_vm4, %vm515_vm12  ;;  %vm591_vm4 = vcmp.lt.s32.totalorder %v1654_v38, 16 }
  0xc4   : > { %1002 = vperm.xlu0 %1367, %v992_v43   ;;  %v1883_v16 = vsel %vm1844_vm1, 1.0, %v1387_v6  ;;  %vm1909_vm8 = vmand %vm589_vm0, %vm591_vm4  ;;  %vm681_vm1 = vcmp.lt.s32.totalorder %v1635_v30, 127 }
  0xc5   : > { %vm664_vm0 = vmand %vm1909_vm8, %vm516_vm13 }
  0xc6   : > { %v1805_v59 = vpop.permute.xlu1 %644 }
  0xc7   : > { %778 = vperm.xlu1 %1363, %v1513_v13   ;;  %v1876_v5 = vpop.permute.xlu0 %523 }
  0xc8   : > { %1012 = vperm.xlu0 %1367, %v994_v57  }
  0xca   : > { %v370_v12 = vpop.permute.xlu1 %369 }
  0xcb   : > { %v386_v61 = vsel %vm385_vm10, %v370_v12, %v378_v62  ;;  %v390_v63 = vsel %vm385_vm10, %v378_v62, %v370_v12  ;;  %823 = vrot.lane.b32.xlu1 %v1501_v10, %s1399_s21  ;;  %v393_v10 = vsel %vm385_vm10, %v1617_v25, %v1610_v23  ;;  %v541_v12 = vsel %vm537_vm14, %v528_v21, %v536_v44  ;;  %vm595_vm10 = vmand %vm1909_vm8, %vm362_vm7 }
  0xcc   : > { %v396_v13 = vmul.f32 %v1720_v55, %v390_v63  ;;  %v397_v33 = vmul.f32 %v1723_v56, %v386_v61  ;;  %1364 = vset.pattern.permute.xlu1 %v1401_v37  ;;  %v402_v1 = vmul.f32 %v1720_v55, %v393_v10  ;;  %v477_v56 = vmul.f32 %v1760_v32, %v468_v51  ;;  %v955_v55 = vld [vmem:[%s2368_s2] sm:$0xff] }
  0xcd   : > { %v545_v61 = vsel %vm537_vm14, %v536_v44, %v528_v21  ;;  %v427_v44 = vmul.f32 %v1621_v26, %v403_v11  ;;  %v555_v41 = vmul.f32 %v1886_v18, %v541_v12  ;;  %v1960_v51 = vsel %vm595_vm10, 1.0, %v1387_v6 }
  0xce   : > { %v1849_v42 = vmul.f32 %v1658_v40, %v396_v13  ;;  %v1852_v62 = vmul.f32 %v1658_v40, %v397_v33  ;;  %v447_v2 = vpop.permute.xlu1 %446  ;;  %v464_v40 = vsel %vm460_vm11, %v1656_v39, %v1668_v45  ;;  %v349_v33 = vmul.f32 %v1605_v22, %v1478_v4 }
  0xcf   : > { %v462_v23 = vsel %vm460_vm11, %v447_v2, %v455_v35  ;;  %v466_v25 = vsel %vm460_vm11, %v455_v35, %v447_v2  ;;  %886 = vrot.lane.b32.xlu1 %v1478_v4, %s1400_s22  ;;  %v478_v57 = vmul.f32 %v1765_v58, %v464_v40  ;;  %v426_v21 = vmul.f32 %v1621_v26, %v402_v1 }
  0xd0   : > { %v473_v52 = vmul.f32 %v1760_v32, %v466_v25  ;;  %v474_v35 = vmul.f32 %v1765_v58, %v462_v23 }
  0xd1   : > { %v502_v26 = vmul.f32 %v1628_v28, %v478_v57  ;;  %v434_v25 = vadd.f32 %v426_v21, %v349_v33 }
  0xd2   : > { %v497_v39 = vmul.f32 %v1685_v50, %v473_v52  ;;  %v498_v45 = vmul.f32 %v1685_v50, %v474_v35  ;;  %v1890_v43 = vpop.permute.xlu1 %480  ;;  %v579_v52 = vmul.f32 %v1683_v49, %v555_v41 }
  0xd3   : > { %924 = vperm.xlu1 %1364, %v1453_v0   ;;  %v350_v0 = vmul.f32 %v1605_v22, %v1485_v7  ;;  %v1939_v7 = vpop.permute.xlu0 %557  ;;  %v501_v22 = vmul.f32 %v1628_v28, %v477_v56  ;;  %v1957_v28 = vsel %vm1929_vm9, 1.0, %v1387_v6 }
  0xd4   : > { %v1914_v63 = vadd.f32 %v497_v39, %v1749_v24  ;;  %v1917_v13 = vadd.f32 %v498_v45, %v1751_v34  ;;  %v554_v34 = vmul.f32 %v1883_v16, %v545_v61 }
  0xd5   : > { %v435_v40 = vadd.f32 %v427_v44, %v350_v0  ;;  %v509_v39 = vadd.f32 %v501_v22, %v434_v25 }
  0xd6   : > { %v534_v4 = vpop.permute.xlu1 %533 }
  0xd7   : > { %v540_v10 = vsel %vm537_vm14, %v1786_v20, %v534_v4  ;;  %v544_v37 = vsel %vm537_vm14, %v534_v4, %v1786_v20  ;;  %750 = vrot.lane.b32.xlu1 %v1529_v15, %s1397_s20  ;;  %v578_v20 = vmul.f32 %v1683_v49, %v554_v34  ;;  %v510_v45 = vadd.f32 %v502_v26, %v435_v40  ;;  %v1978_v33 = vpop.permute.xlu0 %636 }
  0xd8   : > { %v552_v2 = vmul.f32 %v1883_v16, %v544_v37  ;;  %v553_v23 = vmul.f32 %v1886_v18, %v540_v10 }
  0xd9   : > { %v586_v0 = vadd.f32 %v578_v20, %v509_v39  ;;  %v587_v21 = vadd.f32 %v579_v52, %v510_v45 }
  0xda   : > { %v576_v35 = vmul.f32 %v1714_v54, %v552_v2  ;;  %v577_v1 = vmul.f32 %v1714_v54, %v553_v23  ;;  %v603_v11 = vpop.permute.xlu1 %602 }
  0xdb   : > { %v616_v56 = vsel %vm612_vm15, %v603_v11, %v1816_v29  ;;  %v620_v57 = vsel %vm612_vm15, %v1816_v29, %v603_v11  ;;  %821 = vrot.lane.b32.xlu1 %v1525_v14, %s1399_s21  ;;  %v714_v41 = vpop.permute.xlu0 %713 }
  0xdc   : > { %v584_v49 = vadd.f32 %v576_v35, %v1790_v27  ;;  %v585_v12 = vadd.f32 %v577_v1, %v1792_v31  ;;  %v629_v54 = vmul.f32 %v1957_v28, %v620_v57  ;;  %v630_v61 = vmul.f32 %v1960_v51, %v616_v56 }
  0xde   : > { %v653_v44 = vmul.f32 %v1805_v59, %v629_v54  ;;  %v654_v24 = vmul.f32 %v1805_v59, %v630_v61  ;;  %v641_v29 = vpop.permute.xlu1 %640  ;;  %v344_v59 = vmul.f32 %v1706_v53, %v1529_v15 }
  0xdf   : > { %884 = vrot.lane.b32.xlu1 %v1495_v9, %s1400_s22  ;;  %v343_v9 = vmul.f32 %v1706_v53, %v1552_v17  ;;  %v2001_v37 = vpop.permute.xlu0 %709 }
  0xe0   : > { %v1984_v34 = vadd.f32 %v653_v44, %v586_v0  ;;  %v1986_v27 = vadd.f32 %v654_v24, %v587_v21  ;;  %v429_v23 = vadd.f32 %v1852_v62, %v344_v59  ;;  %v958_v62 = vld [vmem:[%s2368_s2 + $0x18] sm:$0xff]  ;;  %v2064_v44 = vsel %vm664_vm0, 1.0, %v1387_v6 }
  0xe1   : > { %v428_v2 = vadd.f32 %v1849_v42, %v343_v9  ;;  %vm896_vm0 = vcmp.lt.s32.totalorder %v1635_v30, 111 }
  0xe2   : > { %v445_v31 = vpop.permute.xlu1 %444 }
  0xe3   : > { %920 = vperm.xlu1 %1364, %v1467_v3   ;;  %v530_v35 = vpop.permute.xlu0 %529 }
  0xe6   : > { %v453_v4 = vpop.permute.xlu1 %452 }
  0xe7   : > { %v461_v22 = vsel %vm460_vm11, %v445_v31, %v453_v4  ;;  %v465_v26 = vsel %vm460_vm11, %v453_v4, %v445_v31  ;;  %819 = vrot.lane.b32.xlu1 %v1529_v15, %s1399_s21  ;;  %v607_v57 = vpop.permute.xlu0 %606  ;;  %vm663_vm11 = vmand %vm1894_vm6, %vm515_vm12  ;;  %v991_v4 = vld [vmem:[%s2370_s4] sm:$0xff] }
  0xe8   : > { %v471_v10 = vmul.f32 %v1760_v32, %v465_v26  ;;  %v472_v3 = vmul.f32 %v1765_v58, %v461_v22  ;;  %1366 = vset.pattern.permute.xlu1 %v1388_v8  ;;  %v2061_v21 = vsel %vm663_vm11, 1.0, %v1387_v6  ;;  %vm758_vm11 = vcmp.lt.s32.totalorder %v1635_v30, 113 }
  0xea   : > { %v495_v25 = vmul.f32 %v1890_v43, %v471_v10  ;;  %v496_v40 = vmul.f32 %v1890_v43, %v472_v3  ;;  %v532_v20 = vpop.permute.xlu1 %531 }
  0xeb   : > { %v539_v15 = vsel %vm537_vm14, %v1876_v5, %v532_v20  ;;  %v543_v53 = vsel %vm537_vm14, %v532_v20, %v1876_v5  ;;  %890 = vrot.lane.b32.xlu1 %v1525_v14, %s1400_s22  ;;  %v670_v24 = vpop.permute.xlu0 %669 }
  0xec   : > { %v2016_v8 = vadd.f32 %v495_v25, %v428_v2  ;;  %v2018_v32 = vadd.f32 %v496_v40, %v429_v23  ;;  %v550_v58 = vmul.f32 %v1883_v16, %v543_v53  ;;  %v551_v42 = vmul.f32 %v1886_v18, %v539_v15  ;;  %v993_v2 = vld [vmem:[%s2370_s4 + $0x10] sm:$0xff] }
  0xed   : > { %v732_v25 = vadd.s32 1, %v1648_v36  ;;  %v733_v40 = vadd.s32 1, %v1654_v38 }
  0xee   : > { %v574_v43 = vmul.f32 %v1800_v46, %v550_v58  ;;  %v575_v52 = vmul.f32 %v1800_v46, %v551_v42  ;;  %v601_v5 = vpop.permute.xlu1 %600 }
  0xef   : > { %976 = vperm.xlu1 %1366, %v958_v62   ;;  %v2077_v3 = vpop.permute.xlu0 %705  ;;  %vm734_vm2 = vcmp.ge.s32.totalorder %v732_v25, 0  ;;  %vm735_vm3 = vcmp.ge.s32.totalorder %v733_v40, 0  ;;  %vm737_vm4 = vcmp.lt.s32.totalorder %v733_v40, 16 }
  0xf0   : > { %v2028_v14 = vadd.f32 %v574_v43, %v1914_v63  ;;  %v2031_v1 = vadd.f32 %v575_v52, %v1917_v13  ;;  %v957_v63 = vld [vmem:[%s2368_s2 + $0x10] sm:$0xff]  ;;  %vm2106_vm8 = vmand %vm735_vm3, %vm737_vm4 }
  0xf1   : > { %vm741_vm10 = vmand %vm2106_vm8, %vm362_vm7 }
  0xf2   : > { %v609_v11 = vpop.permute.xlu1 %608  ;;  %v2131_v48 = vsel %vm741_vm10, 1.0, %v1387_v6 }
  0xf3   : > { %v615_v39 = vsel %vm612_vm15, %v601_v5, %v609_v11  ;;  %v619_v45 = vsel %vm612_vm15, %v609_v11, %v601_v5  ;;  %880 = vrot.lane.b32.xlu1 %v1552_v17, %s1400_s22  ;;  %v757_v15 = vpop.permute.xlu0 %756 }
  0xf4   : > { %v627_v46 = vmul.f32 %v1957_v28, %v619_v45  ;;  %v628_v56 = vmul.f32 %v1960_v51, %v615_v39 }
  0xf6   : > { %v651_v13 = vmul.f32 %v641_v29, %v627_v46  ;;  %v652_v54 = vmul.f32 %v641_v29, %v628_v56  ;;  %v672_v61 = vpop.permute.xlu1 %671 }
  0xf7   : > { %971 = vperm.xlu1 %1366, %v957_v63  }
  0xf8   : > { %v2052_v17 = vadd.f32 %v651_v13, %v584_v49  ;;  %v2054_v0 = vadd.f32 %v652_v54, %v585_v12 }
  0xfa   : > { %v680_v50 = vpop.permute.xlu1 %679 }
  0xfb   : > { %v685_v49 = vsel %vm681_vm1, %v672_v61, %v680_v50  ;;  %v689_v12 = vsel %vm681_vm1, %v680_v50, %v672_v61  ;;  %961 = vperm.xlu1 %1366, %v955_v55  }
  0xfc   : > { %v698_v29 = vmul.f32 %v2061_v21, %v685_v49  ;;  %v699_v31 = vmul.f32 %v2064_v44, %v689_v12 }
  0xfe   : > { %v722_v22 = vmul.f32 %v714_v41, %v698_v29  ;;  %v723_v26 = vmul.f32 %v714_v41, %v699_v31  ;;  %v791_v9 = vpop.permute.xlu1 %790 }
  0xff   : > { %997 = vperm.xlu1 %1366, %v991_v4  }
 0x100   : > { %v730_v59 = vadd.f32 %v722_v22, %v1984_v34  ;;  %v731_v10 = vadd.f32 %v723_v26, %v1986_v27 }
 0x102   : > { %v522_v23 = vpop.permute.xlu1 %521 }
 0x103   : > { %v538_v41 = vsel %vm537_vm14, %v522_v23, %v530_v35  ;;  %v542_v20 = vsel %vm537_vm14, %v530_v35, %v522_v23  ;;  %1007 = vperm.xlu1 %1366, %v993_v2   ;;  %vm736_vm14 = vcmp.lt.s32.totalorder %v732_v25, 16 }
 0x104   : > { %v548_v34 = vmul.f32 %v1883_v16, %v542_v20  ;;  %v549_v27 = vmul.f32 %v1886_v18, %v538_v41  ;;  %vm2102_vm6 = vmand %vm734_vm2, %vm736_vm14 }
 0x105   : > { %vm740_vm9 = vmand %vm2102_vm6, %vm361_vm5  ;;  %vm827_vm5 = vcmp.lt.s32.totalorder %v1635_v30, 112 }
 0x106   : > { %v572_v53 = vmul.f32 %v1939_v7, %v548_v34  ;;  %v573_v58 = vmul.f32 %v1939_v7, %v549_v27  ;;  %v599_v42 = vpop.permute.xlu1 %598  ;;  %v2128_v47 = vsel %vm740_vm9, 1.0, %v1387_v6  ;;  %vm878_vm7 = vmand %vm2102_vm6, %vm515_vm12  ;;  %vm1015_vm12 = vcmask 261120  }
 0x107   : > { %v614_v36 = vsel %vm612_vm15, %v599_v42, %v607_v57  ;;  %v618_v38 = vsel %vm612_vm15, %v607_v57, %v599_v42 }
 0x108   : > { %v580_v16 = vadd.f32 %v572_v53, %v2016_v8  ;;  %v581_v18 = vadd.f32 %v573_v58, %v2018_v32  ;;  %v625_v62 = vmul.f32 %v1957_v28, %v618_v38  ;;  %v626_v43 = vmul.f32 %v1960_v51, %v614_v36  ;;  %v668_v8 = vpop.permute.xlu0 %667 }
 0x10a   : > { %v649_v7 = vmul.f32 %v1978_v33, %v625_v62  ;;  %v650_v52 = vmul.f32 %v1978_v33, %v626_v43  ;;  %v633_v5 = vpop.permute.xlu1 %632 }
 0x10c   : > { %v657_v32 = vadd.f32 %v649_v7, %v2028_v14  ;;  %v658_v39 = vadd.f32 %v650_v52, %v2031_v1  ;;  %v2133_v56 = vpop.permute.xlu0 %701 }
 0x10e   : > { %v678_v33 = vpop.permute.xlu1 %677 }
 0x10f   : > { %v684_v45 = vsel %vm681_vm1, %v670_v24, %v678_v33  ;;  %v688_v46 = vsel %vm681_vm1, %v678_v33, %v670_v24 }
 0x110   : > { %v696_v14 = vmul.f32 %v2061_v21, %v684_v45  ;;  %v697_v1 = vmul.f32 %v2064_v44, %v688_v46  ;;  %v2145_v4 = vpop.permute.xlu0 %782 }
 0x112   : > { %v720_v57 = vmul.f32 %v2001_v37, %v696_v14  ;;  %v721_v63 = vmul.f32 %v2001_v37, %v697_v1  ;;  %v749_v13 = vpop.permute.xlu1 %748 }
 0x113   : > { %v762_v54 = vsel %vm758_vm11, %v749_v13, %v757_v15  ;;  %v766_v61 = vsel %vm758_vm11, %v757_v15, %v749_v13 }
 0x114   : > { %v728_v55 = vadd.f32 %v720_v57, %v2052_v17  ;;  %v729_v24 = vadd.f32 %v721_v63, %v2054_v0  ;;  %v775_v50 = vmul.f32 %v2128_v47, %v762_v54  ;;  %v776_v49 = vmul.f32 %v2131_v48, %v766_v61  ;;  %v2151_v2 = vpop.permute.xlu0 %859 }
 0x116   : > { %v799_v12 = vmul.f32 %v791_v9, %v775_v50  ;;  %v800_v29 = vmul.f32 %v791_v9, %v776_v49  ;;  %v787_v31 = vpop.permute.xlu1 %786 }
 0x118   : > { %v2147_v37 = vadd.f32 %v799_v12, %v730_v59  ;;  %v2149_v22 = vadd.f32 %v800_v29, %v731_v10  ;;  %v2163_v34 = vpop.permute.xlu0 %855 }
 0x11a   : > { %v597_v26 = vpop.permute.xlu1 %596 }
 0x11c   : > { %v674_v62 = vpop.permute.xlu0 %673 }
 0x11e   : > { %v605_v23 = vpop.permute.xlu1 %604 }
 0x11f   : > { %v613_v17 = vsel %vm612_vm15, %v597_v26, %v605_v23  ;;  %v617_v0 = vsel %vm612_vm15, %v605_v23, %v597_v26  ;;  %vm879_vm15 = vmand %vm2106_vm8, %vm516_vm13  ;;  %vm1137_vm13 = vcmask 7168  }
 0x120   : > { %v623_v25 = vmul.f32 %v1957_v28, %v617_v0  ;;  %v624_v9 = vmul.f32 %v1960_v51, %v613_v17  ;;  %v753_v33 = vpop.permute.xlu0 %752  ;;  %v2210_v17 = vsel %vm2106_vm8, 1.0, %v1387_v6 }
 0x122   : > { %v647_v40 = vmul.f32 %v633_v5, %v623_v25  ;;  %v648_v41 = vmul.f32 %v633_v5, %v624_v9  ;;  %v676_v59 = vpop.permute.xlu1 %675 }
 0x123   : > { %v683_v10 = vsel %vm681_vm1, %v668_v8, %v676_v59  ;;  %v687_v20 = vsel %vm681_vm1, %v676_v59, %v668_v8  ;;  %v2229_v59 = vsel %vm879_vm15, 1.0, %v1387_v6 }
 0x124   : > { %v2165_v27 = vadd.f32 %v647_v40, %v580_v16  ;;  %v2167_v15 = vadd.f32 %v648_v41, %v581_v18  ;;  %v694_v53 = vmul.f32 %v2061_v21, %v683_v10  ;;  %v695_v28 = vmul.f32 %v2064_v44, %v687_v20  ;;  %v816_v46 = vpop.permute.xlu0 %815 }
 0x125   : > { %v2225_v40 = vsel %vm878_vm7, 1.0, %v1387_v6 }
 0x126   : > { %v718_v51 = vmul.f32 %v2077_v3, %v694_v53  ;;  %v719_v58 = vmul.f32 %v2077_v3, %v695_v28  ;;  %v747_v42 = vpop.permute.xlu1 %746 }
 0x128   : > { %v2173_v36 = vadd.f32 %v718_v51, %v657_v32  ;;  %v2175_v38 = vadd.f32 %v719_v58, %v658_v39  ;;  %v2187_v57 = vpop.permute.xlu0 %851 }
 0x12a   : > { %v755_v43 = vpop.permute.xlu1 %754 }
 0x12b   : > { %v761_v16 = vsel %vm758_vm11, %v747_v42, %v755_v43  ;;  %v765_v18 = vsel %vm758_vm11, %v755_v43, %v747_v42 }
 0x12c   : > { %v773_v7 = vmul.f32 %v2128_v47, %v761_v16  ;;  %v774_v52 = vmul.f32 %v2131_v48, %v765_v18  ;;  %v895_v13 = vpop.permute.xlu0 %894 }
 0x12e   : > { %v797_v5 = vmul.f32 %v787_v31, %v773_v7  ;;  %v798_v8 = vmul.f32 %v787_v31, %v774_v52  ;;  %v818_v3 = vpop.permute.xlu1 %817 }
 0x130   : > { %v2183_v32 = vadd.f32 %v797_v5, %v728_v55  ;;  %v2185_v39 = vadd.f32 %v798_v8, %v729_v24  ;;  %v743_v50 = vpop.permute.xlu0 %742  ;;  %v2197_v24 = vsel %vm2102_vm6, 1.0, %v1387_v6 }
 0x132   : > { %v826_v45 = vpop.permute.xlu1 %825 }
 0x133   : > { %v831_v31 = vsel %vm827_vm5, %v818_v3, %v826_v45  ;;  %v835_v0 = vsel %vm827_vm5, %v826_v45, %v818_v3 }
 0x134   : > { %v814_v12 = vpop.permute.xlu0 %813  ;;  %v844_v25 = vmul.f32 %v2197_v24, %v831_v31  ;;  %v845_v41 = vmul.f32 %v2210_v17, %v835_v0 }
 0x136   : > { %v929_v14 = vpop.permute.xlu1 %928  ;;  %v868_v20 = vmul.f32 %v2151_v2, %v844_v25  ;;  %v869_v7 = vmul.f32 %v2151_v2, %v845_v41 }
 0x138   : > { %v2201_v26 = vpop.permute.xlu0 %847 }
 0x13a   : > { %v666_v1 = vpop.permute.xlu1 %665 }
 0x13b   : > { %v682_v53 = vsel %vm681_vm1, %v666_v1, %v674_v62  ;;  %v686_v51 = vsel %vm681_vm1, %v674_v62, %v666_v1  ;;  %v876_v62 = vadd.f32 %v868_v20, %v2147_v37  ;;  %v877_v37 = vadd.f32 %v869_v7, %v2149_v22  ;;  %v1369_v7 = vld [vmem:[%s1475_s12 + $0x30] sm:$0xff] }
 0x13c   : > { %v893_v19 = vpop.permute.xlu0 %892  ;;  %v692_v52 = vmul.f32 %v2061_v21, %v682_v53 }
 0x13e   : > { %v745_v63 = vpop.permute.xlu1 %744 }
 0x13f   : > { %v760_v35 = vsel %vm758_vm11, %v745_v63, %v753_v33  ;;  %v764_v9 = vsel %vm758_vm11, %v753_v33, %v745_v63  ;;  %v693_v33 = vmul.f32 %v2064_v44, %v686_v51  ;;  %v716_v44 = vmul.f32 %v2133_v56, %v692_v52 }
 0x140   : > { %v771_v58 = vmul.f32 %v2128_v47, %v760_v35  ;;  %v772_v42 = vmul.f32 %v2131_v48, %v764_v9  ;;  %v812_v8 = vpop.permute.xlu0 %811 }
 0x141   : > { %v717_v0 = vmul.f32 %v2133_v56, %v693_v33 }
 0x142   : > { %v2189_v54 = vpop.permute.xlu1 %778  ;;  %v795_v45 = vmul.f32 %v2145_v4, %v771_v58 }
 0x144   : > { %v803_v22 = vadd.f32 %v795_v45, %v2173_v36 }
 0x146   : > { %v824_v61 = vpop.permute.xlu1 %823 }
 0x147   : > { %v830_v28 = vsel %vm827_vm5, %v816_v46, %v824_v61  ;;  %v834_v43 = vsel %vm827_vm5, %v824_v61, %v816_v46  ;;  %v796_v46 = vmul.f32 %v2145_v4, %v772_v42 }
 0x148   : > { %v842_v5 = vmul.f32 %v2197_v24, %v830_v28  ;;  %v843_v1 = vmul.f32 %v2210_v17, %v834_v43 }
 0x149   : > { %v804_v25 = vadd.f32 %v796_v46, %v2175_v38 }
 0x14a   : > { %v887_v49 = vpop.permute.xlu1 %886  ;;  %v867_v41 = vmul.f32 %v2163_v34, %v843_v1 }
 0x14b   : > { %v900_v60 = vsel %vm896_vm0, %v887_v49, %v895_v13  ;;  %v904_v11 = vsel %vm896_vm0, %v895_v13, %v887_v49  ;;  %v866_v49 = vmul.f32 %v2163_v34, %v842_v5 }
 0x14c   : > { %v913_v16 = vmul.f32 %v2225_v40, %v900_v60  ;;  %v914_v18 = vmul.f32 %v2229_v59, %v904_v11  ;;  %v875_v5 = vadd.f32 %v867_v41, %v2185_v39 }
 0x14e   : > { %v2191_v29 = vpop.permute.xlu1 %924  ;;  %v937_v2 = vmul.f32 %v929_v14, %v913_v16  ;;  %v938_v13 = vmul.f32 %v929_v14, %v914_v18  ;;  %v1368_v16 = vld [vmem:[%s1475_s12 + $0x38] sm:$0xff] }
 0x150   : > { %v946_v60 = vadd.f32 %v938_v13, %v877_v37  ;;  %v945_v11 = vadd.f32 %v937_v2, %v876_v62 }
 0x152   : > { %v751_v55 = vpop.permute.xlu1 %750  ;;  %v954_v18 = vadd.f32 %v1368_v16, %v946_v60  ;;  %v953_v52 = vadd.f32 %v1369_v7, %v945_v11 }
 0x153   : > { %v759_v14 = vsel %vm758_vm11, %v743_v50, %v751_v55 }
 0x156   : > { %v822_v23 = vpop.permute.xlu1 %821 }
 0x157   : > { %v833_v63 = vsel %vm827_vm5, %v822_v23, %v814_v12  ;;  %v829_v21 = vsel %vm827_vm5, %v814_v12, %v822_v23  ;;  %v763_v12 = vsel %vm758_vm11, %v751_v55, %v743_v50  ;;  %v769_v50 = vmul.f32 %v2128_v47, %v759_v14  ;;  %v1370_v14 = vld [vmem:[%s1475_s12 + $0x18] sm:$0xff] }
 0x158   : > { %v841_v23 = vmul.f32 %v2210_v17, %v833_v63  ;;  %v840_v35 = vmul.f32 %v2197_v24, %v829_v21  ;;  %v770_v36 = vmul.f32 %v2131_v48, %v763_v12 }
 0x159   : > { %v793_v45 = vmul.f32 %v2189_v54, %v769_v50 }
 0x15a   : > { %v885_v10 = vpop.permute.xlu1 %884  ;;  %v865_v20 = vmul.f32 %v2187_v57, %v841_v23  ;;  %v864_v47 = vmul.f32 %v2187_v57, %v840_v35  ;;  %v1371_v23 = vld [vmem:[%s1475_s12 + $0x20] sm:$0xff] }
 0x15b   : > { %v899_v61 = vsel %vm896_vm0, %v885_v10, %v893_v19  ;;  %v903_v4 = vsel %vm896_vm0, %v893_v19, %v885_v10  ;;  %v883_v19 = vpop.permute.xlu0 %882  ;;  %v874_v10 = vadd.f32 %v866_v49, %v2183_v32 }
 0x15c   : > { %v911_v9 = vmul.f32 %v2225_v40, %v899_v61  ;;  %v912_v56 = vmul.f32 %v2229_v59, %v903_v4  ;;  %v873_v46 = vadd.f32 %v865_v20, %v804_v25  ;;  %v872_v2 = vadd.f32 %v864_v47, %v803_v22  ;;  %v1372_v25 = vld [vmem:[%s1475_s12 + $0x28] sm:$0xff] }
 0x15e   : > { %v921_v3 = vpop.permute.xlu1 %920  ;;  %v935_v48 = vmul.f32 %v2191_v29, %v911_v9  ;;  %v936_v42 = vmul.f32 %v2191_v29, %v912_v56  ;;  %v724_v29 = vadd.f32 %v716_v44, %v2165_v27 }
 0x15f   : > { %v917_v28 = vpop.permute.xlu0 %916 }
 0x160   : > { %v943_v13 = vadd.f32 %v935_v48, %v874_v10  ;;  %v944_v39 = vadd.f32 %v936_v42, %v875_v5  ;;  %v990_v42 = vld [vmem:[%s2369_s3 + $0x18] sm:$0xff] }
 0x162   : > { %v820_v31 = vpop.permute.xlu1 %819  ;;  %v951_v22 = vadd.f32 %v1371_v23, %v943_v13  ;;  %v952_v35 = vadd.f32 %v1372_v25, %v944_v39 }
 0x163   : > { %v828_v38 = vsel %vm827_vm5, %v812_v8, %v820_v31  ;;  %v832_v34 = vsel %vm827_vm5, %v820_v31, %v812_v8  ;;  %v889_v37 = vpop.permute.xlu0 %888 }
 0x164   : > { %v838_v43 = vmul.f32 %v2197_v24, %v828_v38  ;;  %v839_v8 = vmul.f32 %v2210_v17, %v832_v34  ;;  %v794_v24 = vmul.f32 %v2189_v54, %v770_v36  ;;  %v725_v17 = vadd.f32 %v717_v0, %v2167_v15 }
 0x165   : > { %v801_v54 = vadd.f32 %v793_v45, %v724_v29 }
 0x166   : > { %v891_v55 = vpop.permute.xlu1 %890  ;;  %v862_v21 = vmul.f32 %v2201_v26, %v838_v43  ;;  %v802_v31 = vadd.f32 %v794_v24, %v725_v17 }
 0x167   : > { %v898_v53 = vsel %vm896_vm0, %v883_v19, %v891_v55  ;;  %v902_v32 = vsel %vm896_vm0, %v891_v55, %v883_v19  ;;  %v1373_v19 = vld [vmem:[%s1475_s12 + $0x10] sm:$0xff]  ;;  %v1374_v55 = vld [vmem:[%s1475_s12 + $0x8] sm:$0xff] }
 0x168   : > { %v909_v51 = vmul.f32 %v2225_v40, %v898_v53  ;;  %v910_v58 = vmul.f32 %v2229_v59, %v902_v32  ;;  %v1375_v53 = vld [vmem:[%s1475_s12] sm:$0xff] }
 0x16a   : > { %v933_v57 = vmul.f32 %v921_v3, %v909_v51  ;;  %v934_v62 = vmul.f32 %v921_v3, %v910_v58  ;;  %v977_v33 = vpop.permute.xlu1 %976  ;;  %v863_v3 = vmul.f32 %v2201_v26, %v839_v8  ;;  %v870_v26 = vadd.f32 %v862_v21, %v801_v54  ;;  %v989_v51 = vld [vmem:[%s2369_s3 + $0x10] sm:$0xff]  ;;  %v988_v58 = vld [vmem:[%s2369_s3 + $0x8] sm:$0xff] }
 0x16b   : > { %v986_v1 = vadd.f32 %v977_v33, %v954_v18  ;;  %v985_v63 = vadd.f32 %v977_v33, %v953_v52 }
 0x16c   : > { %v942_v61 = vadd.f32 %v934_v62, %v873_v46  ;;  %v941_v49 = vadd.f32 %v933_v57, %v872_v2  ;;  %v871_v9 = vadd.f32 %v863_v3, %v802_v31 }
 0x16d   : > { %1052 = vmatprep.subr.mxu0 %v986_v1  ;;  %1310 = vmatprep.subr.mxu1 %v986_v1 }
 0x16e   : > { %1053 = vmatpush1.msra.mxu0 %v985_v63  ;;  %1314 = vmatpush1.msra.mxu1 %v985_v63  ;;  %v881_v27 = vpop.permute.xlu1 %880  ;;  %v950_v12 = vadd.f32 %v1370_v14, %v942_v61  ;;  %v949_v41 = vadd.f32 %v1373_v19, %v941_v49 }
 0x16f   : > { %v897_v44 = vsel %vm896_vm0, %v881_v27, %v889_v37  ;;  %v901_v4 = vsel %vm896_vm0, %v889_v37, %v881_v27 }
 0x170   : > { %v907_v15 = vmul.f32 %v2225_v40, %v897_v44  ;;  %v908_v0 = vmul.f32 %v2229_v59, %v901_v4  ;;  %v967_v40 = vpop.permute.xlu0 %966 }
 0x171   : > { %v982_v36 = vadd.f32 %v967_v40, %v950_v12  ;;  %v981_v38 = vadd.f32 %v967_v40, %v949_v41 }
 0x172   : > { %v931_v56 = vmul.f32 %v917_v28, %v907_v15  ;;  %v932_v60 = vmul.f32 %v917_v28, %v908_v0  ;;  %v972_v30 = vpop.permute.xlu1 %971  ;;  %v987_v28 = vld [vmem:[%s2369_s3] sm:$0xff] }
 0x173   : > { %v983_v11 = vadd.f32 %v972_v30, %v951_v22  ;;  %v984_v10 = vadd.f32 %v972_v30, %v952_v35 }
 0x174   : > { %v940_v50 = vadd.f32 %v932_v60, %v871_v9  ;;  %v939_v59 = vadd.f32 %v931_v56, %v870_v26  ;;  %v1003_v16 = vpop.permute.xlu0 %1002 }
 0x175   : > { %1054 = vmatprep.subr.mxu0 %v984_v10  ;;  %1311 = vmatprep.subr.mxu1 %v984_v10 }
 0x176   : > { %1055 = vmatpush1.msra.mxu0 %v983_v11  ;;  %1315 = vmatpush1.msra.mxu1 %v983_v11  ;;  %v948_v20 = vadd.f32 %v1374_v55, %v940_v50  ;;  %v962_v34 = vpop.permute.xlu1 %961  ;;  %v947_v32 = vadd.f32 %v1375_v53, %v939_v59 }
 0x177   : > { %1056 = vmatprep.subr.mxu0 %v982_v36  ;;  %1312 = vmatprep.subr.mxu1 %v982_v36 }
 0x178   : > { %v979_v47 = vadd.f32 %v962_v34, %v947_v32  ;;  %v980_v48 = vadd.f32 %v962_v34, %v948_v20  ;;  %1057 = vmatpush1.msra.mxu0 %v981_v38  ;;  %1316 = vmatpush1.msra.mxu1 %v981_v38  ;;  %v1013_v62 = vpop.permute.xlu0 %1012 }
 0x17a   : > { %1058 = vmatprep.subr.mxu0 %v980_v48  ;;  %1313 = vmatprep.subr.mxu1 %v980_v48  ;;  %v998_v43 = vpop.permute.xlu1 %997 }
 0x17b   : > { %1059 = vmatpush1.msra.mxu0 %v979_v47  ;;  %1317 = vmatpush1.msra.mxu1 %v979_v47 }
 0x17c   : > { %1300 = vmatmul.mubr.msk.f32.vlgmr.msra.gmra.mxu0 %vm1015_vm12, %v987_v28  ;;  %1302 = vmatmul.mubr.msk.f32.vlgmr.msra.gmra.mxu1 %vm1015_vm12, %v989_v51 }
 0x17d   : > { %1098 = vmatprep.mubr.f32.mxu0 %v1387_v6  ;;  %1110 = vmatprep.mubr.f32.mxu1 %v1387_v6 }
 0x17e   : > { %v1008_v18 = vpop.permute.xlu1 %1007 }
 0x180   : > { %1301 = vmatmul.mubr.msk.f32.gmra.mxu0 %vm1015_vm12, %v988_v58  ;;  %1303 = vmatmul.mubr.msk.f32.gmra.mxu1 %vm1015_vm12, %v990_v42 }
 0x23c   : > { %v1094_v6 = vpop.f32.mrf.mxu0  ;;  %v1106_v7 = vpop.f32.mrf.mxu1 }
 0x23d   : > { %v1095_v52 = vadd.f32 %v1094_v6, %v998_v43  ;;  %v1107_v5 = vadd.f32 %v1106_v7, %v1008_v18 }
 0x23e   : > { %v1096_v8 = vpop.f32.mrf.mxu0  ;;  %v1108_v57 = vpop.f32.mrf.mxu1 }
 0x23f   : > { %1117 = vst [vmem:[%s2338_s8] sm:$0xff] %v1095_v52  ;;  %1121 = vst [vmem:[%s2338_s8 + $0x20] sm:$0xff] %v1107_v5  ;;  %v1097_v33 = vadd.f32 %v1096_v8, %v998_v43  ;;  %v1109_v45 = vadd.f32 %v1108_v57, %v1008_v18  ;;  %v1142_v3 = vmul.f32 %v1095_v52, %v1095_v52 }
 0x240   : > { %v1100_v46 = vpop.f32.mrf.mxu0  ;;  %v1112_v1 = vpop.f32.mrf.mxu1  ;;  %v1146_v0 = vmul.f32 %v1107_v5, %v1107_v5 }
 0x241   : > { %1118 = vst [vmem:[%s2338_s8 + $0x8] sm:$0xff] %v1097_v33  ;;  %1122 = vst [vmem:[%s2338_s8 + $0x28] sm:$0xff] %v1109_v45  ;;  %v1101_v63 = vadd.f32 %v1100_v46, %v1003_v16  ;;  %v1113_v29 = vadd.f32 %v1112_v1, %v1013_v62  ;;  %v1131_v24 = vadd.f32 %v1109_v45, %v1107_v5 }
 0x242   : > { %v1102_v2 = vpop.f32.mrf.mxu0  ;;  %v1114_v13 = vpop.f32.mrf.mxu1  ;;  %v1125_v21 = vadd.f32 %v1097_v33, %v1095_v52  ;;  %v1143_v61 = vmul.f32 %v1097_v33, %v1097_v33  ;;  %v1147_v44 = vmul.f32 %v1109_v45, %v1109_v45 }
 0x243   : > { %1119 = vst [vmem:[%s2338_s8 + $0x10] sm:$0xff] %v1101_v63  ;;  %1123 = vst [vmem:[%s2338_s8 + $0x30] sm:$0xff] %v1113_v29  ;;  %v1103_v39 = vadd.f32 %v1102_v2, %v1003_v16  ;;  %v1115_v17 = vadd.f32 %v1114_v13, %v1013_v62  ;;  %1132 = vadd.xlane.f32.xlu0 %v1131_v24  ;;  %v1144_v54 = vmul.f32 %v1101_v63, %v1101_v63 }
 0x244   : > { %1126 = vadd.xlane.f32.xlu1 %v1125_v21  ;;  %v1150_v37 = vadd.f32 %v1143_v61, %v1142_v3  ;;  %v1148_v26 = vmul.f32 %v1113_v29, %v1113_v29  ;;  %v1156_v14 = vadd.f32 %v1147_v44, %v1146_v0 }
 0x245   : > { %1120 = vst [vmem:[%s2338_s8 + $0x18] sm:$0xff] %v1103_v39  ;;  %1124 = vst [vmem:[%s2338_s8 + $0x38] sm:$0xff] %v1115_v17  ;;  %v1134_v49 = vadd.f32 %v1115_v17, %v1113_v29  ;;  %v1145_v27 = vmul.f32 %v1103_v39, %v1103_v39  ;;  %v1128_v4 = vadd.f32 %v1103_v39, %v1101_v63 }
 0x246   : > { %v1149_v31 = vmul.f32 %v1115_v17, %v1115_v17 }
 0x247   : > { %1151 = vadd.xlane.f32.xlu0 %v1150_v37  ;;  %v1153_v15 = vadd.f32 %v1145_v27, %v1144_v54 }
 0x248   : > { %1135 = vadd.xlane.f32.xlu1 %v1134_v49  ;;  %v1159_v12 = vadd.f32 %v1149_v31, %v1148_v26 }
 0x24b   : > { %1129 = vadd.xlane.f32.xlu0 %v1128_v4 }
 0x24c   : > { %1154 = vadd.xlane.f32.xlu1 %v1153_v15 }
 0x24f   : > { %1157 = vadd.xlane.f32.xlu0 %v1156_v14 }
 0x250   : > { %1160 = vadd.xlane.f32.xlu1 %v1159_v12 }
 0x2cc   : > { %v1133_v23 = vpop.xlane.xlu0 %1132 }
 0x2cd   : > { %1140 = vst.msk [vmem:[%s298_s13 + $0x10] sm:$0xff] %vm1137_vm13, %v1133_v23  ;;  %v1127_v22 = vpop.xlane.xlu1 %1126 }
 0x2ce   : > { %1138 = vst.msk [vmem:[%s298_s13] sm:$0xff] %vm1137_vm13, %v1127_v22 }
 0x2d0   : > { %v1152_v25 = vpop.xlane.xlu0 %1151 }
 0x2d1   : > { %1162 = vst.msk [vmem:[%s303_s16] sm:$0xff] %vm1137_vm13, %v1152_v25  ;;  %v1136_v35 = vpop.xlane.xlu1 %1135 }
 0x2d2   : > { %1141 = vst.msk [vmem:[%s298_s13 + $0x18] sm:$0xff] %vm1137_vm13, %v1136_v35 }
 0x2d4   : > { %v1130_v9 = vpop.xlane.xlu0 %1129 }
 0x2d5   : > { %1139 = vst.msk [vmem:[%s298_s13 + $0x8] sm:$0xff] %vm1137_vm13, %v1130_v9  ;;  %v1155_v19 = vpop.xlane.xlu1 %1154 }
 0x2d6   : > { %1163 = vst.msk [vmem:[%s303_s16 + $0x8] sm:$0xff] %vm1137_vm13, %v1155_v19 }
 0x2d8   : > { %v1158_v41 = vpop.xlane.xlu0 %1157 }
 0x2d9   : > { %1164 = vst.msk [vmem:[%s303_s16 + $0x10] sm:$0xff] %vm1137_vm13, %v1158_v41  ;;  %v1161_v56 = vpop.xlane.xlu1 %1160 }
 0x2da   : > { %1165 = vst.msk [vmem:[%s303_s16 + $0x18] sm:$0xff] %vm1137_vm13, %v1161_v56 }
 0x2db PF: > { %s18_s24 = sadd.s32 1, %s1382_s24  }
 0x2dc   : > { %p15_p4 = scmp.ge.s32.totalorder %s18_s24, 4  }
 0x2de   :  { %17 = sbr.rel (!%p15_p4) target bundleno = 1 (0x1), region = 94 }

// kernel: _lambda_.5
= control target key start
LH: loop header
LB: loop body
LE: loop exit
PB: predicated region body
PF: predicated region fallthrough
CT: control target
= control target key end

     0   :  { %s1421_s30 = smov 0   ;;  %s1930_s0 = inlined_call_operand.vmem [shape: f32[2,32,256], index: 0, kind: input, shape index: {}, may-alias: {0,7}]   ;;  %s1931_s1 = inlined_call_operand.vmem [shape: f32[32,1], index: 1, kind: input, shape index: {}]   ;;  %s1932_s2 = inlined_call_operand.vmem [shape: f32[32,1], index: 2, kind: input, shape index: {}]   ;;  %s1933_s3 = inlined_call_operand.vmem [shape: f32[32,32], index: 3, kind: input, shape index: {}]   ;;  %s1934_s4 = inlined_call_operand.vmem [shape: f32[32,32], index: 4, kind: input, shape index: {}]   ;;  %s1935_s5 = inlined_call_operand.vmem [shape: f32[32,32], index: 5, kind: input, shape index: {}]   ;;  %s1936_s6 = inlined_call_operand.vmem [shape: f32[32,1], index: 6, kind: input, shape index: {}]   ;;  %s1937_s7 = inlined_call_operand.vmem [shape: f32[2,32,256], index: 7, kind: output, shape index: {0}, may-alias: {0,7}]   ;;  %s1938_s8 = inlined_call_operand.vmem [shape: f32[2,32,1], index: 8, kind: output, shape index: {1}]   ;;  %s1939_s9 = inlined_call_operand.vmem [shape: f32[2,32,1], index: 9, kind: output, shape index: {2}]  }
   0x1 LB: > { %s1302_s10 = sadd.s32 4294967295, %s1364_s30   ;;  %p1306_p0 = scmp.ge.s32.totalorder %s1364_s30, 1  ;;  %s1364_s30 = sphi %s1421_s30, %s20_s30  }
   0x2   : > { %p292_p1 = scmp.lt.s32.totalorder %s1364_s30, 3 }
   0x4   : > { %p293_p2 = pnand %p1306_p0, %p292_p1 }
   0x6   : > { %296 = sbr.rel (%p293_p2) target bundleno = 1146 (0x47a), region = 48 }
   0xb   : > { %v368_v0 = vld [vmem:[%s1931_s1 + $0x10] sm:$0xff]  ;;  %v366_v1 = vld [vmem:[%s1931_s1] sm:$0xff]  ;;  %v1366_v2 = vmov 0   ;;  %v367_v4 = vld [vmem:[%s1931_s1 + $0x8] sm:$0xff]  ;;  %p338_p3 = scmp.lt.s32.totalorder %s1302_s10, 1  ;;  %s1367_s12 = smov 8   ;;  %v430_v44 = vlaneseq }
   0xc   : > { %1355 = vset.pattern.permute.xlu1 %v1366_v2  ;;  %1354 = vset.pattern.permute.xlu0 %v1366_v2  ;;  %v398_v3 = vld [vmem:[%s1932_s2] sm:$0xff]  ;;  %v369_v5 = vld [vmem:[%s1931_s1 + $0x18] sm:$0xff]  ;;  %v399_v6 = vld [vmem:[%s1932_s2 + $0x8] sm:$0xff]  ;;  %s1368_s13 = smov 120   ;;  %s1369_s14 = smov 64   ;;  %vm776_vm14 = vcmask 261120  }
   0xd   : > { %382 = vperm.xlu1 %1355, %v368_v0   ;;  %372 = vperm.xlu0 %1354, %v366_v1   ;;  %v401_v7 = vld [vmem:[%s1932_s2 + $0x18] sm:$0xff]  ;;  %v400_v8 = vld [vmem:[%s1932_s2 + $0x10] sm:$0xff]  ;;  %s1952_s10 = smov (!%p338_p3, %s1302_s10), 1  ;;  %v1517_v47 = vand.u32 127, %v430_v44 }
   0xe   : > { %s1329_s27 = sshll.u32 %s1952_s10, 6 }
   0xf   : > { %s1461_s11 = scalar_lea.vmem %s1930_s0, %s1329_s27  ;;  %v432_v49 = vadd.s32 128, %v1517_v47  ;;  %v433_v51 = vand.u32 15, %v1517_v47  ;;  %vm476_vm0 = vcmp.lt.s32.totalorder %v1517_v47, 120  ;;  %vm451_vm1 = vcmp.lt.s32.totalorder %v1517_v47, 8 }
  0x10   : > { %v358_v11 = vld [vmem:[%s1461_s11] sm:$0xff]  ;;  %v359_v13 = vld [vmem:[%s1461_s11 + $0x8] sm:$0xff]  ;;  %v360_v16 = vld [vmem:[%s1461_s11 + $0x10] sm:$0xff]  ;;  %vm573_vm4 = vcmp.lt.s32.totalorder %v1517_v47, 64 }
  0x11   : > { %404 = vperm.xlu1 %1355, %v398_v3   ;;  %377 = vperm.xlu0 %1354, %v367_v4   ;;  %v361_v20 = vld [vmem:[%s1461_s11 + $0x18] sm:$0xff]  ;;  %v362_v26 = vld [vmem:[%s1461_s11 + $0x20] sm:$0xff]  ;;  %v363_v29 = vld [vmem:[%s1461_s11 + $0x28] sm:$0xff]  ;;  %v434_v52 = vand.u32 15, %v432_v49  ;;  %vm1523_vm2 = vcmp.lt.s32.totalorder %v433_v51, 8 }
  0x12   : > { %v364_v33 = vld [vmem:[%s1461_s11 + $0x30] sm:$0xff]  ;;  %v365_v37 = vld [vmem:[%s1461_s11 + $0x38] sm:$0xff] }
  0x13   : > { %vm1527_vm3 = vcmp.lt.s32.totalorder %v434_v52, 8 }
  0x15   : > { %387 = vperm.xlu1 %1355, %v369_v5   ;;  %409 = vperm.xlu0 %1354, %v399_v6  }
  0x19   : > { %419 = vperm.xlu1 %1355, %v401_v7   ;;  %414 = vperm.xlu0 %1354, %v400_v8  }
  0x88   : > { %v383_v9 = vpop.permute.xlu1 %382  ;;  %v373_v10 = vpop.permute.xlu0 %372 }
  0x89   : > { %v390_v12 = vmul.f32 %v373_v10, %v358_v11  ;;  %v391_v18 = vmul.f32 %v373_v10, %v359_v13  ;;  %v394_v28 = vmul.f32 %v383_v9, %v362_v26  ;;  %v395_v32 = vmul.f32 %v383_v9, %v363_v29 }
  0x8c   : > { %v405_v14 = vpop.permute.xlu1 %404  ;;  %v378_v15 = vpop.permute.xlu0 %377 }
  0x8d   : > { %v1466_v17 = vadd.f32 %v405_v14, %v390_v12  ;;  %v392_v19 = vmul.f32 %v378_v15, %v360_v16  ;;  %v1471_v22 = vadd.f32 %v405_v14, %v391_v18  ;;  %v393_v24 = vmul.f32 %v378_v15, %v361_v20 }
  0x8f   : > { %1944 = vst [vmem:[#allocation2_spill] sm:$0xff] %v1466_v17  ;;  %435 = vrot.lane.b32.xlu0 %v1466_v17, %s1367_s12 }
  0x90   : > { %v410_v21 = vpop.permute.xlu0 %409  ;;  %v388_v30 = vpop.permute.xlu1 %387 }
  0x91   : > { %v1473_v23 = vadd.f32 %v410_v21, %v392_v19  ;;  %v1479_v25 = vadd.f32 %v410_v21, %v393_v24  ;;  %v396_v36 = vmul.f32 %v388_v30, %v364_v33  ;;  %v397_v39 = vmul.f32 %v388_v30, %v365_v37 }
  0x93   : > { %437 = vrot.lane.b32.xlu1 %v1473_v23, %s1367_s12  ;;  %443 = vrot.lane.b32.xlu0 %v1471_v22, %s1367_s12 }
  0x94   : > { %v415_v27 = vpop.permute.xlu0 %414  ;;  %v420_v35 = vpop.permute.xlu1 %419 }
  0x95   : > { %v1488_v31 = vadd.f32 %v415_v27, %v394_v28  ;;  %v1494_v34 = vadd.f32 %v415_v27, %v395_v32  ;;  %v1500_v38 = vadd.f32 %v420_v35, %v396_v36  ;;  %v1505_v40 = vadd.f32 %v420_v35, %v397_v39 }
  0x97   : > { %445 = vrot.lane.b32.xlu1 %v1479_v25, %s1367_s12  ;;  %460 = vrot.lane.b32.xlu0 %v1466_v17, %s1368_s13 }
  0x9b   : > { %462 = vrot.lane.b32.xlu1 %v1473_v23, %s1368_s13  ;;  %468 = vrot.lane.b32.xlu0 %v1471_v22, %s1368_s13 }
  0x9f   : > { %470 = vrot.lane.b32.xlu1 %v1479_v25, %s1368_s13  ;;  %439 = vrot.lane.b32.xlu0 %v1488_v31, %s1367_s12 }
  0xa3   : > { %447 = vrot.lane.b32.xlu1 %v1494_v34, %s1367_s12  ;;  %464 = vrot.lane.b32.xlu0 %v1488_v31, %s1368_s13 }
  0xa7   : > { %472 = vrot.lane.b32.xlu1 %v1494_v34, %s1368_s13  ;;  %441 = vrot.lane.b32.xlu0 %v1500_v38, %s1367_s12 }
  0xab   : > { %449 = vrot.lane.b32.xlu1 %v1505_v40, %s1367_s12  ;;  %466 = vrot.lane.b32.xlu0 %v1500_v38, %s1368_s13 }
  0xaf   : > { %474 = vrot.lane.b32.xlu1 %v1505_v40, %s1368_s13  ;;  %s1902_s13 = scalar_lea.vmem %s1937_s7, %s1329_s27  ;;  %s1331_s27 = sshll.u32 %s1952_s10, 5 }
  0xb0   : > { %s352_s16 = scalar_lea.vmem %s1938_s8, %s1331_s27  ;;  %s357_s19 = scalar_lea.vmem %s1939_s9, %s1331_s27 }
  0xb3   : > { %559 = vrot.lane.b32.xlu1 %v1473_v23, %s1369_s14 }
  0xb7   : > { %567 = vrot.lane.b32.xlu1 %v1479_v25, %s1369_s14 }
  0xbb   : > { %569 = vrot.lane.b32.xlu1 %v1494_v34, %s1369_s14 }
 0x101   : > { %v436_v41 = vpop.permute.xlu0 %435 }
 0x105   : > { %v438_v42 = vpop.permute.xlu1 %437  ;;  %v444_v43 = vpop.permute.xlu0 %443 }
 0x106   : > { %v452_v63 = vsel %vm451_vm1, %v436_v41, %v444_v43  ;;  %v456_v0 = vsel %vm451_vm1, %v444_v43, %v436_v41 }
 0x109   : > { %v446_v45 = vpop.permute.xlu1 %445  ;;  %v461_v46 = vpop.permute.xlu0 %460 }
 0x10a   : > { %v453_v1 = vsel %vm451_vm1, %v438_v42, %v446_v45  ;;  %v457_v2 = vsel %vm451_vm1, %v446_v45, %v438_v42 }
 0x10d   : > { %v463_v48 = vpop.permute.xlu1 %462  ;;  %v469_v50 = vpop.permute.xlu0 %468 }
 0x10e   : > { %v477_v59 = vsel %vm476_vm0, %v461_v46, %v469_v50  ;;  %v481_v60 = vsel %vm476_vm0, %v469_v50, %v461_v46 }
 0x10f   : > { %v491_v3 = vsel %vm1523_vm2, %v481_v60, %v452_v63  ;;  %v492_v4 = vsel %vm1527_vm3, %v477_v59, %v456_v0 }
 0x110   : > { %v499_v15 = vsub.f32 %v1466_v17, %v491_v3  ;;  %v500_v19 = vsub.f32 %v1471_v22, %v492_v4 }
 0x111   : > { %v471_v53 = vpop.permute.xlu1 %470  ;;  %v440_v54 = vpop.permute.xlu0 %439 }
 0x112   : > { %v478_v61 = vsel %vm476_vm0, %v463_v48, %v471_v53  ;;  %v482_v62 = vsel %vm476_vm0, %v471_v53, %v463_v48  ;;  %v507_v26 = vand.u32 2147483647, %v499_v15  ;;  %v508_v29 = vand.u32 2147483647, %v500_v19 }
 0x113   : > { %v493_v5 = vsel %vm1523_vm2, %v482_v62, %v453_v1  ;;  %v494_v6 = vsel %vm1527_vm3, %v478_v61, %v457_v2  ;;  %v1613_v15 = vsub.f32 %v1466_v17, %v1471_v22  ;;  %v1625_v19 = vsub.f32 %v1494_v34, %v1488_v31 }
 0x114   : > { %v501_v16 = vsub.f32 %v1473_v23, %v493_v5  ;;  %v502_v18 = vsub.f32 %v1479_v25, %v494_v6 }
 0x115   : > { %v448_v57 = vpop.permute.xlu1 %447  ;;  %v465_v58 = vpop.permute.xlu0 %464 }
 0x116   : > { %v454_v8 = vsel %vm451_vm1, %v440_v54, %v448_v57  ;;  %v458_v9 = vsel %vm451_vm1, %v448_v57, %v440_v54  ;;  %v509_v27 = vand.u32 2147483647, %v501_v16  ;;  %v510_v28 = vand.u32 2147483647, %v502_v18 }
 0x117   : > { %v1617_v16 = vsub.f32 %v1488_v31, %v1494_v34  ;;  %v1621_v18 = vsub.f32 %v1471_v22, %v1466_v17 }
 0x118   : > { %v515_v44 = vadd.f32 %v509_v27, %v507_v26  ;;  %v524_v45 = vadd.f32 %v510_v28, %v508_v29  ;;  %v649_v26 = vand.u32 2147483647, %v1613_v15  ;;  %v652_v29 = vand.u32 2147483647, %v1625_v19 }
 0x119   : > { %v473_v7 = vpop.permute.xlu1 %472  ;;  %v442_v14 = vpop.permute.xlu0 %441  ;;  %v653_v27 = vand.u32 2147483647, %v1617_v16  ;;  %v648_v28 = vand.u32 2147483647, %v1621_v18 }
 0x11a   : > { %v479_v10 = vsel %vm476_vm0, %v465_v58, %v473_v7  ;;  %v483_v11 = vsel %vm476_vm0, %v473_v7, %v465_v58 }
 0x11b   : > { %v495_v12 = vsel %vm1523_vm2, %v483_v11, %v454_v8  ;;  %v496_v13 = vsel %vm1527_vm3, %v479_v10, %v458_v9  ;;  %v1940_v11 = vmov 0.0  }
 0x11c   : > { %v503_v20 = vsub.f32 %v1488_v31, %v495_v12  ;;  %v504_v21 = vsub.f32 %v1494_v34, %v496_v13  ;;  %865 = vmatprep.mubr.f32.mxu1 %v1940_v11  ;;  %853 = vmatprep.mubr.f32.mxu0 %v1940_v11  ;;  %v1605_v12 = vsub.f32 %v1473_v23, %v1479_v25 }
 0x11d   : > { %v450_v24 = vpop.permute.xlu1 %449  ;;  %v467_v33 = vpop.permute.xlu0 %466  ;;  %v1609_v13 = vsub.f32 %v1479_v25, %v1473_v23 }
 0x11e   : > { %v511_v30 = vand.u32 2147483647, %v503_v20  ;;  %v512_v32 = vand.u32 2147483647, %v504_v21  ;;  %v455_v36 = vsel %vm451_vm1, %v442_v14, %v450_v24  ;;  %v459_v37 = vsel %vm451_vm1, %v450_v24, %v442_v14 }
 0x11f   : > { %v651_v21 = vand.u32 2147483647, %v1605_v12  ;;  %v650_v24 = vand.u32 2147483647, %v1609_v13  ;;  %vm1152_vm1 = vcmask 7168  }
 0x120   : > { %v516_v49 = vadd.f32 %v515_v44, %v511_v30  ;;  %v525_v50 = vadd.f32 %v524_v45, %v512_v32  ;;  %v1635_v32 = vsub.f32 %v1500_v38, %v1505_v40 }
 0x121   : > { %v475_v35 = vpop.permute.xlu1 %474 }
 0x122   : > { %v480_v39 = vsel %vm476_vm0, %v467_v33, %v475_v35  ;;  %v484_v41 = vsel %vm476_vm0, %v475_v35, %v467_v33  ;;  %v665_v33 = vadd.f32 %v651_v21, %v649_v26  ;;  %v1639_v35 = vsub.f32 %v1505_v40, %v1500_v38 }
 0x123   : > { %v497_v42 = vsel %vm1523_vm2, %v484_v41, %v455_v36  ;;  %v498_v43 = vsel %vm1527_vm3, %v480_v39, %v459_v37  ;;  %v656_v36 = vadd.f32 %v650_v24, %v648_v28 }
 0x124   : > { %v505_v46 = vsub.f32 %v1500_v38, %v497_v42  ;;  %v506_v48 = vsub.f32 %v1505_v40, %v498_v43  ;;  %v666_v39 = vadd.f32 %v665_v33, %v653_v27  ;;  %v655_v42 = vand.u32 2147483647, %v1635_v32 }
 0x125   : > { %v560_v20 = vpop.permute.xlu1 %559  ;;  %v657_v41 = vadd.f32 %v656_v36, %v652_v29  ;;  %v654_v43 = vand.u32 2147483647, %v1639_v35 }
 0x126   : > { %v513_v51 = vand.u32 2147483647, %v505_v46  ;;  %v514_v52 = vand.u32 2147483647, %v506_v48  ;;  %v667_v48 = vadd.f32 %v666_v39, %v655_v42 }
 0x128   : > { %v517_v53 = vadd.f32 %v516_v49, %v513_v51  ;;  %v526_v54 = vadd.f32 %v525_v50, %v514_v52  ;;  %v658_v49 = vadd.f32 %v657_v41, %v654_v43 }
 0x129   : > { %v568_v37 = vpop.permute.xlu1 %567 }
 0x12a   : > { %v518_v57 = vrot.slane %v517_v53, 4  ;;  %v527_v58 = vrot.slane %v526_v54, 4  ;;  %v575_v50 = vsel %vm573_vm4, %v560_v20, %v568_v37  ;;  %v579_v51 = vsel %vm573_vm4, %v568_v37, %v560_v20 }
 0x12c   : > { %v519_v59 = vadd.f32 %v518_v57, %v517_v53  ;;  %v528_v55 = vadd.f32 %v527_v58, %v526_v54 }
 0x12d   : > { %v570_v52 = vpop.permute.xlu1 %569 }
 0x12e   : > { %v520_v60 = vrot.slane %v519_v59, 2  ;;  %v529_v61 = vrot.slane %v528_v55, 2 }
 0x130   : > { %v521_v56 = vadd.f32 %v520_v60, %v519_v59  ;;  %v530_v62 = vadd.f32 %v529_v61, %v528_v55  ;;  %v668_v55 = vrot.slane %v667_v48, 4  ;;  %v1666_v60 = vsub.f32 %v579_v51, %v1473_v23 }
 0x131   : > { %v1669_v61 = vsub.f32 %v575_v50, %v1479_v25 }
 0x132   : > { %v522_v63 = vrot.slane %v521_v56, 1  ;;  %v531_v0 = vrot.slane %v530_v62, 1  ;;  %v592_v20 = vand.u32 2147483647, %v1666_v60 }
 0x133   : > { %v593_v21 = vand.u32 2147483647, %v1669_v61 }
 0x134   : > { %v523_v1 = vadd.f32 %v522_v63, %v521_v56  ;;  %v532_v2 = vadd.f32 %v531_v0, %v530_v62  ;;  %v1672_v56 = vsub.f32 %v575_v50, %v1473_v23  ;;  %v659_v62 = vrot.slane %v658_v49, 4 }
 0x136   : > { %v533_v3 = vadd.f32 %v532_v2, %v523_v1  ;;  %v708_v24 = vand.u32 2147483647, %v1672_v56  ;;  %v660_v26 = vadd.f32 %v659_v62, %v658_v49 }
 0x138   : > { %534 = vadd.xlane.f32.xlu0 %v533_v3 }
 0x14e   : > { %557 = vrot.lane.b32.xlu0 %v1466_v17, %s1369_s14 }
 0x152   : > { %565 = vrot.lane.b32.xlu0 %v1471_v22, %s1369_s14 }
 0x156   : > { %561 = vrot.lane.b32.xlu0 %v1488_v31, %s1369_s14 }
 0x15a   : > { %563 = vrot.lane.b32.xlu0 %v1500_v38, %s1369_s14 }
 0x1c1   : > { %v535_v4 = vpop.xlane.xlu0 %534 }
 0x1c2   : > { %v1595_v5 = vmul.f32 0.00390625, %v535_v4 }
 0x1c4   : > { %v537_v6 = vsub.f32 %v523_v1, %v1595_v5  ;;  %v538_v7 = vsub.f32 %v532_v2, %v1595_v5  ;;  %v1684_v2 = vsub.f32 %v579_v51, %v1479_v25 }
 0x1c5   : > { %v558_v14 = vpop.permute.xlu0 %557 }
 0x1c6   : > { %v539_v8 = vmul.f32 %v537_v6, %v537_v6  ;;  %v540_v9 = vmul.f32 %v538_v7, %v538_v7 }
 0x1c8   : > { %v541_v10 = vadd.f32 %v540_v9, %v539_v8 }
 0x1c9   : > { %v566_v30 = vpop.permute.xlu0 %565 }
 0x1ca   : > { %542 = vadd.xlane.f32.xlu1 %v541_v10  ;;  %v574_v44 = vsel %vm573_vm4, %v558_v14, %v566_v30  ;;  %v578_v45 = vsel %vm573_vm4, %v566_v30, %v558_v14  ;;  %v669_v14 = vadd.f32 %v668_v55, %v667_v48  ;;  %v709_v30 = vand.u32 2147483647, %v1684_v2 }
 0x1cb   : > { %v1653_v53 = vsub.f32 %v578_v45, %v1466_v17  ;;  %v1656_v54 = vsub.f32 %v574_v44, %v1471_v22  ;;  %v1663_v59 = vsub.f32 %v574_v44, %v1466_v17  ;;  %v1675_v63 = vsub.f32 %v578_v45, %v1471_v22 }
 0x1cd   : > { %v562_v46 = vpop.permute.xlu0 %561  ;;  %v590_v3 = vand.u32 2147483647, %v1653_v53  ;;  %v591_v4 = vand.u32 2147483647, %v1656_v54  ;;  %v706_v8 = vand.u32 2147483647, %v1663_v59 }
 0x1ce   : > { %v576_v57 = vsel %vm573_vm4, %v562_v46, %v570_v52  ;;  %v580_v58 = vsel %vm573_vm4, %v570_v52, %v562_v46  ;;  %v707_v27 = vand.u32 2147483647, %v1675_v63 }
 0x1cf   : > { %v1678_v0 = vsub.f32 %v580_v58, %v1488_v31  ;;  %v1681_v1 = vsub.f32 %v576_v57, %v1494_v34  ;;  %v1689_v6 = vsub.f32 %v576_v57, %v1488_v31  ;;  %v1693_v9 = vsub.f32 %v580_v58, %v1494_v34 }
 0x1d0   : > { %v598_v33 = vadd.f32 %v592_v20, %v590_v3  ;;  %v607_v36 = vadd.f32 %v593_v21, %v591_v4  ;;  %v714_v42 = vadd.f32 %v708_v24, %v706_v8  ;;  %v723_v51 = vadd.f32 %v709_v30, %v707_v27 }
 0x1d1   : > { %v594_v28 = vand.u32 2147483647, %v1678_v0  ;;  %v595_v29 = vand.u32 2147483647, %v1681_v1  ;;  %v710_v37 = vand.u32 2147483647, %v1689_v6  ;;  %v564_v39 = vpop.permute.xlu0 %563 }
 0x1d2   : > { %v711_v43 = vand.u32 2147483647, %v1693_v9  ;;  %v670_v58 = vrot.slane %v669_v14, 2  ;;  %v661_v8 = vrot.slane %v660_v26, 2 }
 0x1d3   : > { %v599_v52 = vadd.f32 %v598_v33, %v594_v28  ;;  %v608_v57 = vadd.f32 %v607_v36, %v595_v29  ;;  %v715_v55 = vadd.f32 %v714_v42, %v710_v37 }
 0x1d4   : > { %v724_v4 = vadd.f32 %v723_v51, %v711_v43  ;;  %v671_v29 = vadd.f32 %v670_v58, %v669_v14  ;;  %v662_v33 = vadd.f32 %v661_v8, %v660_v26 }
 0x1d6   : > { %v672_v17 = vrot.slane %v671_v29, 1 }
 0x1db   : > { %571 = vrot.lane.b32.xlu1 %v1505_v40, %s1369_s14 }
 0x253   : > { %v543_v7 = vpop.xlane.xlu1 %542 }
 0x254   : > { %v1695_v10 = vmul.f32 0.003921569, %v543_v7 }
 0x256   : > { %1356 = vrsqrt.f32 %v1695_v10  ;;  %vm547_vm5 = vcmp.eq.f32.partialorder %v1695_v10, inf  ;;  %vm549_vm6 = vcmp.eq.f32.partialorder %v1695_v10, 0.0 }
 0x257   : > { %v572_v41 = vpop.permute.xlu1 %571 }
 0x258   : > { %v577_v44 = vsel %vm573_vm4, %v564_v39, %v572_v41  ;;  %v581_v45 = vsel %vm573_vm4, %v572_v41, %v564_v39 }
 0x259   : > { %v1712_v46 = vsub.f32 %v581_v45, %v1500_v38  ;;  %v1715_v48 = vsub.f32 %v577_v44, %v1505_v40  ;;  %v1718_v49 = vsub.f32 %v577_v44, %v1500_v38  ;;  %v1721_v50 = vsub.f32 %v581_v45, %v1505_v40 }
 0x25b   : > { %v596_v47 = vand.u32 2147483647, %v1712_v46  ;;  %v597_v62 = vand.u32 2147483647, %v1715_v48  ;;  %v712_v3 = vand.u32 2147483647, %v1718_v49 }
 0x25c   : > { %v713_v7 = vand.u32 2147483647, %v1721_v50 }
 0x25d   : > { %v600_v20 = vadd.f32 %v599_v52, %v596_v47  ;;  %v609_v21 = vadd.f32 %v608_v57, %v597_v62  ;;  %v716_v24 = vadd.f32 %v715_v55, %v712_v3  ;;  %v663_v55 = vrot.slane %v662_v33, 1 }
 0x25e   : > { %v725_v39 = vadd.f32 %v724_v4, %v713_v7  ;;  %v550_v47 = vand.u32 2147483648, %v1695_v10 }
 0x25f   : > { %v601_v41 = vrot.slane %v600_v20, 4  ;;  %v610_v27 = vrot.slane %v609_v21, 4  ;;  %v717_v28 = vrot.slane %v716_v24, 4 }
 0x260   : > { %v726_v30 = vrot.slane %v725_v39, 4 }
 0x261   : > { %v602_v36 = vadd.f32 %v601_v41, %v600_v20  ;;  %v611_v37 = vadd.f32 %v610_v27, %v609_v21  ;;  %v718_v42 = vadd.f32 %v717_v28, %v716_v24  ;;  %v664_v41 = vadd.f32 %v663_v55, %v662_v33 }
 0x262   : > { %v727_v44 = vadd.f32 %v726_v30, %v725_v39  ;;  %v673_v39 = vadd.f32 %v672_v17, %v671_v29 }
 0x263   : > { %v1357_v45 = vpop.eup %1356  ;;  %v603_v11 = vrot.slane %v602_v36, 2  ;;  %v612_v43 = vrot.slane %v611_v37, 2  ;;  %v719_v51 = vrot.slane %v718_v42, 2 }
 0x264   : > { %v546_v52 = vmul.f32 %v1357_v45, %v1695_v10  ;;  %v728_v57 = vrot.slane %v727_v44, 2 }
 0x265   : > { %v604_v14 = vadd.f32 %v603_v11, %v602_v36  ;;  %v613_v58 = vadd.f32 %v612_v43, %v611_v37  ;;  %v720_v26 = vadd.f32 %v719_v51, %v718_v42 }
 0x266   : > { %v548_v62 = vsel %vm547_vm5, %v1695_v10, %v546_v52  ;;  %v729_v3 = vadd.f32 %v728_v57, %v727_v44  ;;  %v1949_v10 = vmov 0.0  }
 0x267   : > { %v551_v4 = vsel %vm549_vm6, %v550_v47, %v548_v62  ;;  %v605_v7 = vrot.slane %v604_v14, 1  ;;  %v614_v8 = vrot.slane %v613_v58, 1  ;;  %v721_v20 = vrot.slane %v720_v26, 1 }
 0x268   : > { %v552_v21 = vsub.f32 %v1595_v5, %v551_v4  ;;  %v730_v24 = vrot.slane %v729_v3, 1 }
 0x269   : > { %v606_v27 = vadd.f32 %v605_v7, %v604_v14  ;;  %v615_v28 = vadd.f32 %v614_v8, %v613_v58  ;;  %v722_v30 = vadd.f32 %v721_v20, %v720_v26 }
 0x26a   : > { %vm675_vm7 = vcmp.lt.f32.partialorder %v673_v39, %v552_v21  ;;  %v731_v11 = vadd.f32 %v730_v24, %v729_v3  ;;  %vm674_vm8 = vcmp.lt.f32.partialorder %v664_v41, %v552_v21  ;;  %vm553_vm9 = vcmp.gt.f32.partialorder %v552_v21, 0.0 }
 0x26b   : > { %vm616_vm10 = vcmp.lt.f32.partialorder %v606_v27, %v552_v21  ;;  %vm617_vm11 = vcmp.lt.f32.partialorder %v615_v28, %v552_v21  ;;  %v1734_v36 = vsel %vm675_vm7, 1.0, %v1949_v10  ;;  %v1737_v37 = vsel %vm674_vm8, 1.0, %v1949_v10 }
 0x26c   : > { %v1740_v5 = vsel %vm616_vm10, 1.0, %v1949_v10  ;;  %v619_v17 = vsel %vm617_vm11, 1.0, %v1949_v10  ;;  %vm733_vm12 = vcmp.lt.f32.partialorder %v731_v11, %v552_v21  ;;  %v685_v42 = vmul.f32 %v1734_v36, %v1635_v32 }
 0x26d   : > { %v626_v29 = vmul.f32 %v1740_v5, %v1712_v46  ;;  %v627_v33 = vmul.f32 %v619_v17, %v1715_v48  ;;  %v1749_v44 = vsel %vm733_vm12, 1.0, %v1949_v10  ;;  %v684_v45 = vmul.f32 %v1737_v37, %v1639_v35 }
 0x26e   : > { %vm732_vm13 = vcmp.lt.f32.partialorder %v722_v30, %v552_v21  ;;  %v554_v43 = vsel %vm553_vm9, 1.0, %v1949_v10  ;;  %v636_v51 = vmul.f32 2.0, %v1740_v5  ;;  %v743_v32 = vmul.f32 %v1749_v44, %v1721_v50 }
 0x26f   : > { %v634_v52 = vmax.f32 %v626_v29, 0.0  ;;  %v635_v57 = vmax.f32 %v627_v33, 0.0  ;;  %v1756_v46 = vsel %vm732_vm13, 1.0, %v1949_v10  ;;  %v555_v48 = vmul.f32 2.0, %v554_v43 }
 0x270   : > { %v742_v55 = vmul.f32 %v1756_v46, %v1718_v49  ;;  %v637_v47 = vmul.f32 2.0, %v619_v17  ;;  %v694_v35 = vmul.f32 2.0, %v1737_v37  ;;  %v695_v62 = vmul.f32 2.0, %v1734_v36 }
 0x271   : > { %v693_v14 = vmax.f32 %v635_v57, %v685_v42  ;;  %v692_v58 = vmax.f32 %v634_v52, %v684_v45  ;;  %v638_v26 = vadd.f32 %v636_v51, %v555_v48  ;;  %v752_v4 = vmul.f32 2.0, %v1756_v46 }
 0x272   : > { %v639_v3 = vadd.f32 %v637_v47, %v555_v48  ;;  %v753_v7 = vmul.f32 2.0, %v1749_v44  ;;  %v625_v8 = vmul.f32 %v619_v17, %v1681_v1  ;;  %v683_v49 = vmul.f32 %v1734_v36, %v1617_v16 }
 0x273   : > { %v751_v20 = vmax.f32 %v693_v14, %v743_v32  ;;  %v750_v50 = vmax.f32 %v692_v58, %v742_v55  ;;  %v696_v21 = vadd.f32 %v694_v35, %v638_v26  ;;  %v741_v41 = vmul.f32 %v1749_v44, %v1693_v9  ;;  %v1103_v58 = vld [vmem:[%s1936_s6 + $0x18] sm:$0xff]  ;;  %v1100_v26 = vld [vmem:[%s1936_s6] sm:$0xff] }
 0x274   : > { %v697_v24 = vadd.f32 %v695_v62, %v639_v3  ;;  %v633_v39 = vmax.f32 %v625_v8, 0.0  ;;  %v624_v27 = vmul.f32 %v1740_v5, %v1678_v0  ;;  %v682_v1 = vmul.f32 %v1737_v37, %v1625_v19  ;;  %v769_v62 = vld [vmem:[%s1933_s3 + $0x8] sm:$0xff]  ;;  %v771_v8 = vld [vmem:[%s1933_s3 + $0x18] sm:$0xff] }
 0x275   : > { %813 = vmatprep.subr.mxu0 %v751_v20  ;;  %1333 = vmatprep.subr.mxu1 %v751_v20  ;;  %v1773_v28 = vadd.f32 %v752_v4, %v696_v21  ;;  %v623_v30 = vmul.f32 %v619_v17, %v1669_v61  ;;  %v740_v9 = vmul.f32 %v1756_v46, %v1689_v6  ;;  %v773_v3 = vld [vmem:[%s1934_s4 + $0x8] sm:$0xff]  ;;  %v1102_v4 = vld [vmem:[%s1936_s6 + $0x10] sm:$0xff] }
 0x276   : > { %814 = vmatpush1.msra.mxu0 %v750_v50  ;;  %1337 = vmatpush1.msra.mxu1 %v750_v50  ;;  %v1778_v16 = vadd.f32 %v753_v7, %v697_v24  ;;  %v691_v11 = vmax.f32 %v633_v39, %v683_v49  ;;  %v632_v29 = vmax.f32 %v624_v27, 0.0  ;;  %v681_v0 = vmul.f32 %v1734_v36, %v1605_v12  ;;  %v770_v7 = vld [vmem:[%s1933_s3 + $0x10] sm:$0xff] }
 0x277   : > { %v631_v33 = vmax.f32 %v623_v30, 0.0  ;;  %v739_v42 = vmul.f32 %v1749_v44, %v1684_v2  ;;  %v622_v19 = vmul.f32 %v1740_v5, %v1666_v60  ;;  %v680_v6 = vmul.f32 %v1737_v37, %v1609_v13 }
 0x278   : > { %v759_v61 = vmax.f32 %v1773_v28, %v1778_v16  ;;  %v756_v45 = vmin.f32 %v1773_v28, %v1778_v16  ;;  %v690_v43 = vmax.f32 %v632_v29, %v682_v1  ;;  %v749_v51 = vmax.f32 %v691_v11, %v741_v41 }
 0x279   : > { %v689_v52 = vmax.f32 %v631_v33, %v681_v0  ;;  %v630_v57 = vmax.f32 %v622_v19, 0.0  ;;  %v621_v12 = vmul.f32 %v619_v17, %v1656_v54  ;;  %v738_v60 = vmul.f32 %v1756_v46, %v1672_v56 }
 0x27a   : > { %760 = vmax.xlane.f32.xlu1 %v759_v61  ;;  %757 = vmin.xlane.f32.xlu0 %v756_v45  ;;  %v748_v2 = vmax.f32 %v690_v43, %v740_v9  ;;  %v679_v48 = vmul.f32 %v1734_v36, %v1613_v15  ;;  %v620_v13 = vmul.f32 %v1740_v5, %v1653_v53 }
 0x27b   : > { %815 = vmatprep.subr.mxu0 %v749_v51  ;;  %1334 = vmatprep.subr.mxu1 %v749_v51  ;;  %v747_v32 = vmax.f32 %v689_v52, %v739_v42  ;;  %v688_v55 = vmax.f32 %v630_v57, %v680_v6  ;;  %v629_v47 = vmax.f32 %v621_v12, 0.0  ;;  %v737_v54 = vmul.f32 %v1749_v44, %v1675_v63  ;;  %v774_v63 = vld [vmem:[%s1934_s4 + $0x10] sm:$0xff]  ;;  %v1950_v44 = vld [vmem:[#allocation2_spill] sm:$0xff] }
 0x27c   : > { %816 = vmatpush1.msra.mxu0 %v748_v2  ;;  %1338 = vmatpush1.msra.mxu1 %v748_v2  ;;  %v628_v35 = vmax.f32 %v620_v13, 0.0  ;;  %v678_v15 = vmul.f32 %v1737_v37, %v1621_v18  ;;  %v736_v53 = vmul.f32 %v1756_v46, %v1663_v59  ;;  %v775_v18 = vld [vmem:[%s1934_s4 + $0x18] sm:$0xff]  ;;  %v1101_v59 = vld [vmem:[%s1936_s6 + $0x8] sm:$0xff]  ;;  %v768_v37 = vld [vmem:[%s1933_s3] sm:$0xff] }
 0x27d   : > { %817 = vmatprep.subr.mxu0 %v747_v32  ;;  %1335 = vmatprep.subr.mxu1 %v747_v32  ;;  %v746_v17 = vmax.f32 %v688_v55, %v738_v60  ;;  %v687_v56 = vmax.f32 %v629_v47, %v679_v48  ;;  %v772_v46 = vld [vmem:[%s1934_s4] sm:$0xff] }
 0x27e   : > { %v686_v14 = vmax.f32 %v628_v35, %v678_v15 }
 0x27f   : > { %818 = vmatpush1.msra.mxu0 %v746_v17  ;;  %1339 = vmatpush1.msra.mxu1 %v746_v17  ;;  %v745_v36 = vmax.f32 %v687_v56, %v737_v54 }
 0x280   : > { %v744_v5 = vmax.f32 %v686_v14, %v736_v53 }
 0x281   : > { %819 = vmatprep.subr.mxu0 %v745_v36  ;;  %1336 = vmatprep.subr.mxu1 %v745_v36 }
 0x282   : > { %820 = vmatpush1.msra.mxu0 %v744_v5  ;;  %1340 = vmatpush1.msra.mxu1 %v744_v5 }
 0x283   : > { %914 = vmatprep.subr.mxu1 %v1505_v40  ;;  %1317 = vmatmul.mubr.msk.f32.vlgmr.msra.gmra.mxu1 %vm776_vm14, %v774_v63 }
 0x284   : > { %915 = vmatpush1.msra.mxu1 %v1500_v38  ;;  %871 = vmatprep.mubr.f32.mxu1 %v1949_v10 }
 0x285   : > { %916 = vmatprep.subr.mxu1 %v1494_v34  ;;  %1315 = vmatmul.mubr.msk.f32.vlgmr.msra.gmra.mxu0 %vm776_vm14, %v772_v46 }
 0x286   : > { %917 = vmatpush1.msra.mxu1 %v1488_v31  ;;  %859 = vmatprep.mubr.f32.mxu0 %v1949_v10 }
 0x287   : > { %918 = vmatprep.subr.mxu1 %v1479_v25  ;;  %1318 = vmatmul.mubr.msk.f32.gmra.mxu1 %vm776_vm14, %v775_v18 }
 0x288   : > { %919 = vmatpush1.msra.mxu1 %v1473_v23  ;;  %954 = vmatprep.mubr.f32.mxu1 %v1949_v10 }
 0x289   : > { %920 = vmatprep.subr.mxu1 %v1471_v22  ;;  %1316 = vmatmul.mubr.msk.f32.gmra.mxu0 %vm776_vm14, %v773_v3 }
 0x28a   : > { %921 = vmatpush1.msra.mxu1 %v1950_v44  ;;  %1067 = vmatprep.mubr.f32.mxu0 %v1949_v10 }
 0x28b   : > { %1111 = vperm.xlu1 %1355, %v1101_v59   ;;  %1319 = vmatmul.mubr.msk.f32.vlgmr.msra.gmra.mxu1 %vm776_vm14, %v768_v37 }
 0x28c   : > { %960 = vmatprep.mubr.f32.mxu1 %v1949_v10 }
 0x28f   : > { %1121 = vperm.xlu1 %1355, %v1103_v58   ;;  %1320 = vmatmul.mubr.msk.f32.gmra.mxu1 %vm776_vm14, %v769_v62 }
 0x290   : > { %1106 = vperm.xlu0 %1354, %v1100_v26   ;;  %966 = vmatprep.mubr.f32.mxu1 %v1949_v10 }
 0x293   : > { %1321 = vmatmul.mubr.msk.f32.gmra.mxu1 %vm776_vm14, %v770_v7 }
 0x294   : > { %1116 = vperm.xlu0 %1354, %v1102_v4   ;;  %972 = vmatprep.mubr.f32.mxu1 %v1949_v10 }
 0x297   : > { %1322 = vmatmul.mubr.msk.f32.gmra.mxu1 %vm776_vm14, %v771_v8 }
 0x303   : > { %v761_v20 = vpop.xlane.xlu1 %760  ;;  %v758_v50 = vpop.xlane.xlu0 %757 }
 0x304   : > { %v762_v21 = vsub.f32 %v761_v20, %v758_v50 }
 0x306   : > { %v763_v49 = vmul.f32 0.4, %v762_v21 }
 0x307   : > { %v1112_v15 = vpop.permute.xlu1 %1111 }
 0x308   : > { %vm764_vm15 = vcmp.lt.f32.partialorder %v1773_v28, %v763_v49  ;;  %vm765_vm0 = vcmp.lt.f32.partialorder %v1778_v16, %v763_v49 }
 0x309   : > { %v766_v24 = vsel %vm764_vm15, 1.0, %v1949_v10  ;;  %v767_v39 = vsel %vm765_vm0, 1.0, %v1949_v10 }
 0x30a   : > { %v990_v41 = vmul.f32 %v767_v39, %v1505_v40  ;;  %v989_v27 = vmul.f32 %v766_v24, %v1500_v38  ;;  %v988_v1 = vmul.f32 %v767_v39, %v1494_v34  ;;  %v987_v30 = vmul.f32 %v766_v24, %v1488_v31  ;;  %v979_v38 = vld [vmem:[%s1935_s5] sm:$0xff] }
 0x30b   : > { %v986_v11 = vmul.f32 %v767_v39, %v1479_v25  ;;  %v985_v28 = vmul.f32 %v766_v24, %v1473_v23  ;;  %v984_v16 = vmul.f32 %v767_v39, %v1471_v22  ;;  %v983_v40 = vmul.f32 %v766_v24, %v1950_v44  ;;  %v980_v23 = vld [vmem:[%s1935_s5 + $0x8] sm:$0xff]  ;;  %v981_v22 = vld [vmem:[%s1935_s5 + $0x10] sm:$0xff]  ;;  %v982_v25 = vld [vmem:[%s1935_s5 + $0x18] sm:$0xff]  ;;  %v1107_v60 = vpop.permute.xlu0 %1106 }
 0x30c   : > { %1027 = vmatprep.subr.mxu0 %v990_v41 }
 0x30d   : > { %1028 = vmatpush1.msra.mxu0 %v989_v27 }
 0x30e   : > { %1029 = vmatprep.subr.mxu0 %v988_v1 }
 0x30f   : > { %1030 = vmatpush1.msra.mxu0 %v987_v30  ;;  %v1117_v3 = vpop.permute.xlu0 %1116  ;;  %v1122_v30 = vpop.permute.xlu1 %1121 }
 0x310   : > { %1031 = vmatprep.subr.mxu0 %v986_v11 }
 0x311   : > { %1032 = vmatpush1.msra.mxu0 %v985_v28 }
 0x312   : > { %1033 = vmatprep.subr.mxu0 %v984_v16 }
 0x313   : > { %1034 = vmatpush1.msra.mxu0 %v983_v40 }
 0x314   : > { %1323 = vmatmul.mubr.msk.f32.vlgmr.msra.gmra.mxu0 %vm776_vm14, %v979_v38 }
 0x315   : > { %1073 = vmatprep.mubr.f32.mxu0 %v1949_v10 }
 0x318   : > { %1324 = vmatmul.mubr.msk.f32.gmra.mxu0 %vm776_vm14, %v980_v23 }
 0x319   : > { %1079 = vmatprep.mubr.f32.mxu0 %v1949_v10 }
 0x31c   : > { %1325 = vmatmul.mubr.msk.f32.gmra.mxu0 %vm776_vm14, %v981_v22 }
 0x31d   : > { %1085 = vmatprep.mubr.f32.mxu0 %v1949_v10 }
 0x320   : > { %1326 = vmatmul.mubr.msk.f32.gmra.mxu0 %vm776_vm14, %v982_v25 }
 0x343   : > { %v867_v31 = vpop.f32.mrf.mxu1 }
 0x345   : > { %v869_v34 = vpop.f32.mrf.mxu1  ;;  %v855_v42 = vpop.f32.mrf.mxu0 }
 0x347   : > { %v873_v29 = vpop.f32.mrf.mxu1  ;;  %v857_v61 = vpop.f32.mrf.mxu0 }
 0x349   : > { %v875_v9 = vpop.f32.mrf.mxu1  ;;  %v861_v43 = vpop.f32.mrf.mxu0 }
 0x34b   : > { %v956_v33 = vpop.f32.mrf.mxu1  ;;  %v863_v10 = vpop.f32.mrf.mxu0 }
 0x34c   : > { %v957_v51 = vadd.f32 %v956_v33, %v855_v42 }
 0x34d   : > { %v958_v0 = vpop.f32.mrf.mxu1 }
 0x34e   : > { %v959_v12 = vadd.f32 %v958_v0, %v857_v61 }
 0x34f   : > { %v962_v19 = vpop.f32.mrf.mxu1 }
 0x350   : > { %v963_v32 = vadd.f32 %v962_v19, %v861_v43 }
 0x351   : > { %v964_v45 = vpop.f32.mrf.mxu1 }
 0x352   : > { %v965_v17 = vadd.f32 %v964_v45, %v863_v10 }
 0x353   : > { %v968_v6 = vpop.f32.mrf.mxu1 }
 0x354   : > { %v969_v36 = vadd.f32 %v968_v6, %v867_v31 }
 0x355   : > { %v970_v57 = vpop.f32.mrf.mxu1 }
 0x356   : > { %v971_v44 = vadd.f32 %v970_v57, %v869_v34 }
 0x357   : > { %v974_v54 = vpop.f32.mrf.mxu1 }
 0x358   : > { %v975_v4 = vadd.f32 %v974_v54, %v873_v29 }
 0x359   : > { %v976_v46 = vpop.f32.mrf.mxu1 }
 0x35a   : > { %v977_v49 = vadd.f32 %v976_v46, %v875_v9 }
 0x3d4   : > { %v1069_v52 = vpop.f32.mrf.mxu0 }
 0x3d5   : > { %v1092_v2 = vadd.f32 %v1069_v52, %v957_v51 }
 0x3d6   : > { %v1071_v48 = vpop.f32.mrf.mxu0 }
 0x3d7   : > { %v1124_v55 = vadd.f32 %v1107_v60, %v1092_v2  ;;  %v1093_v47 = vadd.f32 %v1071_v48, %v959_v12 }
 0x3d8   : > { %v1075_v13 = vpop.f32.mrf.mxu0 }
 0x3d9   : > { %1132 = vst [vmem:[%s1902_s13] sm:$0xff] %v1124_v55  ;;  %v1125_v56 = vadd.f32 %v1107_v60, %v1093_v47  ;;  %v1094_v35 = vadd.f32 %v1075_v13, %v963_v32  ;;  %v1157_v53 = vmul.f32 %v1124_v55, %v1124_v55 }
 0x3da   : > { %v1077_v14 = vpop.f32.mrf.mxu0 }
 0x3db   : > { %1133 = vst [vmem:[%s1902_s13 + $0x8] sm:$0xff] %v1125_v56  ;;  %v1126_v5 = vadd.f32 %v1112_v15, %v1094_v35  ;;  %v1095_v63 = vadd.f32 %v1077_v14, %v965_v17  ;;  %v1140_v18 = vadd.f32 %v1125_v56, %v1124_v55  ;;  %v1158_v59 = vmul.f32 %v1125_v56, %v1125_v56 }
 0x3dc   : > { %v1081_v37 = vpop.f32.mrf.mxu0 }
 0x3dd   : > { %1134 = vst [vmem:[%s1902_s13 + $0x10] sm:$0xff] %v1126_v5  ;;  %v1127_v58 = vadd.f32 %v1112_v15, %v1095_v63  ;;  %v1096_v26 = vadd.f32 %v1081_v37, %v969_v36  ;;  %1141 = vadd.xlane.f32.xlu0 %v1140_v18  ;;  %v1165_v62 = vadd.f32 %v1158_v59, %v1157_v53 }
 0x3de   : > { %v1083_v7 = vpop.f32.mrf.mxu0  ;;  %v1159_v50 = vmul.f32 %v1126_v5, %v1126_v5 }
 0x3df   : > { %1135 = vst [vmem:[%s1902_s13 + $0x18] sm:$0xff] %v1127_v58  ;;  %v1128_v8 = vadd.f32 %v1117_v3, %v1096_v26  ;;  %v1097_v20 = vadd.f32 %v1083_v7, %v971_v44  ;;  %1166 = vadd.xlane.f32.xlu1 %v1165_v62  ;;  %v1160_v21 = vmul.f32 %v1127_v58, %v1127_v58 }
 0x3e0   : > { %v1087_v24 = vpop.f32.mrf.mxu0  ;;  %v1143_v1 = vadd.f32 %v1127_v58, %v1126_v5 }
 0x3e1   : > { %1136 = vst [vmem:[%s1902_s13 + $0x20] sm:$0xff] %v1128_v8  ;;  %v1129_v39 = vadd.f32 %v1117_v3, %v1097_v20  ;;  %v1098_v41 = vadd.f32 %v1087_v24, %v975_v4  ;;  %v1168_v27 = vadd.f32 %v1160_v21, %v1159_v50  ;;  %v1161_v40 = vmul.f32 %v1128_v8, %v1128_v8 }
 0x3e2   : > { %v1089_v11 = vpop.f32.mrf.mxu0 }
 0x3e3   : > { %1137 = vst [vmem:[%s1902_s13 + $0x28] sm:$0xff] %v1129_v39  ;;  %v1130_v28 = vadd.f32 %v1122_v30, %v1098_v41  ;;  %v1099_v16 = vadd.f32 %v1089_v11, %v977_v49  ;;  %1169 = vadd.xlane.f32.xlu0 %v1168_v27  ;;  %1144 = vadd.xlane.f32.xlu1 %v1143_v1 }
 0x3e4   : > { %v1162_v38 = vmul.f32 %v1129_v39, %v1129_v39  ;;  %v1146_v22 = vadd.f32 %v1129_v39, %v1128_v8 }
 0x3e5   : > { %1138 = vst [vmem:[%s1902_s13 + $0x30] sm:$0xff] %v1130_v28  ;;  %v1131_v23 = vadd.f32 %v1122_v30, %v1099_v16  ;;  %v1163_v29 = vmul.f32 %v1130_v28, %v1130_v28 }
 0x3e6   : > { %v1171_v25 = vadd.f32 %v1162_v38, %v1161_v40 }
 0x3e7   : > { %1139 = vst [vmem:[%s1902_s13 + $0x38] sm:$0xff] %v1131_v23  ;;  %1147 = vadd.xlane.f32.xlu0 %v1146_v22  ;;  %v1149_v31 = vadd.f32 %v1131_v23, %v1130_v28  ;;  %v1164_v34 = vmul.f32 %v1131_v23, %v1131_v23 }
 0x3e8   : > { %1172 = vadd.xlane.f32.xlu1 %v1171_v25 }
 0x3e9   : > { %v1174_v9 = vadd.f32 %v1164_v34, %v1163_v29 }
 0x3eb   : > { %1150 = vadd.xlane.f32.xlu0 %v1149_v31 }
 0x3ef   : > { %1175 = vadd.xlane.f32.xlu0 %v1174_v9 }
 0x466   : > { %v1142_v33 = vpop.xlane.xlu0 %1141 }
 0x467   : > { %1153 = vst.msk [vmem:[%s352_s16] sm:$0xff] %vm1152_vm1, %v1142_v33 }
 0x468   : > { %v1167_v0 = vpop.xlane.xlu1 %1166 }
 0x469   : > { %1177 = vst.msk [vmem:[%s357_s19] sm:$0xff] %vm1152_vm1, %v1167_v0 }
 0x46c   : > { %v1170_v42 = vpop.xlane.xlu0 %1169  ;;  %v1145_v19 = vpop.xlane.xlu1 %1144 }
 0x46d   : > { %1178 = vst.msk [vmem:[%s357_s19 + $0x8] sm:$0xff] %vm1152_vm1, %v1170_v42  ;;  %1154 = vst.msk [vmem:[%s352_s16 + $0x8] sm:$0xff] %vm1152_vm1, %v1145_v19 }
 0x470   : > { %v1148_v61 = vpop.xlane.xlu0 %1147 }
 0x471   : > { %1155 = vst.msk [vmem:[%s352_s16 + $0x10] sm:$0xff] %vm1152_vm1, %v1148_v61  ;;  %v1173_v45 = vpop.xlane.xlu1 %1172 }
 0x472   : > { %1179 = vst.msk [vmem:[%s357_s19 + $0x10] sm:$0xff] %vm1152_vm1, %v1173_v45 }
 0x474   : > { %v1151_v43 = vpop.xlane.xlu0 %1150 }
 0x475   : > { %1156 = vst.msk [vmem:[%s352_s16 + $0x18] sm:$0xff] %vm1152_vm1, %v1151_v43 }
 0x478   : > { %v1176_v6 = vpop.xlane.xlu0 %1175 }
 0x479   : > { %1180 = vst.msk [vmem:[%s357_s19 + $0x18] sm:$0xff] %vm1152_vm1, %v1176_v6 }
 0x47a PF: > { %s20_s30 = sadd.s32 1, %s1364_s30  }
 0x47b   : > { %p17_p4 = scmp.ge.s32.totalorder %s20_s30, 4  }
 0x47d   :  { %19 = sbr.rel (!%p17_p4) target bundleno = 1 (0x1), region = 102 }

// kernel: _lambda_.6
= control target key start
LH: loop header
LB: loop body
LE: loop exit
PB: predicated region body
PF: predicated region fallthrough
CT: control target
= control target key end

     0   :  { %s1019_s24 = smov 0   ;;  %s1278_s0 = inlined_call_operand.vmem [shape: f32[2,32,256], index: 0, kind: input, shape index: {}, may-alias: {0,5}]   ;;  %s1279_s1 = inlined_call_operand.vmem [shape: f32[32,1], index: 1, kind: input, shape index: {}]   ;;  %s1280_s2 = inlined_call_operand.vmem [shape: f32[32,1], index: 2, kind: input, shape index: {}]   ;;  %s1281_s3 = inlined_call_operand.vmem [shape: f32[32,32], index: 3, kind: input, shape index: {}]   ;;  %s1282_s4 = inlined_call_operand.vmem [shape: f32[32,1], index: 4, kind: input, shape index: {}]   ;;  %s1283_s5 = inlined_call_operand.vmem [shape: f32[2,32,256], index: 5, kind: output, shape index: {0}, may-alias: {0,5}]   ;;  %s1284_s6 = inlined_call_operand.vmem [shape: f32[2,32,1], index: 6, kind: output, shape index: {1}]   ;;  %s1285_s7 = inlined_call_operand.vmem [shape: f32[2,32,1], index: 7, kind: output, shape index: {2}]  }
   0x1 LB: > { %s892_s25 = sadd.s32 4294967295, %s974_s24   ;;  %p896_p0 = scmp.ge.s32.totalorder %s974_s24, 1  ;;  %s974_s24 = sphi %s1019_s24, %s18_s24  }
   0x2   : > { %p242_p1 = scmp.lt.s32.totalorder %s974_s24, 3 }
   0x4   : > { %p243_p2 = pnand %p896_p0, %p242_p1 }
   0x5   : > { %p284_p3 = scmp.lt.s32.totalorder (!%p243_p2), %s892_s25, 1 }
   0x6   : > { %246 = sbr.rel (%p243_p2) target bundleno = 564 (0x234), region = 40 }
   0xb   : > { %v347_v0 = vld [vmem:[%s1280_s2 + $0x18] sm:$0xff]  ;;  %v976_v2 = vmov 0   ;;  %v314_v3 = vld [vmem:[%s1279_s1 + $0x10] sm:$0xff]  ;;  %v313_v4 = vld [vmem:[%s1279_s1 + $0x8] sm:$0xff]  ;;  %v977_v13 = vmov 0.0   ;;  %s1287_s25 = smov (!%p284_p3, %s892_s25), 1 }
   0xc   : > { %v315_v1 = vld [vmem:[%s1279_s1 + $0x18] sm:$0xff]  ;;  %935 = vset.pattern.permute.xlu1 %v976_v2  ;;  %934 = vset.pattern.permute.xlu0 %v976_v2  ;;  %v346_v5 = vld [vmem:[%s1280_s2 + $0x10] sm:$0xff]  ;;  %v312_v6 = vld [vmem:[%s1279_s1] sm:$0xff]  ;;  %s911_s29 = sshll.u32 %s1287_s25, 6  ;;  %vm620_vm8 = vcmask 261120   ;;  %s913_s21 = sshll.u32 %s1287_s25, 5 }
   0xd   : > { %365 = vperm.xlu1 %935, %v347_v0   ;;  %333 = vperm.xlu0 %934, %v315_v1   ;;  %v345_v7 = vld [vmem:[%s1280_s2 + $0x8] sm:$0xff]  ;;  %v344_v8 = vld [vmem:[%s1280_s2] sm:$0xff]  ;;  %v598_v11 = vld [vmem:[%s1282_s4 + $0x10] sm:$0xff]  ;;  %s1077_s9 = scalar_lea.vmem %s1278_s0, %s911_s29  ;;  %s293_s20 = scalar_lea.vmem %s1283_s5, %s911_s29  ;;  %vm742_vm9 = vcmask 7168  }
   0xe   : > { %v596_v9 = vld [vmem:[%s1282_s4] sm:$0xff]  ;;  %v597_v10 = vld [vmem:[%s1282_s4 + $0x8] sm:$0xff]  ;;  %v599_v12 = vld [vmem:[%s1282_s4 + $0x18] sm:$0xff]  ;;  %697 = vmatprep.mubr.f32.mxu0 %v977_v13  ;;  %709 = vmatprep.mubr.f32.mxu1 %v977_v13  ;;  %s298_s26 = scalar_lea.vmem %s1284_s6, %s913_s21  ;;  %s303_s29 = scalar_lea.vmem %s1285_s7, %s913_s21 }
   0xf   : > { %v310_v14 = vld [vmem:[%s1077_s9 + $0x30] sm:$0xff]  ;;  %v311_v15 = vld [vmem:[%s1077_s9 + $0x38] sm:$0xff]  ;;  %v308_v25 = vld [vmem:[%s1077_s9 + $0x20] sm:$0xff] }
  0x10   : > { %v309_v26 = vld [vmem:[%s1077_s9 + $0x28] sm:$0xff]  ;;  %v306_v32 = vld [vmem:[%s1077_s9 + $0x10] sm:$0xff]  ;;  %v307_v40 = vld [vmem:[%s1077_s9 + $0x18] sm:$0xff] }
  0x11   : > { %328 = vperm.xlu0 %934, %v314_v3   ;;  %323 = vperm.xlu1 %935, %v313_v4   ;;  %v304_v53 = vld [vmem:[%s1077_s9] sm:$0xff]  ;;  %v305_v57 = vld [vmem:[%s1077_s9 + $0x8] sm:$0xff] }
  0x15   : > { %360 = vperm.xlu0 %934, %v346_v5   ;;  %318 = vperm.xlu1 %935, %v312_v6  }
  0x19   : > { %355 = vperm.xlu0 %934, %v345_v7   ;;  %350 = vperm.xlu1 %935, %v344_v8  }
  0x1d   : > { %602 = vperm.xlu0 %934, %v596_v9   ;;  %607 = vperm.xlu1 %935, %v597_v10  }
  0x21   : > { %612 = vperm.xlu0 %934, %v598_v11   ;;  %617 = vperm.xlu1 %935, %v599_v12  }
  0x88   : > { %v334_v16 = vpop.permute.xlu0 %333  ;;  %v366_v17 = vpop.permute.xlu1 %365 }
  0x89   : > { %v342_v18 = vmul.f32 %v334_v16, %v310_v14  ;;  %v343_v19 = vmul.f32 %v334_v16, %v311_v15 }
  0x8b   : > { %v1081_v20 = vadd.f32 %v366_v17, %v342_v18  ;;  %v1083_v21 = vadd.f32 %v366_v17, %v343_v19 }
  0x8c   : > { %v329_v22 = vpop.permute.xlu0 %328  ;;  %v324_v29 = vpop.permute.xlu1 %323 }
  0x8d   : > { %v1086_v23 = vmul.f32 0.70710677, %v1081_v20  ;;  %v1089_v24 = vmul.f32 0.70710677, %v1083_v21  ;;  %v340_v30 = vmul.f32 %v329_v22, %v308_v25  ;;  %v341_v31 = vmul.f32 %v329_v22, %v309_v26 }
  0x8e   : > { %v338_v41 = vmul.f32 %v324_v29, %v306_v32  ;;  %v339_v47 = vmul.f32 %v324_v29, %v307_v40  ;;  %v1139_v18 = vmul.f32 0.5, %v1083_v21  ;;  %v1147_v26 = vmul.f32 0.5, %v1081_v20 }
  0x8f   : > { %v414_v27 = vand.u32 2147483647, %v1086_v23  ;;  %v415_v28 = vand.u32 2147483647, %v1089_v24  ;;  %vm399_vm0 = vcmp.ge.f32.partialorder %v1089_v24, 0.0  ;;  %vm398_vm1 = vcmp.ge.f32.partialorder %v1086_v23, 0.0 }
  0x90   : > { %v361_v33 = vpop.permute.xlu0 %360  ;;  %v319_v45 = vpop.permute.xlu1 %318  ;;  %v978_v24 = vmov -1.0  }
  0x91   : > { %v422_v34 = vmul.f32 0.3275911, %v414_v27  ;;  %v423_v35 = vmul.f32 0.3275911, %v415_v28  ;;  %v1096_v36 = vadd.f32 %v361_v33, %v340_v30  ;;  %v1098_v37 = vadd.f32 %v361_v33, %v341_v31 }
  0x92   : > { %v526_v55 = vsub.f32 0.0, %v414_v27  ;;  %v527_v59 = vsub.f32 0.0, %v415_v28  ;;  %v336_v63 = vmul.f32 %v319_v45, %v304_v53  ;;  %v337_v0 = vmul.f32 %v319_v45, %v305_v57 }
  0x93   : > { %v430_v38 = vadd.f32 1.0, %v422_v34  ;;  %v431_v39 = vadd.f32 1.0, %v423_v35  ;;  %v1102_v42 = vmul.f32 0.70710677, %v1096_v36  ;;  %v1105_v43 = vmul.f32 0.70710677, %v1098_v37 }
  0x94   : > { %v356_v44 = vpop.permute.xlu0 %355  ;;  %v351_v62 = vpop.permute.xlu1 %350  ;;  %v534_v2 = vmul.f32 %v526_v55, %v414_v27  ;;  %v535_v5 = vmul.f32 %v527_v59, %v415_v28  ;;  %v1144_v25 = vsel %vm399_vm0, 1.0, %v978_v24  ;;  %v1153_v21 = vsel %vm398_vm1, 1.0, %v978_v24 }
  0x95   : > { %936 = vrcp.f32 %v430_v38  ;;  %v1107_v46 = vadd.f32 %v356_v44, %v338_v41  ;;  %v412_v48 = vand.u32 2147483647, %v1102_v42  ;;  %v413_v49 = vand.u32 2147483647, %v1105_v43 }
  0x96   : > { %938 = vrcp.f32 %v431_v39  ;;  %v1111_v51 = vadd.f32 %v356_v44, %v339_v47  ;;  %v1123_v4 = vadd.f32 %v351_v62, %v336_v63  ;;  %v1125_v7 = vadd.f32 %v351_v62, %v337_v0 }
  0x97   : > { %v420_v50 = vmul.f32 0.3275911, %v412_v48  ;;  %v421_v52 = vmul.f32 0.3275911, %v413_v49  ;;  %v1115_v54 = vmul.f32 0.70710677, %v1107_v46 }
  0x98   : > { %v1119_v58 = vmul.f32 0.70710677, %v1111_v51  ;;  %v1128_v9 = vmul.f32 0.70710677, %v1123_v4  ;;  %v524_v10 = vsub.f32 0.0, %v412_v48  ;;  %v525_v11 = vsub.f32 0.0, %v413_v49 }
  0x99   : > { %v428_v56 = vadd.f32 1.0, %v420_v50  ;;  %v429_v60 = vadd.f32 1.0, %v421_v52  ;;  %v410_v61 = vand.u32 2147483647, %v1115_v54  ;;  %v1133_v14 = vmul.f32 0.70710677, %v1125_v7 }
  0x9a   : > { %v411_v1 = vand.u32 2147483647, %v1119_v58  ;;  %v548_v16 = vmul.f32 1.442695, %v534_v2  ;;  %v408_v17 = vand.u32 2147483647, %v1128_v9  ;;  %v532_v30 = vmul.f32 %v524_v10, %v412_v48 }
  0x9b   : > { %940 = vrcp.f32 %v428_v56  ;;  %v418_v3 = vmul.f32 0.3275911, %v410_v61  ;;  %v550_v22 = vmul.f32 1.442695, %v535_v5  ;;  %v522_v27 = vsub.f32 0.0, %v410_v61 }
  0x9c   : > { %942 = vrcp.f32 %v429_v60  ;;  %v419_v6 = vmul.f32 0.3275911, %v411_v1  ;;  %v409_v28 = vand.u32 2147483647, %v1133_v14  ;;  %v416_v29 = vmul.f32 0.3275911, %v408_v17 }
  0x9d   : > { %v426_v8 = vadd.f32 1.0, %v418_v3  ;;  %v533_v31 = vmul.f32 %v525_v11, %v413_v49  ;;  %v523_v34 = vsub.f32 0.0, %v411_v1  ;;  %vm396_vm2 = vcmp.ge.f32.partialorder %v1102_v42, 0.0 }
  0x9e   : > { %v427_v12 = vadd.f32 1.0, %v419_v6  ;;  %v417_v35 = vmul.f32 0.3275911, %v409_v28  ;;  %v424_v20 = vadd.f32 1.0, %v416_v29  ;;  %v530_v40 = vmul.f32 %v522_v27, %v410_v61 }
  0x9f   : > { %944 = vrcp.f32 %v426_v8  ;;  %v520_v23 = vsub.f32 0.0, %v408_v17  ;;  %v544_v45 = vmul.f32 1.442695, %v532_v30  ;;  %v546_v47 = vmul.f32 1.442695, %v533_v31 }
  0xa0   : > { %946 = vrcp.f32 %v427_v12  ;;  %v425_v41 = vadd.f32 1.0, %v417_v35  ;;  %v531_v52 = vmul.f32 %v523_v34, %v411_v1  ;;  %v521_v53 = vsub.f32 0.0, %v409_v28 }
  0xa1   : > { %948 = vpow2.f32 %v548_v16  ;;  %vm397_vm3 = vcmp.ge.f32.partialorder %v1105_v43, 0.0  ;;  %v540_v60 = vmul.f32 1.442695, %v530_v40  ;;  %v528_v61 = vmul.f32 %v520_v23, %v408_v17 }
  0xa2   : > { %v1135_v15 = vpop.eup %936  ;;  %950 = vpow2.f32 %v550_v22  ;;  %v1170_v63 = vsel %vm396_vm2, 1.0, %v978_v24  ;;  %v542_v3 = vmul.f32 1.442695, %v531_v52  ;;  %v529_v5 = vmul.f32 %v521_v53, %v409_v28 }
  0xa3   : > { %v1141_v19 = vpop.eup %938  ;;  %v454_v33 = vmul.f32 1.0614054, %v1135_v15  ;;  %952 = vrcp.f32 %v424_v20  ;;  %v536_v16 = vmul.f32 1.442695, %v528_v61  ;;  %vm394_vm4 = vcmp.ge.f32.partialorder %v1115_v54, 0.0 }
  0xa4   : > { %v455_v32 = vmul.f32 1.0614054, %v1141_v19  ;;  %954 = vrcp.f32 %v425_v41  ;;  %v538_v31 = vmul.f32 1.442695, %v529_v5  ;;  %v1189_v41 = vsel %vm397_vm3, 1.0, %v978_v24 }
  0xa5   : > { %v462_v39 = vadd.f32 -1.4531521, %v454_v33  ;;  %956 = vpow2.f32 %v544_v45  ;;  %vm395_vm5 = vcmp.ge.f32.partialorder %v1119_v58, 0.0  ;;  %v378_v58 = vmul.f32 0.5, %v1107_v46 }
  0xa6   : > { %v463_v38 = vadd.f32 -1.4531521, %v455_v32  ;;  %958 = vpow2.f32 %v546_v47  ;;  %vm392_vm6 = vcmp.ge.f32.partialorder %v1128_v9, 0.0  ;;  %vm393_vm7 = vcmp.ge.f32.partialorder %v1133_v14, 0.0 }
  0xa7   : > { %v470_v49 = vmul.f32 %v1135_v15, %v462_v39  ;;  %960 = vpow2.f32 %v540_v60  ;;  %v400_v46 = vsel %vm392_vm6, 1.0, %v978_v24  ;;  %v401_v9 = vsel %vm393_vm7, 1.0, %v978_v24 }
  0xa8   : > { %v1158_v44 = vpop.eup %940  ;;  %v471_v48 = vmul.f32 %v1141_v19, %v463_v38  ;;  %962 = vpow2.f32 %v542_v3  ;;  %v376_v14 = vmul.f32 0.5, %v1123_v4  ;;  %v593_v4 = vld [vmem:[%s1281_s3 + $0x8] sm:$0xff] }
  0xa9   : > { %v1162_v50 = vpop.eup %942  ;;  %v452_v55 = vmul.f32 1.0614054, %v1158_v44  ;;  %v478_v57 = vadd.f32 1.4214138, %v470_v49  ;;  %964 = vpow2.f32 %v536_v16 }
  0xaa   : > { %v479_v56 = vadd.f32 1.4214138, %v471_v48  ;;  %v453_v59 = vmul.f32 1.0614054, %v1162_v50  ;;  %966 = vpow2.f32 %v538_v31 }
  0xab   : > { %v460_v62 = vadd.f32 -1.4531521, %v452_v55  ;;  %v486_v1 = vmul.f32 %v1135_v15, %v478_v57 }
  0xac   : > { %v487_v0 = vmul.f32 %v1141_v19, %v479_v56  ;;  %v461_v2 = vadd.f32 -1.4531521, %v453_v59  ;;  %v1175_v8 = vpop.eup %944 }
  0xad   : > { %v468_v6 = vmul.f32 %v1158_v44, %v460_v62  ;;  %v494_v11 = vadd.f32 -0.28449672, %v486_v1  ;;  %v1178_v42 = vpop.eup %946  ;;  %v450_v22 = vmul.f32 1.0614054, %v1175_v8 }
  0xae   : > { %v495_v10 = vadd.f32 -0.28449672, %v487_v0  ;;  %v469_v12 = vmul.f32 %v1162_v50, %v461_v2  ;;  %v451_v30 = vmul.f32 1.0614054, %v1178_v42  ;;  %v949_v34 = vpop.eup %948 }
  0xaf   : > { %v476_v17 = vadd.f32 1.4214138, %v468_v6  ;;  %v502_v28 = vmul.f32 %v1135_v15, %v494_v11  ;;  %v458_v33 = vadd.f32 -1.4531521, %v450_v22  ;;  %v951_v40 = vpop.eup %950 }
  0xb0   : > { %v503_v27 = vmul.f32 %v1141_v19, %v495_v10  ;;  %v477_v29 = vadd.f32 1.4214138, %v469_v12  ;;  %v459_v39 = vadd.f32 -1.4531521, %v451_v30  ;;  %v1192_v47 = vpop.eup %952 }
  0xb1   : > { %v484_v32 = vmul.f32 %v1158_v44, %v476_v17  ;;  %v510_v20 = vadd.f32 0.2548296, %v502_v28  ;;  %v466_v45 = vmul.f32 %v1175_v8, %v458_v33  ;;  %v448_v43 = vmul.f32 1.0614054, %v1192_v47  ;;  %v1199_v57 = vpop.eup %954 }
  0xb2   : > { %v511_v35 = vadd.f32 0.2548296, %v503_v27  ;;  %v485_v38 = vmul.f32 %v1162_v50, %v477_v29  ;;  %v467_v53 = vmul.f32 %v1178_v42, %v459_v39  ;;  %v957_v17 = vpop.eup %956 }
  0xb3   : > { %v492_v23 = vadd.f32 -0.28449672, %v484_v32  ;;  %v518_v49 = vmul.f32 %v1135_v15, %v510_v20  ;;  %v474_v56 = vadd.f32 1.4214138, %v466_v45  ;;  %v449_v15 = vmul.f32 1.0614054, %v1199_v57  ;;  %v959_v30 = vpop.eup %958 }
  0xb4   : > { %v519_v48 = vmul.f32 %v1141_v19, %v511_v35  ;;  %v493_v52 = vadd.f32 -0.28449672, %v485_v38  ;;  %v475_v62 = vadd.f32 1.4214138, %v467_v53  ;;  %v456_v1 = vadd.f32 -1.4531521, %v448_v43 }
  0xb5   : > { %v500_v55 = vmul.f32 %v1158_v44, %v492_v23  ;;  %v558_v60 = vmul.f32 %v949_v34, %v518_v49  ;;  %v482_v19 = vmul.f32 %v1175_v8, %v474_v56  ;;  %v457_v12 = vadd.f32 -1.4531521, %v449_v15 }
  0xb6   : > { %v559_v59 = vmul.f32 %v951_v40, %v519_v48  ;;  %v501_v61 = vmul.f32 %v1162_v50, %v493_v52  ;;  %v483_v6 = vmul.f32 %v1178_v42, %v475_v62  ;;  %v464_v16 = vmul.f32 %v1192_v47, %v456_v1 }
  0xb7   : > { %v508_v0 = vadd.f32 0.2548296, %v500_v55  ;;  %v566_v3 = vsub.f32 1.0, %v558_v60  ;;  %v490_v11 = vadd.f32 -0.28449672, %v482_v19  ;;  %v465_v33 = vmul.f32 %v1199_v57, %v457_v12 }
  0xb8   : > { %v567_v2 = vsub.f32 1.0, %v559_v59  ;;  %v509_v5 = vadd.f32 0.2548296, %v501_v61  ;;  %v491_v29 = vadd.f32 -0.28449672, %v483_v6  ;;  %v380_v60 = vmul.f32 0.5, %v1096_v36 }
  0xb9   : > { %v516_v10 = vmul.f32 %v1158_v44, %v508_v0  ;;  %v574_v27 = vmul.f32 %v566_v3, %v1153_v21  ;;  %v498_v32 = vmul.f32 %v1175_v8, %v490_v11  ;;  %v472_v34 = vadd.f32 1.4214138, %v464_v16  ;;  %v961_v44 = vpop.eup %960 }
  0xba   : > { %v575_v22 = vmul.f32 %v567_v2, %v1144_v25  ;;  %v517_v28 = vmul.f32 %v1162_v50, %v509_v5  ;;  %v499_v39 = vmul.f32 %v1178_v42, %v491_v29  ;;  %v473_v23 = vadd.f32 1.4214138, %v465_v33  ;;  %v963_v50 = vpop.eup %962 }
  0xbb   : > { %v556_v31 = vmul.f32 %v957_v17, %v516_v10  ;;  %v582_v20 = vadd.f32 1.0, %v574_v27  ;;  %v506_v25 = vadd.f32 0.2548296, %v498_v32  ;;  %v480_v21 = vmul.f32 %v1192_v47, %v472_v34  ;;  %v965_v59 = vpop.eup %964 }
  0xbc   : > { %v583_v35 = vadd.f32 1.0, %v575_v22  ;;  %v557_v38 = vmul.f32 %v959_v30, %v517_v28  ;;  %v507_v52 = vadd.f32 0.2548296, %v499_v39  ;;  %v481_v56 = vmul.f32 %v1199_v57, %v473_v23  ;;  %v967_v0 = vpop.eup %966  ;;  %v603_v39 = vpop.permute.xlu0 %602 }
  0xbd   : > { %v564_v40 = vsub.f32 1.0, %v556_v31  ;;  %v590_v48 = vmul.f32 %v582_v20, %v1147_v26  ;;  %v514_v55 = vmul.f32 %v1175_v8, %v506_v25  ;;  %v488_v43 = vadd.f32 -0.28449672, %v480_v21 }
  0xbe   : > { %v591_v45 = vmul.f32 %v583_v35, %v1139_v18  ;;  %v565_v49 = vsub.f32 1.0, %v557_v38  ;;  %v515_v26 = vmul.f32 %v1178_v42, %v507_v52  ;;  %v489_v62 = vadd.f32 -0.28449672, %v481_v56  ;;  %v592_v38 = vld [vmem:[%s1281_s3] sm:$0xff] }
  0xbf   : > { %v572_v53 = vmul.f32 %v564_v40, %v1170_v63  ;;  %v554_v63 = vmul.f32 %v961_v44, %v514_v55  ;;  %v496_v8 = vmul.f32 %v1192_v47, %v488_v43  ;;  %v381_v19 = vmul.f32 0.5, %v1098_v37  ;;  %v608_v40 = vpop.permute.xlu1 %607 }
  0xc0   : > { %657 = vmatprep.subr.mxu0 %v591_v45  ;;  %915 = vmatprep.subr.mxu1 %v591_v45  ;;  %v573_v18 = vmul.f32 %v565_v49, %v1189_v41  ;;  %v555_v15 = vmul.f32 %v963_v50, %v515_v26  ;;  %v497_v41 = vmul.f32 %v1199_v57, %v489_v62  ;;  %v402_v42 = vsel %vm394_vm4, 1.0, %v978_v24  ;;  %v613_v25 = vpop.permute.xlu0 %612 }
  0xc1   : > { %658 = vmatpush1.msra.mxu0 %v590_v48  ;;  %919 = vmatpush1.msra.mxu1 %v590_v48  ;;  %v580_v61 = vadd.f32 1.0, %v572_v53  ;;  %v562_v2 = vsub.f32 1.0, %v554_v63  ;;  %v504_v3 = vadd.f32 0.2548296, %v496_v8  ;;  %v403_v10 = vsel %vm395_vm5, 1.0, %v978_v24  ;;  %v594_v24 = vld [vmem:[%s1281_s3 + $0x10] sm:$0xff] }
  0xc2   : > { %v581_v36 = vadd.f32 1.0, %v573_v18  ;;  %v563_v6 = vsub.f32 1.0, %v555_v15  ;;  %v505_v12 = vadd.f32 0.2548296, %v497_v41  ;;  %v379_v27 = vmul.f32 0.5, %v1111_v51 }
  0xc3   : > { %v588_v1 = vmul.f32 %v580_v61, %v380_v60  ;;  %v570_v11 = vmul.f32 %v562_v2, %v402_v42  ;;  %v512_v37 = vmul.f32 %v1192_v47, %v504_v3  ;;  %v377_v51 = vmul.f32 0.5, %v1125_v7  ;;  %v595_v7 = vld [vmem:[%s1281_s3 + $0x18] sm:$0xff]  ;;  %v618_v49 = vpop.permute.xlu1 %617 }
  0xc4   : > { %v589_v5 = vmul.f32 %v581_v36, %v381_v19  ;;  %v571_v16 = vmul.f32 %v563_v6, %v403_v10  ;;  %v513_v54 = vmul.f32 %v1199_v57, %v505_v12 }
  0xc5   : > { %v578_v17 = vadd.f32 1.0, %v570_v11  ;;  %v552_v22 = vmul.f32 %v965_v59, %v512_v37 }
  0xc6   : > { %659 = vmatprep.subr.mxu0 %v589_v5  ;;  %916 = vmatprep.subr.mxu1 %v589_v5  ;;  %v579_v28 = vadd.f32 1.0, %v571_v16  ;;  %v553_v47 = vmul.f32 %v967_v0, %v513_v54 }
  0xc7   : > { %660 = vmatpush1.msra.mxu0 %v588_v1  ;;  %920 = vmatpush1.msra.mxu1 %v588_v1  ;;  %v586_v29 = vmul.f32 %v578_v17, %v378_v58  ;;  %v560_v30 = vsub.f32 1.0, %v552_v22 }
  0xc8   : > { %v587_v31 = vmul.f32 %v579_v28, %v379_v27  ;;  %v561_v32 = vsub.f32 1.0, %v553_v47 }
  0xc9   : > { %v568_v33 = vmul.f32 %v560_v30, %v400_v46 }
  0xca   : > { %661 = vmatprep.subr.mxu0 %v587_v31  ;;  %917 = vmatprep.subr.mxu1 %v587_v31  ;;  %v569_v57 = vmul.f32 %v561_v32, %v401_v9 }
  0xcb   : > { %662 = vmatpush1.msra.mxu0 %v586_v29  ;;  %921 = vmatpush1.msra.mxu1 %v586_v29  ;;  %v576_v34 = vadd.f32 1.0, %v568_v33 }
  0xcc   : > { %v577_v44 = vadd.f32 1.0, %v569_v57 }
  0xcd   : > { %v584_v20 = vmul.f32 %v576_v34, %v376_v14 }
  0xce   : > { %v585_v35 = vmul.f32 %v577_v44, %v377_v51 }
  0xd0   : > { %663 = vmatprep.subr.mxu0 %v585_v35  ;;  %918 = vmatprep.subr.mxu1 %v585_v35 }
  0xd1   : > { %664 = vmatpush1.msra.mxu0 %v584_v20  ;;  %922 = vmatpush1.msra.mxu1 %v584_v20 }
  0xd2   : > { %905 = vmatmul.mubr.msk.f32.vlgmr.msra.gmra.mxu0 %vm620_vm8, %v592_v38  ;;  %907 = vmatmul.mubr.msk.f32.vlgmr.msra.gmra.mxu1 %vm620_vm8, %v594_v24 }
  0xd3   : > { %703 = vmatprep.mubr.f32.mxu0 %v977_v13  ;;  %715 = vmatprep.mubr.f32.mxu1 %v977_v13 }
  0xd6   : > { %906 = vmatmul.mubr.msk.f32.gmra.mxu0 %vm620_vm8, %v593_v4  ;;  %908 = vmatmul.mubr.msk.f32.gmra.mxu1 %vm620_vm8, %v595_v7 }
 0x192   : > { %v699_v23 = vpop.f32.mrf.mxu0  ;;  %v711_v13 = vpop.f32.mrf.mxu1 }
 0x193   : > { %v700_v21 = vadd.f32 %v699_v23, %v603_v39  ;;  %v712_v50 = vadd.f32 %v711_v13, %v613_v25 }
 0x194   : > { %v701_v45 = vpop.f32.mrf.mxu0  ;;  %v713_v48 = vpop.f32.mrf.mxu1 }
 0x195   : > { %722 = vst [vmem:[%s293_s20] sm:$0xff] %v700_v21  ;;  %726 = vst [vmem:[%s293_s20 + $0x20] sm:$0xff] %v712_v50  ;;  %v702_v52 = vadd.f32 %v701_v45, %v603_v39  ;;  %v714_v53 = vadd.f32 %v713_v48, %v613_v25  ;;  %v747_v43 = vmul.f32 %v700_v21, %v700_v21 }
 0x196   : > { %v705_v55 = vpop.f32.mrf.mxu0  ;;  %v717_v56 = vpop.f32.mrf.mxu1  ;;  %v751_v2 = vmul.f32 %v712_v50, %v712_v50 }
 0x197   : > { %723 = vst [vmem:[%s293_s20 + $0x8] sm:$0xff] %v702_v52  ;;  %727 = vst [vmem:[%s293_s20 + $0x28] sm:$0xff] %v714_v53  ;;  %v706_v59 = vadd.f32 %v705_v55, %v608_v40  ;;  %v718_v60 = vadd.f32 %v717_v56, %v618_v49  ;;  %v730_v18 = vadd.f32 %v702_v52, %v700_v21 }
 0x198   : > { %v748_v26 = vmul.f32 %v702_v52, %v702_v52  ;;  %v707_v61 = vpop.f32.mrf.mxu0  ;;  %v719_v63 = vpop.f32.mrf.mxu1  ;;  %v736_v19 = vadd.f32 %v714_v53, %v712_v50  ;;  %v752_v15 = vmul.f32 %v714_v53, %v714_v53 }
 0x199   : > { %724 = vst [vmem:[%s293_s20 + $0x10] sm:$0xff] %v706_v59  ;;  %728 = vst [vmem:[%s293_s20 + $0x30] sm:$0xff] %v718_v60  ;;  %v708_v62 = vadd.f32 %v707_v61, %v608_v40  ;;  %v720_v8 = vadd.f32 %v719_v63, %v618_v49  ;;  %731 = vadd.xlane.f32.xlu0 %v730_v18  ;;  %v749_v42 = vmul.f32 %v706_v59, %v706_v59 }
 0x19a   : > { %v755_v0 = vadd.f32 %v748_v26, %v747_v43  ;;  %v761_v3 = vadd.f32 %v752_v15, %v751_v2  ;;  %v753_v10 = vmul.f32 %v718_v60, %v718_v60 }
 0x19b   : > { %725 = vst [vmem:[%s293_s20 + $0x18] sm:$0xff] %v708_v62  ;;  %729 = vst [vmem:[%s293_s20 + $0x38] sm:$0xff] %v720_v8  ;;  %v733_v36 = vadd.f32 %v708_v62, %v706_v59  ;;  %v739_v1 = vadd.f32 %v720_v8, %v718_v60  ;;  %v750_v41 = vmul.f32 %v708_v62, %v708_v62 }
 0x19c   : > { %756 = vadd.xlane.f32.xlu1 %v755_v0  ;;  %v754_v6 = vmul.f32 %v720_v8, %v720_v8 }
 0x19d   : > { %737 = vadd.xlane.f32.xlu0 %v736_v19  ;;  %v758_v5 = vadd.f32 %v750_v41, %v749_v42 }
 0x19e   : > { %v764_v11 = vadd.f32 %v754_v6, %v753_v10 }
 0x1a0   : > { %734 = vadd.xlane.f32.xlu1 %v733_v36 }
 0x1a1   : > { %740 = vadd.xlane.f32.xlu0 %v739_v1 }
 0x1a4   : > { %762 = vadd.xlane.f32.xlu1 %v761_v3 }
 0x1a5   : > { %759 = vadd.xlane.f32.xlu0 %v758_v5 }
 0x1a9   : > { %765 = vadd.xlane.f32.xlu0 %v764_v11 }
 0x222   : > { %v732_v12 = vpop.xlane.xlu0 %731 }
 0x223   : > { %743 = vst.msk [vmem:[%s298_s26] sm:$0xff] %vm742_vm9, %v732_v12 }
 0x225   : > { %v757_v37 = vpop.xlane.xlu1 %756 }
 0x226   : > { %767 = vst.msk [vmem:[%s303_s29] sm:$0xff] %vm742_vm9, %v757_v37  ;;  %v738_v58 = vpop.xlane.xlu0 %737 }
 0x227   : > { %745 = vst.msk [vmem:[%s298_s26 + $0x10] sm:$0xff] %vm742_vm9, %v738_v58 }
 0x229   : > { %v735_v16 = vpop.xlane.xlu1 %734 }
 0x22a   : > { %744 = vst.msk [vmem:[%s298_s26 + $0x8] sm:$0xff] %vm742_vm9, %v735_v16  ;;  %v741_v17 = vpop.xlane.xlu0 %740 }
 0x22b   : > { %746 = vst.msk [vmem:[%s298_s26 + $0x18] sm:$0xff] %vm742_vm9, %v741_v17 }
 0x22d   : > { %v763_v54 = vpop.xlane.xlu1 %762 }
 0x22e   : > { %769 = vst.msk [vmem:[%s303_s29 + $0x10] sm:$0xff] %vm742_vm9, %v763_v54  ;;  %v760_v22 = vpop.xlane.xlu0 %759 }
 0x22f   : > { %768 = vst.msk [vmem:[%s303_s29 + $0x8] sm:$0xff] %vm742_vm9, %v760_v22 }
 0x232   : > { %v766_v27 = vpop.xlane.xlu0 %765 }
 0x233   : > { %770 = vst.msk [vmem:[%s303_s29 + $0x18] sm:$0xff] %vm742_vm9, %v766_v27 }
 0x234 PF: > { %s18_s24 = sadd.s32 1, %s974_s24  }
 0x235   : > { %p15_p4 = scmp.ge.s32.totalorder %s18_s24, 4  }
 0x237   :  { %17 = sbr.rel (!%p15_p4) target bundleno = 1 (0x1), region = 94 }

</bundles_post_ra>
